<compile_context>
chip_gen: v7x
topology: tpu7x:2x2x1
jax: 0.10.0
libtpu: 0.0.40
codegen_flags: <defaults>
</compile_context>

<pallas_src>
import functools
import math

import jax
import jax.numpy as jnp
from jax import lax
from jax.experimental import pallas as pl
from jax.experimental.pallas import tpu as pltpu


# ----------------------------------------------------------------------------
# Fused Pallas kernel: all encoder layers + head, one batch-block per step.
# ----------------------------------------------------------------------------
def _fused_dynamics_kernel(x_ref,
                           wqkv_ref, bqkv_ref, wo_ref, bo_ref,
                           w1_ref, b1_ref, w2_ref, b2_ref,
                           g1_ref, be1_ref, g2_ref, be2_ref,
                           hw_ref, hb_ref,
                           o_ref, *,
                           n_head, num_layers, num_tokens, seq_per_batch,
                           batch_per_block, ffn_chunk):
    """x_ref block is (M, D) with M = batch_per_block * seq_per_batch rows.
    Post-norm, ReLU FFN, eval-mode dropout = 0, matching
    nn.TransformerEncoderLayer(batch_first=True)."""
    x = x_ref[...]                                  # (M, D) f32, VMEM-resident
    M, D = x.shape
    S = seq_per_batch
    dh = D // n_head
    dff = w1_ref.shape[-1]

    # Block-diagonal bias so folded batch elements never attend across each
    # other (only materialized when more than one batch element per block).
    if batch_per_block > 1:
        row_b = lax.broadcasted_iota(jnp.int32, (M, M), 0) // S
        col_b = lax.broadcasted_iota(jnp.int32, (M, M), 1) // S
        attn_bias = jnp.where(row_b == col_b, 0.0, -1e30).astype(jnp.float32)

    # TODO(synk): switch to lax.fori_loop over the stacked weight refs if
    # num_layers grows beyond a handful (bounds code size / vreg live ranges).
    for l in range(num_layers):                     # static unroll (L small)
        xb = x.astype(jnp.bfloat16)                 # bf16 MXU operands, f32 acc

        # --- fused QKV projection: one (M,D)@(D,3D) matmul -----------------
        # 1/sqrt(dh) is pre-folded into the Q columns of wqkv / bqkv.
        qkv = jnp.dot(xb, wqkv_ref[l],
                      preferred_element_type=jnp.float32) + bqkv_ref[l]
        q = qkv[:, :D]
        k = qkv[:, D:2 * D]
        v = qkv[:, 2 * D:]

        # --- per-head attention (8-lane slices are cheap; matmuls are the
        #     unavoidable K=dh score / PV steps) ----------------------------
        ctx_parts = []
        for h in range(n_head):                     # static unroll over heads
            qh = q[:, h * dh:(h + 1) * dh].astype(jnp.bfloat16)
            kh = k[:, h * dh:(h + 1) * dh].astype(jnp.bfloat16)
            vh = v[:, h * dh:(h + 1) * dh].astype(jnp.bfloat16)
            # scores = q @ k^T without materializing a transpose (NT matmul).
            s = lax.dot_general(qh, kh,
                                dimension_numbers=(((1,), (1,)), ((), ())),
                                preferred_element_type=jnp.float32)
            if batch_per_block > 1:
                s = s + attn_bias
            s = s - jnp.max(s, axis=-1, keepdims=True)
            p = jnp.exp(s)                                       # f32 softmax
            inv = pl.reciprocal(jnp.sum(p, axis=-1, keepdims=True),
                                approx=True)
            ctx = jnp.dot(p.astype(jnp.bfloat16), vh,
                          preferred_element_type=jnp.float32) * inv  # (M, dh)
            ctx_parts.append(ctx)
        ctx_full = jnp.concatenate(ctx_parts, axis=-1)            # (M, D)

        # --- packed output projection: one (M,D)@(D,D) matmul --------------
        attn = jnp.dot(ctx_full.astype(jnp.bfloat16), wo_ref[l],
                       preferred_element_type=jnp.float32) + bo_ref[l]

        # --- residual + LayerNorm 1 (f32) -----------------------------------
        h1 = x + attn
        mu = jnp.mean(h1, axis=-1, keepdims=True)
        var = jnp.mean((h1 - mu) ** 2, axis=-1, keepdims=True)
        h1 = (h1 - mu) * lax.rsqrt(var + 1e-5) * g1_ref[l] + be1_ref[l]

        # --- feed-forward tiled over dff: the (M, dff) intermediate never
        #     exists; ffn_chunk-wide slabs are ReLU'd and accumulated --------
        h1b = h1.astype(jnp.bfloat16)
        y = None
        for c0 in range(0, dff, ffn_chunk):
            cs = min(ffn_chunk, dff - c0)
            f = jnp.dot(h1b, w1_ref[l, :, c0:c0 + cs],
                        preferred_element_type=jnp.float32)
            f = jnp.maximum(f + b1_ref[l, :, c0:c0 + cs], 0.0)   # (M, cs)
            # w2 stored lane-dense as (D, dff): contract lanes (NT matmul).
            part = lax.dot_general(f.astype(jnp.bfloat16),
                                   w2_ref[l, :, c0:c0 + cs],
                                   dimension_numbers=(((1,), (1,)), ((), ())),
                                   preferred_element_type=jnp.float32)
            y = part if y is None else y + part
        y = y + b2_ref[l]

        # --- residual + LayerNorm 2 (f32) ------------------------------------
        h2 = h1 + y
        mu2 = jnp.mean(h2, axis=-1, keepdims=True)
        var2 = jnp.mean((h2 - mu2) ** 2, axis=-1, keepdims=True)
        x = (h2 - mu2) * lax.rsqrt(var2 + 1e-5) * g2_ref[l] + be2_ref[l]

    # --- output head on the last num_tokens rows of every batch element -----
    rows = [x[i * S + S - num_tokens:(i + 1) * S, :]
            for i in range(batch_per_block)]
    last = rows[0] if batch_per_block == 1 else jnp.concatenate(rows, axis=0)
    logits = jnp.dot(last.astype(jnp.bfloat16), hw_ref[...],
                     preferred_element_type=jnp.float32) + hb_ref[...]
    for i in range(batch_per_block):
        o_ref[i, :, :] = logits[i * num_tokens:(i + 1) * num_tokens, :]


# ----------------------------------------------------------------------------
# Wrapper
# ----------------------------------------------------------------------------
def _full_spec(arr):
    """Whole array as one block; same block for every grid step (no re-DMA).
    TODO(synk): mark pipeline_mode=pl.Buffered(1) / set vmem_limit_bytes once
    D/dff/num_layers scale toward v7x's 64 MiB per-TC VMEM."""
    nd = arr.ndim
    return pl.BlockSpec(arr.shape, lambda b, _nd=nd: (0,) * _nd)


def dynamics_forward(prepared, token_seq, action_indices, mask=None):
    """Mirrors DynamicsModel.forward (eval mode)."""
    B, seq_len, num_tokens = token_seq.shape
    D = prepared["token_emb"].shape[1]
    S = seq_len * num_tokens
    num_layers = prepared["wqkv"].shape[0]
    n_head = prepared["n_head"]
    V = prepared["token_emb"].shape[0]
    Vpad = prepared["head_w"].shape[1]

    # Embedding gathers / masking / reshape stay in plain JAX.
    tok = prepared["token_emb"][token_seq]                       # (B, L, N, D)
    act = prepared["action_emb"][action_indices][:, :, None, :]  # (B, L, 1, D)
    combined = tok + act
    if mask is not None:
        combined = jnp.where(mask[..., None], prepared["mask_token"][0], combined)
    x = combined.reshape(B * S, D).astype(jnp.float32)

    # Even B -> 2 parallel blocks (both v7x TCs busy); odd B -> fully folded
    # single block (bigger matmul M / single step on v5e/v6e).
    n_blocks = 2 if (B % 2 == 0 and B >= 2) else 1
    bb = B // n_blocks

    weight_args = (prepared["wqkv"], prepared["bqkv"],
                   prepared["wo"], prepared["bo"],
                   prepared["w1"], prepared["b1"],
                   prepared["w2"], prepared["b2"],
                   prepared["g1"], prepared["be1"],
                   prepared["g2"], prepared["be2"],
                   prepared["head_w"], prepared["head_b"])

    kernel = functools.partial(_fused_dynamics_kernel,
                               n_head=n_head, num_layers=num_layers,
                               num_tokens=num_tokens, seq_per_batch=S,
                               batch_per_block=bb, ffn_chunk=512)

    out = pl.pallas_call(
        kernel,
        out_shape=jax.ShapeDtypeStruct((B, num_tokens, Vpad), jnp.float32),
        grid=(n_blocks,),
        in_specs=[pl.BlockSpec((bb * S, D), lambda g: (g, 0))]
                 + [_full_spec(w) for w in weight_args],
        out_specs=pl.BlockSpec((bb, num_tokens, Vpad), lambda g: (g, 0, 0)),
        compiler_params=pltpu.CompilerParams(
            dimension_semantics=("parallel",)),
    )(x, *weight_args)

    return out[:, :, :V]                          # drop lane padding


# ----------------------------------------------------------------------------
# Parameter init (PyTorch layout) + one-time host-side conversion
# ----------------------------------------------------------------------------
def init_torch_params(key, *, latent_dim, num_tokens, num_actions,
                      num_layers, dff):
    """Deterministic params in PyTorch (out_features, in_features) layout."""
    D = latent_dim
    keys = iter(jax.random.split(key, 3 + 4 * num_layers))
    nrm = lambda k, shp: (0.02 * jax.random.normal(k, shp)).astype(jnp.float32)

    params = {
        "token_emb": nrm(next(keys), (num_tokens, D)),
        "action_emb": nrm(next(keys), (num_actions, D)),
        "mask_token": jnp.zeros((1, D), jnp.float32),
        "head_w": nrm(next(keys), (num_tokens, D)),
        "head_b": jnp.zeros((num_tokens,), jnp.float32),
        "layers": [],
    }
    for _ in range(num_layers):
        params["layers"].append({
            "in_proj_w": nrm(next(keys), (3 * D, D)),
            "in_proj_b": jnp.zeros((3 * D,), jnp.float32),
            "out_proj_w": nrm(next(keys), (D, D)),
            "out_proj_b": jnp.zeros((D,), jnp.float32),
            "lin1_w": nrm(next(keys), (dff, D)),
            "lin1_b": jnp.zeros((dff,), jnp.float32),
            "lin2_w": nrm(next(keys), (D, dff)),
            "lin2_b": jnp.zeros((D,), jnp.float32),
            "ln1_g": jnp.ones((D,), jnp.float32),
            "ln1_b": jnp.zeros((D,), jnp.float32),
            "ln2_g": jnp.ones((D,), jnp.float32),
            "ln2_b": jnp.zeros((D,), jnp.float32),
        })
    return params


def prepare_params(tp, *, n_head, lane_pad=128):
    """Pre-transpose / pack / pad / cast the weights once on the host.

    Layouts (all lane-dense):
      wqkv (L, D, 3D)   -- x @ wqkv gives [q | k | v]; 1/sqrt(dh) folded into q
      wo   (L, D, D)    -- packed output projection (ctx @ wo)
      w1   (L, D, dff)  -- FFN1 (h1 @ w1)
      w2   (L, D, dff)  -- FFN2 used as NT matmul (contract lanes), no lane pad
    """
    D = tp["token_emb"].shape[1]
    dh = D // n_head
    V = tp["head_w"].shape[0]
    bf = jnp.bfloat16
    scale = 1.0 / math.sqrt(dh)

    acc = {k: [] for k in ("wqkv", "bqkv", "wo", "bo", "w1", "b1", "w2", "b2",
                           "g1", "be1", "g2", "be2")}
    for lp in tp["layers"]:
        W, Bv = lp["in_proj_w"], lp["in_proj_b"]           # (3D, D), (3D,)
        wq = W[:D] * scale                                 # fold 1/sqrt(dh)
        bq = Bv[:D] * scale
        acc["wqkv"].append(
            jnp.concatenate([wq, W[D:2 * D], W[2 * D:]], axis=0).T)   # (D, 3D)
        acc["bqkv"].append(
            jnp.concatenate([bq, Bv[D:2 * D], Bv[2 * D:]]).reshape(1, 3 * D))
        acc["wo"].append(lp["out_proj_w"].T)               # (D, D)
        acc["bo"].append(lp["out_proj_b"].reshape(1, D))
        acc["w1"].append(lp["lin1_w"].T)                   # (D, dff)
        acc["b1"].append(lp["lin1_b"].reshape(1, -1))
        acc["w2"].append(lp["lin2_w"])                     # (D, dff) lane-dense
        acc["b2"].append(lp["lin2_b"].reshape(1, D))
        acc["g1"].append(lp["ln1_g"].reshape(1, D))
        acc["be1"].append(lp["ln1_b"].reshape(1, D))
        acc["g2"].append(lp["ln2_g"].reshape(1, D))
        acc["be2"].append(lp["ln2_b"].reshape(1, D))

    Vpad = max(((V + lane_pad - 1) // lane_pad) * lane_pad, lane_pad)
    head_wt = jnp.pad(tp["head_w"].T, ((0, 0), (0, Vpad - V)))   # (D, Vpad)
    head_b = jnp.pad(tp["head_b"], (0, Vpad - V)).reshape(1, Vpad)

    return {
        "token_emb": tp["token_emb"], "action_emb": tp["action_emb"],
        "mask_token": tp["mask_token"], "n_head": n_head,
        "wqkv": jnp.stack(acc["wqkv"]).astype(bf),
        "bqkv": jnp.stack(acc["bqkv"]).astype(jnp.float32),
        "wo": jnp.stack(acc["wo"]).astype(bf),
        "bo": jnp.stack(acc["bo"]).astype(jnp.float32),
        "w1": jnp.stack(acc["w1"]).astype(bf),
        "b1": jnp.stack(acc["b1"]).astype(jnp.float32),
        "w2": jnp.stack(acc["w2"]).astype(bf),
        "b2": jnp.stack(acc["b2"]).astype(jnp.float32),
        "g1": jnp.stack(acc["g1"]), "be1": jnp.stack(acc["be1"]),
        "g2": jnp.stack(acc["g2"]), "be2": jnp.stack(acc["be2"]),
        "head_w": head_wt.astype(bf), "head_b": head_b.astype(jnp.float32),
    }


# ----------------------------------------------------------------------------
# Pure-JAX f32 reference (PyTorch semantics) for tolerance checking
# ----------------------------------------------------------------------------
def _ln(h, g, b, eps=1e-5):
    mu = jnp.mean(h, axis=-1, keepdims=True)
    var = jnp.mean((h - mu) ** 2, axis=-1, keepdims=True)
    return (h - mu) * lax.rsqrt(var + eps) * g + b


def dynamics_forward_ref(tp, token_seq, action_indices, n_head, mask=None):
    B, seq_len, num_tokens = token_seq.shape
    D = tp["token_emb"].shape[1]
    dh = D // n_head
    x = tp["token_emb"][token_seq] + tp["action_emb"][action_indices][:, :, None, :]
    if mask is not None:
        x = jnp.where(mask[..., None], tp["mask_token"][0], x)
    x = x.reshape(B, seq_len * num_tokens, D).astype(jnp.float32)
    for lp in tp["layers"]:
        qkv = jnp.einsum('bsd,ed->bse', x, lp["in_proj_w"]) + lp["in_proj_b"]
        q, k, v = qkv[..., :D], qkv[..., D:2 * D], qkv[..., 2 * D:]
        split = lambda t: t.reshape(B, -1, n_head, dh).transpose(0, 2, 1, 3)
        q, k, v = split(q), split(k), split(v)
        s = jnp.einsum('bhqd,bhkd->bhqk', q, k) / math.sqrt(dh)
        p = jax.nn.softmax(s, axis=-1)
        ctx = jnp.einsum('bhqk,bhkd->bhqd', p, v)
        ctx = ctx.transpose(0, 2, 1, 3).reshape(B, -1, D)
        attn = jnp.einsum('bsd,ed->bse', ctx, lp["out_proj_w"]) + lp["out_proj_b"]
        h1 = _ln(x + attn, lp["ln1_g"], lp["ln1_b"])
        f = jnp.maximum(jnp.einsum('bsd,fd->bsf', h1, lp["lin1_w"]) + lp["lin1_b"], 0.0)
        f = jnp.einsum('bsf,df->bsd', f, lp["lin2_w"]) + lp["lin2_b"]
        x = _ln(h1 + f, lp["ln2_g"], lp["ln2_b"])
    out = x[:, -num_tokens:]
    return jnp.einsum('bsd,vd->bsv', out, tp["head_w"]) + tp["head_b"]


# ----------------------------------------------------------------------------
if __name__ == "__main__":
    config = dict(latent_dim=32, num_tokens=16, num_actions=4,
                  n_head=4, dropout=0.0, num_layers=2)
    DFF = 2048  # nn.TransformerEncoderLayer default dim_feedforward

    key = jax.random.PRNGKey(0)
    kp, kt, ka = jax.random.split(key, 3)
    torch_params = init_torch_params(kp,
                                     latent_dim=config["latent_dim"],
                                     num_tokens=config["num_tokens"],
                                     num_actions=config["num_actions"],
                                     num_layers=config["num_layers"],
                                     dff=DFF)
    prepared = prepare_params(torch_params, n_head=config["n_head"])

    # bf16 MXU operands + approx reciprocal in softmax => not bit-exact vs f32;
    # expected max-abs error on these logits is ~1e-3 (tolerance 2e-2).
    TOL = 2e-2

    # Case 1: even batch -> grid=(2,) parallel (one batch element per block).
    B, seq_len = 2, 2
    token_seq = jax.random.randint(kt, (B, seq_len, config["num_tokens"]),
                                   0, config["num_tokens"], dtype=jnp.int32)
    action_indices = jax.random.randint(ka, (B, seq_len),
                                        0, config["num_actions"], dtype=jnp.int32)
    logits = dynamics_forward(prepared, token_seq, action_indices, mask=None)
    jax.block_until_ready(logits)
    assert logits.shape == (B, config["num_tokens"], config["num_tokens"])
    assert bool(jnp.all(jnp.isfinite(logits)))
    ref = dynamics_forward_ref(torch_params, token_seq, action_indices,
                               config["n_head"])
    assert float(jnp.max(jnp.abs(logits - ref))) < TOL

    # Case 2: odd batch -> fully folded single block exercising the
    # block-diagonal attention bias path.
    B2 = 3
    kt2, ka2 = jax.random.split(jax.random.PRNGKey(1), 2)
    token_seq2 = jax.random.randint(kt2, (B2, seq_len, config["num_tokens"]),
                                    0, config["num_tokens"], dtype=jnp.int32)
    action_indices2 = jax.random.randint(ka2, (B2, seq_len),
                                         0, config["num_actions"], dtype=jnp.int32)
    logits2 = dynamics_forward(prepared, token_seq2, action_indices2, mask=None)
    jax.block_until_ready(logits2)
    ref2 = dynamics_forward_ref(torch_params, token_seq2, action_indices2,
                                config["n_head"])
    assert float(jnp.max(jnp.abs(logits2 - ref2))) < TOL

    print("KERNEL_OK")
</pallas_src>

<mosaic_0001>
module attributes {stable_mosaic.version = 11 : i64} {
  func.func @_fused_dynamics_kernel(%arg0: i32, %arg1: memref<32x32xf32, #tpu.memory_space<vmem>>, %arg2: memref<2x32x96xbf16, #tpu.memory_space<vmem>>, %arg3: memref<2x1x96xf32, #tpu.memory_space<vmem>>, %arg4: memref<2x32x32xbf16, #tpu.memory_space<vmem>>, %arg5: memref<2x1x32xf32, #tpu.memory_space<vmem>>, %arg6: memref<2x32x2048xbf16, #tpu.memory_space<vmem>>, %arg7: memref<2x1x2048xf32, #tpu.memory_space<vmem>>, %arg8: memref<2x32x2048xbf16, #tpu.memory_space<vmem>>, %arg9: memref<2x1x32xf32, #tpu.memory_space<vmem>>, %arg10: memref<2x1x32xf32, #tpu.memory_space<vmem>>, %arg11: memref<2x1x32xf32, #tpu.memory_space<vmem>>, %arg12: memref<2x1x32xf32, #tpu.memory_space<vmem>>, %arg13: memref<2x1x32xf32, #tpu.memory_space<vmem>>, %arg14: memref<32x128xbf16, #tpu.memory_space<vmem>>, %arg15: memref<1x128xf32, #tpu.memory_space<vmem>>, %arg16: memref<1x16x128xf32, #tpu.memory_space<vmem>>) attributes {dimension_semantics = [#tpu.dimension_semantics<parallel>], iteration_bounds = array<i64: 2>, scalar_prefetch = 0 : i64, scratch_operands = 0 : i64, tpu.core_type = #tpu.core_type<tc>, window_params = [{transform_indices = @transform_0, window_bounds = array<i64: 32, 32>}, {pipeline_mode = #tpu.pipeline_mode<synchronous>, transform_indices = @transform_1, window_bounds = array<i64: 2, 32, 96>}, {pipeline_mode = #tpu.pipeline_mode<synchronous>, transform_indices = @transform_2, window_bounds = array<i64: 2, 1, 96>}, {pipeline_mode = #tpu.pipeline_mode<synchronous>, transform_indices = @transform_3, window_bounds = array<i64: 2, 32, 32>}, {pipeline_mode = #tpu.pipeline_mode<synchronous>, transform_indices = @transform_4, window_bounds = array<i64: 2, 1, 32>}, {pipeline_mode = #tpu.pipeline_mode<synchronous>, transform_indices = @transform_5, window_bounds = array<i64: 2, 32, 2048>}, {pipeline_mode = #tpu.pipeline_mode<synchronous>, transform_indices = @transform_6, window_bounds = array<i64: 2, 1, 2048>}, {pipeline_mode = #tpu.pipeline_mode<synchronous>, transform_indices = @transform_7, window_bounds = array<i64: 2, 32, 2048>}, {pipeline_mode = #tpu.pipeline_mode<synchronous>, transform_indices = @transform_8, window_bounds = array<i64: 2, 1, 32>}, {pipeline_mode = #tpu.pipeline_mode<synchronous>, transform_indices = @transform_9, window_bounds = array<i64: 2, 1, 32>}, {pipeline_mode = #tpu.pipeline_mode<synchronous>, transform_indices = @transform_10, window_bounds = array<i64: 2, 1, 32>}, {pipeline_mode = #tpu.pipeline_mode<synchronous>, transform_indices = @transform_11, window_bounds = array<i64: 2, 1, 32>}, {pipeline_mode = #tpu.pipeline_mode<synchronous>, transform_indices = @transform_12, window_bounds = array<i64: 2, 1, 32>}, {pipeline_mode = #tpu.pipeline_mode<synchronous>, transform_indices = @transform_13, window_bounds = array<i64: 32, 128>}, {pipeline_mode = #tpu.pipeline_mode<synchronous>, transform_indices = @transform_14, window_bounds = array<i64: 1, 128>}, {transform_indices = @transform_15, window_bounds = array<i64: 1, 16, 128>}]} {
    %c0 = arith.constant 0 : index
    %c0_0 = arith.constant 0 : index
    %0 = vector.load %arg1[%c0, %c0_0] : memref<32x32xf32, #tpu.memory_space<vmem>>, vector<32x32xf32>
    %1 = arith.truncf %0 : vector<32x32xf32> to vector<32x32xbf16>
    %c0_1 = arith.constant 0 : index
    %c0_2 = arith.constant 0 : index
    %c0_3 = arith.constant 0 : index
    %2 = vector.load %arg2[%c0_1, %c0_2, %c0_3] : memref<2x32x96xbf16, #tpu.memory_space<vmem>>, vector<1x32x96xbf16>
    %3 = vector.shape_cast %2 : vector<1x32x96xbf16> to vector<32x96xbf16>
    %cst = arith.constant dense<0.000000e+00> : vector<32x96xf32>
    %4 = tpu.matmul %1, %3, %cst {dimension_numbers = #tpu.dot_dimension_numbers<[1], [0], [0], [1], [0, 0, 1, 1], [], []>} : vector<32x32xbf16>, vector<32x96xbf16>, vector<32x96xf32> -> vector<32x96xf32>
    %c0_4 = arith.constant 0 : index
    %c0_5 = arith.constant 0 : index
    %c0_6 = arith.constant 0 : index
    %5 = vector.load %arg3[%c0_4, %c0_5, %c0_6] : memref<2x1x96xf32, #tpu.memory_space<vmem>>, vector<1x1x96xf32>
    %6 = vector.shape_cast %5 : vector<1x1x96xf32> to vector<1x96xf32>
    %7 = vector.broadcast %6 : vector<1x96xf32> to vector<32x96xf32>
    %8 = arith.addf %4, %7 : vector<32x96xf32>
    %9 = vector.extract_strided_slice %8 {offsets = [0, 0], sizes = [32, 32], strides = [1, 1]} : vector<32x96xf32> to vector<32x32xf32>
    %10 = vector.extract_strided_slice %8 {offsets = [0, 32], sizes = [32, 32], strides = [1, 1]} : vector<32x96xf32> to vector<32x32xf32>
    %11 = vector.extract_strided_slice %8 {offsets = [0, 64], sizes = [32, 32], strides = [1, 1]} : vector<32x96xf32> to vector<32x32xf32>
    %12 = vector.extract_strided_slice %9 {offsets = [0, 0], sizes = [32, 8], strides = [1, 1]} : vector<32x32xf32> to vector<32x8xf32>
    %13 = arith.truncf %12 : vector<32x8xf32> to vector<32x8xbf16>
    %14 = vector.extract_strided_slice %10 {offsets = [0, 0], sizes = [32, 8], strides = [1, 1]} : vector<32x32xf32> to vector<32x8xf32>
    %15 = arith.truncf %14 : vector<32x8xf32> to vector<32x8xbf16>
    %16 = vector.extract_strided_slice %11 {offsets = [0, 0], sizes = [32, 8], strides = [1, 1]} : vector<32x32xf32> to vector<32x8xf32>
    %17 = arith.truncf %16 : vector<32x8xf32> to vector<32x8xbf16>
    %cst_7 = arith.constant dense<0.000000e+00> : vector<32x32xf32>
    %18 = tpu.matmul %13, %15, %cst_7 {dimension_numbers = #tpu.dot_dimension_numbers<[1], [1], [0], [0], [0, 0, 1, 0], [], []>} : vector<32x8xbf16>, vector<32x8xbf16>, vector<32x32xf32> -> vector<32x32xf32>
    %cst_8 = arith.constant dense<0xFF800000> : vector<32xf32>
    %19 = vector.multi_reduction <maximumf>, %18, %cst_8 [1] : vector<32x32xf32> to vector<32xf32>
    %20 = vector.shape_cast %19 : vector<32xf32> to vector<32x1xf32>
    %21 = vector.broadcast %20 : vector<32x1xf32> to vector<32x32xf32>
    %22 = arith.subf %18, %21 : vector<32x32xf32>
    %23 = math.exp %22 : vector<32x32xf32>
    %cst_9 = arith.constant dense<0.000000e+00> : vector<32xf32>
    %24 = vector.multi_reduction <add>, %23, %cst_9 [1] : vector<32x32xf32> to vector<32xf32>
    %25 = vector.shape_cast %24 : vector<32xf32> to vector<32x1xf32>
    %26 = tpu.reciprocal %25 {approx = true} : vector<32x1xf32> -> vector<32x1xf32>
    %27 = arith.truncf %23 : vector<32x32xf32> to vector<32x32xbf16>
    %cst_10 = arith.constant dense<0.000000e+00> : vector<32x8xf32>
    %28 = tpu.matmul %27, %17, %cst_10 {dimension_numbers = #tpu.dot_dimension_numbers<[1], [0], [0], [1], [0, 0, 1, 1], [], []>} : vector<32x32xbf16>, vector<32x8xbf16>, vector<32x8xf32> -> vector<32x8xf32>
    %29 = vector.broadcast %26 : vector<32x1xf32> to vector<32x8xf32>
    %30 = arith.mulf %28, %29 : vector<32x8xf32>
    %31 = vector.extract_strided_slice %9 {offsets = [0, 8], sizes = [32, 8], strides = [1, 1]} : vector<32x32xf32> to vector<32x8xf32>
    %32 = arith.truncf %31 : vector<32x8xf32> to vector<32x8xbf16>
    %33 = vector.extract_strided_slice %10 {offsets = [0, 8], sizes = [32, 8], strides = [1, 1]} : vector<32x32xf32> to vector<32x8xf32>
    %34 = arith.truncf %33 : vector<32x8xf32> to vector<32x8xbf16>
    %35 = vector.extract_strided_slice %11 {offsets = [0, 8], sizes = [32, 8], strides = [1, 1]} : vector<32x32xf32> to vector<32x8xf32>
    %36 = arith.truncf %35 : vector<32x8xf32> to vector<32x8xbf16>
    %cst_11 = arith.constant dense<0.000000e+00> : vector<32x32xf32>
    %37 = tpu.matmul %32, %34, %cst_11 {dimension_numbers = #tpu.dot_dimension_numbers<[1], [1], [0], [0], [0, 0, 1, 0], [], []>} : vector<32x8xbf16>, vector<32x8xbf16>, vector<32x32xf32> -> vector<32x32xf32>
    %cst_12 = arith.constant dense<0xFF800000> : vector<32xf32>
    %38 = vector.multi_reduction <maximumf>, %37, %cst_12 [1] : vector<32x32xf32> to vector<32xf32>
    %39 = vector.shape_cast %38 : vector<32xf32> to vector<32x1xf32>
    %40 = vector.broadcast %39 : vector<32x1xf32> to vector<32x32xf32>
    %41 = arith.subf %37, %40 : vector<32x32xf32>
    %42 = math.exp %41 : vector<32x32xf32>
    %cst_13 = arith.constant dense<0.000000e+00> : vector<32xf32>
    %43 = vector.multi_reduction <add>, %42, %cst_13 [1] : vector<32x32xf32> to vector<32xf32>
    %44 = vector.shape_cast %43 : vector<32xf32> to vector<32x1xf32>
    %45 = tpu.reciprocal %44 {approx = true} : vector<32x1xf32> -> vector<32x1xf32>
    %46 = arith.truncf %42 : vector<32x32xf32> to vector<32x32xbf16>
    %cst_14 = arith.constant dense<0.000000e+00> : vector<32x8xf32>
    %47 = tpu.matmul %46, %36, %cst_14 {dimension_numbers = #tpu.dot_dimension_numbers<[1], [0], [0], [1], [0, 0, 1, 1], [], []>} : vector<32x32xbf16>, vector<32x8xbf16>, vector<32x8xf32> -> vector<32x8xf32>
    %48 = vector.broadcast %45 : vector<32x1xf32> to vector<32x8xf32>
    %49 = arith.mulf %47, %48 : vector<32x8xf32>
    %50 = vector.extract_strided_slice %9 {offsets = [0, 16], sizes = [32, 8], strides = [1, 1]} : vector<32x32xf32> to vector<32x8xf32>
    %51 = arith.truncf %50 : vector<32x8xf32> to vector<32x8xbf16>
    %52 = vector.extract_strided_slice %10 {offsets = [0, 16], sizes = [32, 8], strides = [1, 1]} : vector<32x32xf32> to vector<32x8xf32>
    %53 = arith.truncf %52 : vector<32x8xf32> to vector<32x8xbf16>
    %54 = vector.extract_strided_slice %11 {offsets = [0, 16], sizes = [32, 8], strides = [1, 1]} : vector<32x32xf32> to vector<32x8xf32>
    %55 = arith.truncf %54 : vector<32x8xf32> to vector<32x8xbf16>
    %cst_15 = arith.constant dense<0.000000e+00> : vector<32x32xf32>
    %56 = tpu.matmul %51, %53, %cst_15 {dimension_numbers = #tpu.dot_dimension_numbers<[1], [1], [0], [0], [0, 0, 1, 0], [], []>} : vector<32x8xbf16>, vector<32x8xbf16>, vector<32x32xf32> -> vector<32x32xf32>
    %cst_16 = arith.constant dense<0xFF800000> : vector<32xf32>
    %57 = vector.multi_reduction <maximumf>, %56, %cst_16 [1] : vector<32x32xf32> to vector<32xf32>
    %58 = vector.shape_cast %57 : vector<32xf32> to vector<32x1xf32>
    %59 = vector.broadcast %58 : vector<32x1xf32> to vector<32x32xf32>
    %60 = arith.subf %56, %59 : vector<32x32xf32>
    %61 = math.exp %60 : vector<32x32xf32>
    %cst_17 = arith.constant dense<0.000000e+00> : vector<32xf32>
    %62 = vector.multi_reduction <add>, %61, %cst_17 [1] : vector<32x32xf32> to vector<32xf32>
    %63 = vector.shape_cast %62 : vector<32xf32> to vector<32x1xf32>
    %64 = tpu.reciprocal %63 {approx = true} : vector<32x1xf32> -> vector<32x1xf32>
    %65 = arith.truncf %61 : vector<32x32xf32> to vector<32x32xbf16>
    %cst_18 = arith.constant dense<0.000000e+00> : vector<32x8xf32>
    %66 = tpu.matmul %65, %55, %cst_18 {dimension_numbers = #tpu.dot_dimension_numbers<[1], [0], [0], [1], [0, 0, 1, 1], [], []>} : vector<32x32xbf16>, vector<32x8xbf16>, vector<32x8xf32> -> vector<32x8xf32>
    %67 = vector.broadcast %64 : vector<32x1xf32> to vector<32x8xf32>
    %68 = arith.mulf %66, %67 : vector<32x8xf32>
    %69 = vector.extract_strided_slice %9 {offsets = [0, 24], sizes = [32, 8], strides = [1, 1]} : vector<32x32xf32> to vector<32x8xf32>
    %70 = arith.truncf %69 : vector<32x8xf32> to vector<32x8xbf16>
    %71 = vector.extract_strided_slice %10 {offsets = [0, 24], sizes = [32, 8], strides = [1, 1]} : vector<32x32xf32> to vector<32x8xf32>
    %72 = arith.truncf %71 : vector<32x8xf32> to vector<32x8xbf16>
    %73 = vector.extract_strided_slice %11 {offsets = [0, 24], sizes = [32, 8], strides = [1, 1]} : vector<32x32xf32> to vector<32x8xf32>
    %74 = arith.truncf %73 : vector<32x8xf32> to vector<32x8xbf16>
    %cst_19 = arith.constant dense<0.000000e+00> : vector<32x32xf32>
    %75 = tpu.matmul %70, %72, %cst_19 {dimension_numbers = #tpu.dot_dimension_numbers<[1], [1], [0], [0], [0, 0, 1, 0], [], []>} : vector<32x8xbf16>, vector<32x8xbf16>, vector<32x32xf32> -> vector<32x32xf32>
    %cst_20 = arith.constant dense<0xFF800000> : vector<32xf32>
    %76 = vector.multi_reduction <maximumf>, %75, %cst_20 [1] : vector<32x32xf32> to vector<32xf32>
    %77 = vector.shape_cast %76 : vector<32xf32> to vector<32x1xf32>
    %78 = vector.broadcast %77 : vector<32x1xf32> to vector<32x32xf32>
    %79 = arith.subf %75, %78 : vector<32x32xf32>
    %80 = math.exp %79 : vector<32x32xf32>
    %cst_21 = arith.constant dense<0.000000e+00> : vector<32xf32>
    %81 = vector.multi_reduction <add>, %80, %cst_21 [1] : vector<32x32xf32> to vector<32xf32>
    %82 = vector.shape_cast %81 : vector<32xf32> to vector<32x1xf32>
    %83 = tpu.reciprocal %82 {approx = true} : vector<32x1xf32> -> vector<32x1xf32>
    %84 = arith.truncf %80 : vector<32x32xf32> to vector<32x32xbf16>
    %cst_22 = arith.constant dense<0.000000e+00> : vector<32x8xf32>
    %85 = tpu.matmul %84, %74, %cst_22 {dimension_numbers = #tpu.dot_dimension_numbers<[1], [0], [0], [1], [0, 0, 1, 1], [], []>} : vector<32x32xbf16>, vector<32x8xbf16>, vector<32x8xf32> -> vector<32x8xf32>
    %86 = vector.broadcast %83 : vector<32x1xf32> to vector<32x8xf32>
    %87 = arith.mulf %85, %86 : vector<32x8xf32>
    %88 = tpu.concatenate %30, %49, %68, %87 in 1 : vector<32x8xf32>, vector<32x8xf32>, vector<32x8xf32>, vector<32x8xf32> -> vector<32x32xf32>
    %89 = arith.truncf %88 : vector<32x32xf32> to vector<32x32xbf16>
    %c0_23 = arith.constant 0 : index
    %c0_24 = arith.constant 0 : index
    %c0_25 = arith.constant 0 : index
    %90 = vector.load %arg4[%c0_23, %c0_24, %c0_25] : memref<2x32x32xbf16, #tpu.memory_space<vmem>>, vector<1x32x32xbf16>
    %91 = vector.shape_cast %90 : vector<1x32x32xbf16> to vector<32x32xbf16>
    %cst_26 = arith.constant dense<0.000000e+00> : vector<32x32xf32>
    %92 = tpu.matmul %89, %91, %cst_26 {dimension_numbers = #tpu.dot_dimension_numbers<[1], [0], [0], [1], [0, 0, 1, 1], [], []>} : vector<32x32xbf16>, vector<32x32xbf16>, vector<32x32xf32> -> vector<32x32xf32>
    %c0_27 = arith.constant 0 : index
    %c0_28 = arith.constant 0 : index
    %c0_29 = arith.constant 0 : index
    %93 = vector.load %arg5[%c0_27, %c0_28, %c0_29] : memref<2x1x32xf32, #tpu.memory_space<vmem>>, vector<1x1x32xf32>
    %94 = vector.shape_cast %93 : vector<1x1x32xf32> to vector<1x32xf32>
    %95 = vector.broadcast %94 : vector<1x32xf32> to vector<32x32xf32>
    %96 = arith.addf %92, %95 : vector<32x32xf32>
    %97 = arith.addf %0, %96 : vector<32x32xf32>
    %cst_30 = arith.constant dense<0.000000e+00> : vector<32xf32>
    %98 = vector.multi_reduction <add>, %97, %cst_30 [1] : vector<32x32xf32> to vector<32xf32>
    %99 = vector.shape_cast %98 : vector<32xf32> to vector<32x1xf32>
    %cst_31 = arith.constant 3.200000e+01 : f32
    %100 = vector.broadcast %cst_31 : f32 to vector<32x1xf32>
    %101 = arith.divf %99, %100 : vector<32x1xf32>
    %102 = vector.broadcast %101 : vector<32x1xf32> to vector<32x32xf32>
    %103 = arith.subf %97, %102 : vector<32x32xf32>
    %104 = arith.mulf %103, %103 : vector<32x32xf32>
    %cst_32 = arith.constant dense<0.000000e+00> : vector<32xf32>
    %105 = vector.multi_reduction <add>, %104, %cst_32 [1] : vector<32x32xf32> to vector<32xf32>
    %106 = vector.shape_cast %105 : vector<32xf32> to vector<32x1xf32>
    %cst_33 = arith.constant 3.200000e+01 : f32
    %107 = vector.broadcast %cst_33 : f32 to vector<32x1xf32>
    %108 = arith.divf %106, %107 : vector<32x1xf32>
    %109 = vector.broadcast %101 : vector<32x1xf32> to vector<32x32xf32>
    %110 = arith.subf %97, %109 : vector<32x32xf32>
    %cst_34 = arith.constant 9.99999974E-6 : f32
    %111 = vector.broadcast %cst_34 : f32 to vector<32x1xf32>
    %112 = arith.addf %108, %111 : vector<32x1xf32>
    %113 = math.rsqrt %112 : vector<32x1xf32>
    %114 = vector.broadcast %113 : vector<32x1xf32> to vector<32x32xf32>
    %115 = arith.mulf %110, %114 : vector<32x32xf32>
    %c0_35 = arith.constant 0 : index
    %c0_36 = arith.constant 0 : index
    %c0_37 = arith.constant 0 : index
    %116 = vector.load %arg10[%c0_35, %c0_36, %c0_37] : memref<2x1x32xf32, #tpu.memory_space<vmem>>, vector<1x1x32xf32>
    %117 = vector.shape_cast %116 : vector<1x1x32xf32> to vector<1x32xf32>
    %118 = vector.broadcast %117 : vector<1x32xf32> to vector<32x32xf32>
    %119 = arith.mulf %115, %118 : vector<32x32xf32>
    %c0_38 = arith.constant 0 : index
    %c0_39 = arith.constant 0 : index
    %c0_40 = arith.constant 0 : index
    %120 = vector.load %arg11[%c0_38, %c0_39, %c0_40] : memref<2x1x32xf32, #tpu.memory_space<vmem>>, vector<1x1x32xf32>
    %121 = vector.shape_cast %120 : vector<1x1x32xf32> to vector<1x32xf32>
    %122 = vector.broadcast %121 : vector<1x32xf32> to vector<32x32xf32>
    %123 = arith.addf %119, %122 : vector<32x32xf32>
    %124 = arith.truncf %123 : vector<32x32xf32> to vector<32x32xbf16>
    %c0_41 = arith.constant 0 : index
    %c0_42 = arith.constant 0 : index
    %c0_43 = arith.constant 0 : index
    %125 = vector.load %arg6[%c0_41, %c0_42, %c0_43] : memref<2x32x2048xbf16, #tpu.memory_space<vmem>>, vector<1x32x512xbf16>
    %126 = vector.shape_cast %125 : vector<1x32x512xbf16> to vector<32x512xbf16>
    %cst_44 = arith.constant dense<0.000000e+00> : vector<32x512xf32>
    %127 = tpu.matmul %124, %126, %cst_44 {dimension_numbers = #tpu.dot_dimension_numbers<[1], [0], [0], [1], [0, 0, 1, 1], [], []>} : vector<32x32xbf16>, vector<32x512xbf16>, vector<32x512xf32> -> vector<32x512xf32>
    %c0_45 = arith.constant 0 : index
    %c0_46 = arith.constant 0 : index
    %c0_47 = arith.constant 0 : index
    %128 = vector.load %arg7[%c0_45, %c0_46, %c0_47] : memref<2x1x2048xf32, #tpu.memory_space<vmem>>, vector<1x1x512xf32>
    %129 = vector.shape_cast %128 : vector<1x1x512xf32> to vector<1x512xf32>
    %130 = vector.broadcast %129 : vector<1x512xf32> to vector<32x512xf32>
    %131 = arith.addf %127, %130 : vector<32x512xf32>
    %cst_48 = arith.constant 0.000000e+00 : f32
    %132 = vector.broadcast %cst_48 : f32 to vector<32x512xf32>
    %133 = arith.maximumf %131, %132 : vector<32x512xf32>
    %134 = arith.truncf %133 : vector<32x512xf32> to vector<32x512xbf16>
    %c0_49 = arith.constant 0 : index
    %c0_50 = arith.constant 0 : index
    %c0_51 = arith.constant 0 : index
    %135 = vector.load %arg8[%c0_49, %c0_50, %c0_51] : memref<2x32x2048xbf16, #tpu.memory_space<vmem>>, vector<1x32x512xbf16>
    %136 = vector.shape_cast %135 : vector<1x32x512xbf16> to vector<32x512xbf16>
    %cst_52 = arith.constant dense<0.000000e+00> : vector<32x32xf32>
    %137 = tpu.matmul %134, %136, %cst_52 {dimension_numbers = #tpu.dot_dimension_numbers<[1], [1], [0], [0], [0, 0, 1, 0], [], []>} : vector<32x512xbf16>, vector<32x512xbf16>, vector<32x32xf32> -> vector<32x32xf32>
    %c0_53 = arith.constant 0 : index
    %c0_54 = arith.constant 0 : index
    %c512 = arith.constant 512 : index
    %138 = vector.load %arg6[%c0_53, %c0_54, %c512] : memref<2x32x2048xbf16, #tpu.memory_space<vmem>>, vector<1x32x512xbf16>
    %139 = vector.shape_cast %138 : vector<1x32x512xbf16> to vector<32x512xbf16>
    %cst_55 = arith.constant dense<0.000000e+00> : vector<32x512xf32>
    %140 = tpu.matmul %124, %139, %cst_55 {dimension_numbers = #tpu.dot_dimension_numbers<[1], [0], [0], [1], [0, 0, 1, 1], [], []>} : vector<32x32xbf16>, vector<32x512xbf16>, vector<32x512xf32> -> vector<32x512xf32>
    %c0_56 = arith.constant 0 : index
    %c0_57 = arith.constant 0 : index
    %c512_58 = arith.constant 512 : index
    %141 = vector.load %arg7[%c0_56, %c0_57, %c512_58] : memref<2x1x2048xf32, #tpu.memory_space<vmem>>, vector<1x1x512xf32>
    %142 = vector.shape_cast %141 : vector<1x1x512xf32> to vector<1x512xf32>
    %143 = vector.broadcast %142 : vector<1x512xf32> to vector<32x512xf32>
    %144 = arith.addf %140, %143 : vector<32x512xf32>
    %cst_59 = arith.constant 0.000000e+00 : f32
    %145 = vector.broadcast %cst_59 : f32 to vector<32x512xf32>
    %146 = arith.maximumf %144, %145 : vector<32x512xf32>
    %147 = arith.truncf %146 : vector<32x512xf32> to vector<32x512xbf16>
    %c0_60 = arith.constant 0 : index
    %c0_61 = arith.constant 0 : index
    %c512_62 = arith.constant 512 : index
    %148 = vector.load %arg8[%c0_60, %c0_61, %c512_62] : memref<2x32x2048xbf16, #tpu.memory_space<vmem>>, vector<1x32x512xbf16>
    %149 = vector.shape_cast %148 : vector<1x32x512xbf16> to vector<32x512xbf16>
    %cst_63 = arith.constant dense<0.000000e+00> : vector<32x32xf32>
    %150 = tpu.matmul %147, %149, %cst_63 {dimension_numbers = #tpu.dot_dimension_numbers<[1], [1], [0], [0], [0, 0, 1, 0], [], []>} : vector<32x512xbf16>, vector<32x512xbf16>, vector<32x32xf32> -> vector<32x32xf32>
    %151 = arith.addf %137, %150 : vector<32x32xf32>
    %c0_64 = arith.constant 0 : index
    %c0_65 = arith.constant 0 : index
    %c1024 = arith.constant 1024 : index
    %152 = vector.load %arg6[%c0_64, %c0_65, %c1024] : memref<2x32x2048xbf16, #tpu.memory_space<vmem>>, vector<1x32x512xbf16>
    %153 = vector.shape_cast %152 : vector<1x32x512xbf16> to vector<32x512xbf16>
    %cst_66 = arith.constant dense<0.000000e+00> : vector<32x512xf32>
    %154 = tpu.matmul %124, %153, %cst_66 {dimension_numbers = #tpu.dot_dimension_numbers<[1], [0], [0], [1], [0, 0, 1, 1], [], []>} : vector<32x32xbf16>, vector<32x512xbf16>, vector<32x512xf32> -> vector<32x512xf32>
    %c0_67 = arith.constant 0 : index
    %c0_68 = arith.constant 0 : index
    %c1024_69 = arith.constant 1024 : index
    %155 = vector.load %arg7[%c0_67, %c0_68, %c1024_69] : memref<2x1x2048xf32, #tpu.memory_space<vmem>>, vector<1x1x512xf32>
    %156 = vector.shape_cast %155 : vector<1x1x512xf32> to vector<1x512xf32>
    %157 = vector.broadcast %156 : vector<1x512xf32> to vector<32x512xf32>
    %158 = arith.addf %154, %157 : vector<32x512xf32>
    %cst_70 = arith.constant 0.000000e+00 : f32
    %159 = vector.broadcast %cst_70 : f32 to vector<32x512xf32>
    %160 = arith.maximumf %158, %159 : vector<32x512xf32>
    %161 = arith.truncf %160 : vector<32x512xf32> to vector<32x512xbf16>
    %c0_71 = arith.constant 0 : index
    %c0_72 = arith.constant 0 : index
    %c1024_73 = arith.constant 1024 : index
    %162 = vector.load %arg8[%c0_71, %c0_72, %c1024_73] : memref<2x32x2048xbf16, #tpu.memory_space<vmem>>, vector<1x32x512xbf16>
    %163 = vector.shape_cast %162 : vector<1x32x512xbf16> to vector<32x512xbf16>
    %cst_74 = arith.constant dense<0.000000e+00> : vector<32x32xf32>
    %164 = tpu.matmul %161, %163, %cst_74 {dimension_numbers = #tpu.dot_dimension_numbers<[1], [1], [0], [0], [0, 0, 1, 0], [], []>} : vector<32x512xbf16>, vector<32x512xbf16>, vector<32x32xf32> -> vector<32x32xf32>
    %165 = arith.addf %151, %164 : vector<32x32xf32>
    %c0_75 = arith.constant 0 : index
    %c0_76 = arith.constant 0 : index
    %c1536 = arith.constant 1536 : index
    %166 = vector.load %arg6[%c0_75, %c0_76, %c1536] : memref<2x32x2048xbf16, #tpu.memory_space<vmem>>, vector<1x32x512xbf16>
    %167 = vector.shape_cast %166 : vector<1x32x512xbf16> to vector<32x512xbf16>
    %cst_77 = arith.constant dense<0.000000e+00> : vector<32x512xf32>
    %168 = tpu.matmul %124, %167, %cst_77 {dimension_numbers = #tpu.dot_dimension_numbers<[1], [0], [0], [1], [0, 0, 1, 1], [], []>} : vector<32x32xbf16>, vector<32x512xbf16>, vector<32x512xf32> -> vector<32x512xf32>
    %c0_78 = arith.constant 0 : index
    %c0_79 = arith.constant 0 : index
    %c1536_80 = arith.constant 1536 : index
    %169 = vector.load %arg7[%c0_78, %c0_79, %c1536_80] : memref<2x1x2048xf32, #tpu.memory_space<vmem>>, vector<1x1x512xf32>
    %170 = vector.shape_cast %169 : vector<1x1x512xf32> to vector<1x512xf32>
    %171 = vector.broadcast %170 : vector<1x512xf32> to vector<32x512xf32>
    %172 = arith.addf %168, %171 : vector<32x512xf32>
    %cst_81 = arith.constant 0.000000e+00 : f32
    %173 = vector.broadcast %cst_81 : f32 to vector<32x512xf32>
    %174 = arith.maximumf %172, %173 : vector<32x512xf32>
    %175 = arith.truncf %174 : vector<32x512xf32> to vector<32x512xbf16>
    %c0_82 = arith.constant 0 : index
    %c0_83 = arith.constant 0 : index
    %c1536_84 = arith.constant 1536 : index
    %176 = vector.load %arg8[%c0_82, %c0_83, %c1536_84] : memref<2x32x2048xbf16, #tpu.memory_space<vmem>>, vector<1x32x512xbf16>
    %177 = vector.shape_cast %176 : vector<1x32x512xbf16> to vector<32x512xbf16>
    %cst_85 = arith.constant dense<0.000000e+00> : vector<32x32xf32>
    %178 = tpu.matmul %175, %177, %cst_85 {dimension_numbers = #tpu.dot_dimension_numbers<[1], [1], [0], [0], [0, 0, 1, 0], [], []>} : vector<32x512xbf16>, vector<32x512xbf16>, vector<32x32xf32> -> vector<32x32xf32>
    %179 = arith.addf %165, %178 : vector<32x32xf32>
    %c0_86 = arith.constant 0 : index
    %c0_87 = arith.constant 0 : index
    %c0_88 = arith.constant 0 : index
    %180 = vector.load %arg9[%c0_86, %c0_87, %c0_88] : memref<2x1x32xf32, #tpu.memory_space<vmem>>, vector<1x1x32xf32>
    %181 = vector.shape_cast %180 : vector<1x1x32xf32> to vector<1x32xf32>
    %182 = vector.broadcast %181 : vector<1x32xf32> to vector<32x32xf32>
    %183 = arith.addf %179, %182 : vector<32x32xf32>
    %184 = arith.addf %123, %183 : vector<32x32xf32>
    %cst_89 = arith.constant dense<0.000000e+00> : vector<32xf32>
    %185 = vector.multi_reduction <add>, %184, %cst_89 [1] : vector<32x32xf32> to vector<32xf32>
    %186 = vector.shape_cast %185 : vector<32xf32> to vector<32x1xf32>
    %cst_90 = arith.constant 3.200000e+01 : f32
    %187 = vector.broadcast %cst_90 : f32 to vector<32x1xf32>
    %188 = arith.divf %186, %187 : vector<32x1xf32>
    %189 = vector.broadcast %188 : vector<32x1xf32> to vector<32x32xf32>
    %190 = arith.subf %184, %189 : vector<32x32xf32>
    %191 = arith.mulf %190, %190 : vector<32x32xf32>
    %cst_91 = arith.constant dense<0.000000e+00> : vector<32xf32>
    %192 = vector.multi_reduction <add>, %191, %cst_91 [1] : vector<32x32xf32> to vector<32xf32>
    %193 = vector.shape_cast %192 : vector<32xf32> to vector<32x1xf32>
    %cst_92 = arith.constant 3.200000e+01 : f32
    %194 = vector.broadcast %cst_92 : f32 to vector<32x1xf32>
    %195 = arith.divf %193, %194 : vector<32x1xf32>
    %196 = vector.broadcast %188 : vector<32x1xf32> to vector<32x32xf32>
    %197 = arith.subf %184, %196 : vector<32x32xf32>
    %cst_93 = arith.constant 9.99999974E-6 : f32
    %198 = vector.broadcast %cst_93 : f32 to vector<32x1xf32>
    %199 = arith.addf %195, %198 : vector<32x1xf32>
    %200 = math.rsqrt %199 : vector<32x1xf32>
    %201 = vector.broadcast %200 : vector<32x1xf32> to vector<32x32xf32>
    %202 = arith.mulf %197, %201 : vector<32x32xf32>
    %c0_94 = arith.constant 0 : index
    %c0_95 = arith.constant 0 : index
    %c0_96 = arith.constant 0 : index
    %203 = vector.load %arg12[%c0_94, %c0_95, %c0_96] : memref<2x1x32xf32, #tpu.memory_space<vmem>>, vector<1x1x32xf32>
    %204 = vector.shape_cast %203 : vector<1x1x32xf32> to vector<1x32xf32>
    %205 = vector.broadcast %204 : vector<1x32xf32> to vector<32x32xf32>
    %206 = arith.mulf %202, %205 : vector<32x32xf32>
    %c0_97 = arith.constant 0 : index
    %c0_98 = arith.constant 0 : index
    %c0_99 = arith.constant 0 : index
    %207 = vector.load %arg13[%c0_97, %c0_98, %c0_99] : memref<2x1x32xf32, #tpu.memory_space<vmem>>, vector<1x1x32xf32>
    %208 = vector.shape_cast %207 : vector<1x1x32xf32> to vector<1x32xf32>
    %209 = vector.broadcast %208 : vector<1x32xf32> to vector<32x32xf32>
    %210 = arith.addf %206, %209 : vector<32x32xf32>
    %211 = arith.truncf %210 : vector<32x32xf32> to vector<32x32xbf16>
    %c1 = arith.constant 1 : index
    %c0_100 = arith.constant 0 : index
    %c0_101 = arith.constant 0 : index
    %212 = vector.load %arg2[%c1, %c0_100, %c0_101] : memref<2x32x96xbf16, #tpu.memory_space<vmem>>, vector<1x32x96xbf16>
    %213 = vector.shape_cast %212 : vector<1x32x96xbf16> to vector<32x96xbf16>
    %cst_102 = arith.constant dense<0.000000e+00> : vector<32x96xf32>
    %214 = tpu.matmul %211, %213, %cst_102 {dimension_numbers = #tpu.dot_dimension_numbers<[1], [0], [0], [1], [0, 0, 1, 1], [], []>} : vector<32x32xbf16>, vector<32x96xbf16>, vector<32x96xf32> -> vector<32x96xf32>
    %c1_103 = arith.constant 1 : index
    %c0_104 = arith.constant 0 : index
    %c0_105 = arith.constant 0 : index
    %215 = vector.load %arg3[%c1_103, %c0_104, %c0_105] : memref<2x1x96xf32, #tpu.memory_space<vmem>>, vector<1x1x96xf32>
    %216 = vector.shape_cast %215 : vector<1x1x96xf32> to vector<1x96xf32>
    %217 = vector.broadcast %216 : vector<1x96xf32> to vector<32x96xf32>
    %218 = arith.addf %214, %217 : vector<32x96xf32>
    %219 = vector.extract_strided_slice %218 {offsets = [0, 0], sizes = [32, 32], strides = [1, 1]} : vector<32x96xf32> to vector<32x32xf32>
    %220 = vector.extract_strided_slice %218 {offsets = [0, 32], sizes = [32, 32], strides = [1, 1]} : vector<32x96xf32> to vector<32x32xf32>
    %221 = vector.extract_strided_slice %218 {offsets = [0, 64], sizes = [32, 32], strides = [1, 1]} : vector<32x96xf32> to vector<32x32xf32>
    %222 = vector.extract_strided_slice %219 {offsets = [0, 0], sizes = [32, 8], strides = [1, 1]} : vector<32x32xf32> to vector<32x8xf32>
    %223 = arith.truncf %222 : vector<32x8xf32> to vector<32x8xbf16>
    %224 = vector.extract_strided_slice %220 {offsets = [0, 0], sizes = [32, 8], strides = [1, 1]} : vector<32x32xf32> to vector<32x8xf32>
    %225 = arith.truncf %224 : vector<32x8xf32> to vector<32x8xbf16>
    %226 = vector.extract_strided_slice %221 {offsets = [0, 0], sizes = [32, 8], strides = [1, 1]} : vector<32x32xf32> to vector<32x8xf32>
    %227 = arith.truncf %226 : vector<32x8xf32> to vector<32x8xbf16>
    %cst_106 = arith.constant dense<0.000000e+00> : vector<32x32xf32>
    %228 = tpu.matmul %223, %225, %cst_106 {dimension_numbers = #tpu.dot_dimension_numbers<[1], [1], [0], [0], [0, 0, 1, 0], [], []>} : vector<32x8xbf16>, vector<32x8xbf16>, vector<32x32xf32> -> vector<32x32xf32>
    %cst_107 = arith.constant dense<0xFF800000> : vector<32xf32>
    %229 = vector.multi_reduction <maximumf>, %228, %cst_107 [1] : vector<32x32xf32> to vector<32xf32>
    %230 = vector.shape_cast %229 : vector<32xf32> to vector<32x1xf32>
    %231 = vector.broadcast %230 : vector<32x1xf32> to vector<32x32xf32>
    %232 = arith.subf %228, %231 : vector<32x32xf32>
    %233 = math.exp %232 : vector<32x32xf32>
    %cst_108 = arith.constant dense<0.000000e+00> : vector<32xf32>
    %234 = vector.multi_reduction <add>, %233, %cst_108 [1] : vector<32x32xf32> to vector<32xf32>
    %235 = vector.shape_cast %234 : vector<32xf32> to vector<32x1xf32>
    %236 = tpu.reciprocal %235 {approx = true} : vector<32x1xf32> -> vector<32x1xf32>
    %237 = arith.truncf %233 : vector<32x32xf32> to vector<32x32xbf16>
    %cst_109 = arith.constant dense<0.000000e+00> : vector<32x8xf32>
    %238 = tpu.matmul %237, %227, %cst_109 {dimension_numbers = #tpu.dot_dimension_numbers<[1], [0], [0], [1], [0, 0, 1, 1], [], []>} : vector<32x32xbf16>, vector<32x8xbf16>, vector<32x8xf32> -> vector<32x8xf32>
    %239 = vector.broadcast %236 : vector<32x1xf32> to vector<32x8xf32>
    %240 = arith.mulf %238, %239 : vector<32x8xf32>
    %241 = vector.extract_strided_slice %219 {offsets = [0, 8], sizes = [32, 8], strides = [1, 1]} : vector<32x32xf32> to vector<32x8xf32>
    %242 = arith.truncf %241 : vector<32x8xf32> to vector<32x8xbf16>
    %243 = vector.extract_strided_slice %220 {offsets = [0, 8], sizes = [32, 8], strides = [1, 1]} : vector<32x32xf32> to vector<32x8xf32>
    %244 = arith.truncf %243 : vector<32x8xf32> to vector<32x8xbf16>
    %245 = vector.extract_strided_slice %221 {offsets = [0, 8], sizes = [32, 8], strides = [1, 1]} : vector<32x32xf32> to vector<32x8xf32>
    %246 = arith.truncf %245 : vector<32x8xf32> to vector<32x8xbf16>
    %cst_110 = arith.constant dense<0.000000e+00> : vector<32x32xf32>
    %247 = tpu.matmul %242, %244, %cst_110 {dimension_numbers = #tpu.dot_dimension_numbers<[1], [1], [0], [0], [0, 0, 1, 0], [], []>} : vector<32x8xbf16>, vector<32x8xbf16>, vector<32x32xf32> -> vector<32x32xf32>
    %cst_111 = arith.constant dense<0xFF800000> : vector<32xf32>
    %248 = vector.multi_reduction <maximumf>, %247, %cst_111 [1] : vector<32x32xf32> to vector<32xf32>
    %249 = vector.shape_cast %248 : vector<32xf32> to vector<32x1xf32>
    %250 = vector.broadcast %249 : vector<32x1xf32> to vector<32x32xf32>
    %251 = arith.subf %247, %250 : vector<32x32xf32>
    %252 = math.exp %251 : vector<32x32xf32>
    %cst_112 = arith.constant dense<0.000000e+00> : vector<32xf32>
    %253 = vector.multi_reduction <add>, %252, %cst_112 [1] : vector<32x32xf32> to vector<32xf32>
    %254 = vector.shape_cast %253 : vector<32xf32> to vector<32x1xf32>
    %255 = tpu.reciprocal %254 {approx = true} : vector<32x1xf32> -> vector<32x1xf32>
    %256 = arith.truncf %252 : vector<32x32xf32> to vector<32x32xbf16>
    %cst_113 = arith.constant dense<0.000000e+00> : vector<32x8xf32>
    %257 = tpu.matmul %256, %246, %cst_113 {dimension_numbers = #tpu.dot_dimension_numbers<[1], [0], [0], [1], [0, 0, 1, 1], [], []>} : vector<32x32xbf16>, vector<32x8xbf16>, vector<32x8xf32> -> vector<32x8xf32>
    %258 = vector.broadcast %255 : vector<32x1xf32> to vector<32x8xf32>
    %259 = arith.mulf %257, %258 : vector<32x8xf32>
    %260 = vector.extract_strided_slice %219 {offsets = [0, 16], sizes = [32, 8], strides = [1, 1]} : vector<32x32xf32> to vector<32x8xf32>
    %261 = arith.truncf %260 : vector<32x8xf32> to vector<32x8xbf16>
    %262 = vector.extract_strided_slice %220 {offsets = [0, 16], sizes = [32, 8], strides = [1, 1]} : vector<32x32xf32> to vector<32x8xf32>
    %263 = arith.truncf %262 : vector<32x8xf32> to vector<32x8xbf16>
    %264 = vector.extract_strided_slice %221 {offsets = [0, 16], sizes = [32, 8], strides = [1, 1]} : vector<32x32xf32> to vector<32x8xf32>
    %265 = arith.truncf %264 : vector<32x8xf32> to vector<32x8xbf16>
    %cst_114 = arith.constant dense<0.000000e+00> : vector<32x32xf32>
    %266 = tpu.matmul %261, %263, %cst_114 {dimension_numbers = #tpu.dot_dimension_numbers<[1], [1], [0], [0], [0, 0, 1, 0], [], []>} : vector<32x8xbf16>, vector<32x8xbf16>, vector<32x32xf32> -> vector<32x32xf32>
    %cst_115 = arith.constant dense<0xFF800000> : vector<32xf32>
    %267 = vector.multi_reduction <maximumf>, %266, %cst_115 [1] : vector<32x32xf32> to vector<32xf32>
    %268 = vector.shape_cast %267 : vector<32xf32> to vector<32x1xf32>
    %269 = vector.broadcast %268 : vector<32x1xf32> to vector<32x32xf32>
    %270 = arith.subf %266, %269 : vector<32x32xf32>
    %271 = math.exp %270 : vector<32x32xf32>
    %cst_116 = arith.constant dense<0.000000e+00> : vector<32xf32>
    %272 = vector.multi_reduction <add>, %271, %cst_116 [1] : vector<32x32xf32> to vector<32xf32>
    %273 = vector.shape_cast %272 : vector<32xf32> to vector<32x1xf32>
    %274 = tpu.reciprocal %273 {approx = true} : vector<32x1xf32> -> vector<32x1xf32>
    %275 = arith.truncf %271 : vector<32x32xf32> to vector<32x32xbf16>
    %cst_117 = arith.constant dense<0.000000e+00> : vector<32x8xf32>
    %276 = tpu.matmul %275, %265, %cst_117 {dimension_numbers = #tpu.dot_dimension_numbers<[1], [0], [0], [1], [0, 0, 1, 1], [], []>} : vector<32x32xbf16>, vector<32x8xbf16>, vector<32x8xf32> -> vector<32x8xf32>
    %277 = vector.broadcast %274 : vector<32x1xf32> to vector<32x8xf32>
    %278 = arith.mulf %276, %277 : vector<32x8xf32>
    %279 = vector.extract_strided_slice %219 {offsets = [0, 24], sizes = [32, 8], strides = [1, 1]} : vector<32x32xf32> to vector<32x8xf32>
    %280 = arith.truncf %279 : vector<32x8xf32> to vector<32x8xbf16>
    %281 = vector.extract_strided_slice %220 {offsets = [0, 24], sizes = [32, 8], strides = [1, 1]} : vector<32x32xf32> to vector<32x8xf32>
    %282 = arith.truncf %281 : vector<32x8xf32> to vector<32x8xbf16>
    %283 = vector.extract_strided_slice %221 {offsets = [0, 24], sizes = [32, 8], strides = [1, 1]} : vector<32x32xf32> to vector<32x8xf32>
    %284 = arith.truncf %283 : vector<32x8xf32> to vector<32x8xbf16>
    %cst_118 = arith.constant dense<0.000000e+00> : vector<32x32xf32>
    %285 = tpu.matmul %280, %282, %cst_118 {dimension_numbers = #tpu.dot_dimension_numbers<[1], [1], [0], [0], [0, 0, 1, 0], [], []>} : vector<32x8xbf16>, vector<32x8xbf16>, vector<32x32xf32> -> vector<32x32xf32>
    %cst_119 = arith.constant dense<0xFF800000> : vector<32xf32>
    %286 = vector.multi_reduction <maximumf>, %285, %cst_119 [1] : vector<32x32xf32> to vector<32xf32>
    %287 = vector.shape_cast %286 : vector<32xf32> to vector<32x1xf32>
    %288 = vector.broadcast %287 : vector<32x1xf32> to vector<32x32xf32>
    %289 = arith.subf %285, %288 : vector<32x32xf32>
    %290 = math.exp %289 : vector<32x32xf32>
    %cst_120 = arith.constant dense<0.000000e+00> : vector<32xf32>
    %291 = vector.multi_reduction <add>, %290, %cst_120 [1] : vector<32x32xf32> to vector<32xf32>
    %292 = vector.shape_cast %291 : vector<32xf32> to vector<32x1xf32>
    %293 = tpu.reciprocal %292 {approx = true} : vector<32x1xf32> -> vector<32x1xf32>
    %294 = arith.truncf %290 : vector<32x32xf32> to vector<32x32xbf16>
    %cst_121 = arith.constant dense<0.000000e+00> : vector<32x8xf32>
    %295 = tpu.matmul %294, %284, %cst_121 {dimension_numbers = #tpu.dot_dimension_numbers<[1], [0], [0], [1], [0, 0, 1, 1], [], []>} : vector<32x32xbf16>, vector<32x8xbf16>, vector<32x8xf32> -> vector<32x8xf32>
    %296 = vector.broadcast %293 : vector<32x1xf32> to vector<32x8xf32>
    %297 = arith.mulf %295, %296 : vector<32x8xf32>
    %298 = tpu.concatenate %240, %259, %278, %297 in 1 : vector<32x8xf32>, vector<32x8xf32>, vector<32x8xf32>, vector<32x8xf32> -> vector<32x32xf32>
    %299 = arith.truncf %298 : vector<32x32xf32> to vector<32x32xbf16>
    %c1_122 = arith.constant 1 : index
    %c0_123 = arith.constant 0 : index
    %c0_124 = arith.constant 0 : index
    %300 = vector.load %arg4[%c1_122, %c0_123, %c0_124] : memref<2x32x32xbf16, #tpu.memory_space<vmem>>, vector<1x32x32xbf16>
    %301 = vector.shape_cast %300 : vector<1x32x32xbf16> to vector<32x32xbf16>
    %cst_125 = arith.constant dense<0.000000e+00> : vector<32x32xf32>
    %302 = tpu.matmul %299, %301, %cst_125 {dimension_numbers = #tpu.dot_dimension_numbers<[1], [0], [0], [1], [0, 0, 1, 1], [], []>} : vector<32x32xbf16>, vector<32x32xbf16>, vector<32x32xf32> -> vector<32x32xf32>
    %c1_126 = arith.constant 1 : index
    %c0_127 = arith.constant 0 : index
    %c0_128 = arith.constant 0 : index
    %303 = vector.load %arg5[%c1_126, %c0_127, %c0_128] : memref<2x1x32xf32, #tpu.memory_space<vmem>>, vector<1x1x32xf32>
    %304 = vector.shape_cast %303 : vector<1x1x32xf32> to vector<1x32xf32>
    %305 = vector.broadcast %304 : vector<1x32xf32> to vector<32x32xf32>
    %306 = arith.addf %302, %305 : vector<32x32xf32>
    %307 = arith.addf %210, %306 : vector<32x32xf32>
    %cst_129 = arith.constant dense<0.000000e+00> : vector<32xf32>
    %308 = vector.multi_reduction <add>, %307, %cst_129 [1] : vector<32x32xf32> to vector<32xf32>
    %309 = vector.shape_cast %308 : vector<32xf32> to vector<32x1xf32>
    %cst_130 = arith.constant 3.200000e+01 : f32
    %310 = vector.broadcast %cst_130 : f32 to vector<32x1xf32>
    %311 = arith.divf %309, %310 : vector<32x1xf32>
    %312 = vector.broadcast %311 : vector<32x1xf32> to vector<32x32xf32>
    %313 = arith.subf %307, %312 : vector<32x32xf32>
    %314 = arith.mulf %313, %313 : vector<32x32xf32>
    %cst_131 = arith.constant dense<0.000000e+00> : vector<32xf32>
    %315 = vector.multi_reduction <add>, %314, %cst_131 [1] : vector<32x32xf32> to vector<32xf32>
    %316 = vector.shape_cast %315 : vector<32xf32> to vector<32x1xf32>
    %cst_132 = arith.constant 3.200000e+01 : f32
    %317 = vector.broadcast %cst_132 : f32 to vector<32x1xf32>
    %318 = arith.divf %316, %317 : vector<32x1xf32>
    %319 = vector.broadcast %311 : vector<32x1xf32> to vector<32x32xf32>
    %320 = arith.subf %307, %319 : vector<32x32xf32>
    %cst_133 = arith.constant 9.99999974E-6 : f32
    %321 = vector.broadcast %cst_133 : f32 to vector<32x1xf32>
    %322 = arith.addf %318, %321 : vector<32x1xf32>
    %323 = math.rsqrt %322 : vector<32x1xf32>
    %324 = vector.broadcast %323 : vector<32x1xf32> to vector<32x32xf32>
    %325 = arith.mulf %320, %324 : vector<32x32xf32>
    %c1_134 = arith.constant 1 : index
    %c0_135 = arith.constant 0 : index
    %c0_136 = arith.constant 0 : index
    %326 = vector.load %arg10[%c1_134, %c0_135, %c0_136] : memref<2x1x32xf32, #tpu.memory_space<vmem>>, vector<1x1x32xf32>
    %327 = vector.shape_cast %326 : vector<1x1x32xf32> to vector<1x32xf32>
    %328 = vector.broadcast %327 : vector<1x32xf32> to vector<32x32xf32>
    %329 = arith.mulf %325, %328 : vector<32x32xf32>
    %c1_137 = arith.constant 1 : index
    %c0_138 = arith.constant 0 : index
    %c0_139 = arith.constant 0 : index
    %330 = vector.load %arg11[%c1_137, %c0_138, %c0_139] : memref<2x1x32xf32, #tpu.memory_space<vmem>>, vector<1x1x32xf32>
    %331 = vector.shape_cast %330 : vector<1x1x32xf32> to vector<1x32xf32>
    %332 = vector.broadcast %331 : vector<1x32xf32> to vector<32x32xf32>
    %333 = arith.addf %329, %332 : vector<32x32xf32>
    %334 = arith.truncf %333 : vector<32x32xf32> to vector<32x32xbf16>
    %c1_140 = arith.constant 1 : index
    %c0_141 = arith.constant 0 : index
    %c0_142 = arith.constant 0 : index
    %335 = vector.load %arg6[%c1_140, %c0_141, %c0_142] : memref<2x32x2048xbf16, #tpu.memory_space<vmem>>, vector<1x32x512xbf16>
    %336 = vector.shape_cast %335 : vector<1x32x512xbf16> to vector<32x512xbf16>
    %cst_143 = arith.constant dense<0.000000e+00> : vector<32x512xf32>
    %337 = tpu.matmul %334, %336, %cst_143 {dimension_numbers = #tpu.dot_dimension_numbers<[1], [0], [0], [1], [0, 0, 1, 1], [], []>} : vector<32x32xbf16>, vector<32x512xbf16>, vector<32x512xf32> -> vector<32x512xf32>
    %c1_144 = arith.constant 1 : index
    %c0_145 = arith.constant 0 : index
    %c0_146 = arith.constant 0 : index
    %338 = vector.load %arg7[%c1_144, %c0_145, %c0_146] : memref<2x1x2048xf32, #tpu.memory_space<vmem>>, vector<1x1x512xf32>
    %339 = vector.shape_cast %338 : vector<1x1x512xf32> to vector<1x512xf32>
    %340 = vector.broadcast %339 : vector<1x512xf32> to vector<32x512xf32>
    %341 = arith.addf %337, %340 : vector<32x512xf32>
    %cst_147 = arith.constant 0.000000e+00 : f32
    %342 = vector.broadcast %cst_147 : f32 to vector<32x512xf32>
    %343 = arith.maximumf %341, %342 : vector<32x512xf32>
    %344 = arith.truncf %343 : vector<32x512xf32> to vector<32x512xbf16>
    %c1_148 = arith.constant 1 : index
    %c0_149 = arith.constant 0 : index
    %c0_150 = arith.constant 0 : index
    %345 = vector.load %arg8[%c1_148, %c0_149, %c0_150] : memref<2x32x2048xbf16, #tpu.memory_space<vmem>>, vector<1x32x512xbf16>
    %346 = vector.shape_cast %345 : vector<1x32x512xbf16> to vector<32x512xbf16>
    %cst_151 = arith.constant dense<0.000000e+00> : vector<32x32xf32>
    %347 = tpu.matmul %344, %346, %cst_151 {dimension_numbers = #tpu.dot_dimension_numbers<[1], [1], [0], [0], [0, 0, 1, 0], [], []>} : vector<32x512xbf16>, vector<32x512xbf16>, vector<32x32xf32> -> vector<32x32xf32>
    %c1_152 = arith.constant 1 : index
    %c0_153 = arith.constant 0 : index
    %c512_154 = arith.constant 512 : index
    %348 = vector.load %arg6[%c1_152, %c0_153, %c512_154] : memref<2x32x2048xbf16, #tpu.memory_space<vmem>>, vector<1x32x512xbf16>
    %349 = vector.shape_cast %348 : vector<1x32x512xbf16> to vector<32x512xbf16>
    %cst_155 = arith.constant dense<0.000000e+00> : vector<32x512xf32>
    %350 = tpu.matmul %334, %349, %cst_155 {dimension_numbers = #tpu.dot_dimension_numbers<[1], [0], [0], [1], [0, 0, 1, 1], [], []>} : vector<32x32xbf16>, vector<32x512xbf16>, vector<32x512xf32> -> vector<32x512xf32>
    %c1_156 = arith.constant 1 : index
    %c0_157 = arith.constant 0 : index
    %c512_158 = arith.constant 512 : index
    %351 = vector.load %arg7[%c1_156, %c0_157, %c512_158] : memref<2x1x2048xf32, #tpu.memory_space<vmem>>, vector<1x1x512xf32>
    %352 = vector.shape_cast %351 : vector<1x1x512xf32> to vector<1x512xf32>
    %353 = vector.broadcast %352 : vector<1x512xf32> to vector<32x512xf32>
    %354 = arith.addf %350, %353 : vector<32x512xf32>
    %cst_159 = arith.constant 0.000000e+00 : f32
    %355 = vector.broadcast %cst_159 : f32 to vector<32x512xf32>
    %356 = arith.maximumf %354, %355 : vector<32x512xf32>
    %357 = arith.truncf %356 : vector<32x512xf32> to vector<32x512xbf16>
    %c1_160 = arith.constant 1 : index
    %c0_161 = arith.constant 0 : index
    %c512_162 = arith.constant 512 : index
    %358 = vector.load %arg8[%c1_160, %c0_161, %c512_162] : memref<2x32x2048xbf16, #tpu.memory_space<vmem>>, vector<1x32x512xbf16>
    %359 = vector.shape_cast %358 : vector<1x32x512xbf16> to vector<32x512xbf16>
    %cst_163 = arith.constant dense<0.000000e+00> : vector<32x32xf32>
    %360 = tpu.matmul %357, %359, %cst_163 {dimension_numbers = #tpu.dot_dimension_numbers<[1], [1], [0], [0], [0, 0, 1, 0], [], []>} : vector<32x512xbf16>, vector<32x512xbf16>, vector<32x32xf32> -> vector<32x32xf32>
    %361 = arith.addf %347, %360 : vector<32x32xf32>
    %c1_164 = arith.constant 1 : index
    %c0_165 = arith.constant 0 : index
    %c1024_166 = arith.constant 1024 : index
    %362 = vector.load %arg6[%c1_164, %c0_165, %c1024_166] : memref<2x32x2048xbf16, #tpu.memory_space<vmem>>, vector<1x32x512xbf16>
    %363 = vector.shape_cast %362 : vector<1x32x512xbf16> to vector<32x512xbf16>
    %cst_167 = arith.constant dense<0.000000e+00> : vector<32x512xf32>
    %364 = tpu.matmul %334, %363, %cst_167 {dimension_numbers = #tpu.dot_dimension_numbers<[1], [0], [0], [1], [0, 0, 1, 1], [], []>} : vector<32x32xbf16>, vector<32x512xbf16>, vector<32x512xf32> -> vector<32x512xf32>
    %c1_168 = arith.constant 1 : index
    %c0_169 = arith.constant 0 : index
    %c1024_170 = arith.constant 1024 : index
    %365 = vector.load %arg7[%c1_168, %c0_169, %c1024_170] : memref<2x1x2048xf32, #tpu.memory_space<vmem>>, vector<1x1x512xf32>
    %366 = vector.shape_cast %365 : vector<1x1x512xf32> to vector<1x512xf32>
    %367 = vector.broadcast %366 : vector<1x512xf32> to vector<32x512xf32>
    %368 = arith.addf %364, %367 : vector<32x512xf32>
    %cst_171 = arith.constant 0.000000e+00 : f32
    %369 = vector.broadcast %cst_171 : f32 to vector<32x512xf32>
    %370 = arith.maximumf %368, %369 : vector<32x512xf32>
    %371 = arith.truncf %370 : vector<32x512xf32> to vector<32x512xbf16>
    %c1_172 = arith.constant 1 : index
    %c0_173 = arith.constant 0 : index
    %c1024_174 = arith.constant 1024 : index
    %372 = vector.load %arg8[%c1_172, %c0_173, %c1024_174] : memref<2x32x2048xbf16, #tpu.memory_space<vmem>>, vector<1x32x512xbf16>
    %373 = vector.shape_cast %372 : vector<1x32x512xbf16> to vector<32x512xbf16>
    %cst_175 = arith.constant dense<0.000000e+00> : vector<32x32xf32>
    %374 = tpu.matmul %371, %373, %cst_175 {dimension_numbers = #tpu.dot_dimension_numbers<[1], [1], [0], [0], [0, 0, 1, 0], [], []>} : vector<32x512xbf16>, vector<32x512xbf16>, vector<32x32xf32> -> vector<32x32xf32>
    %375 = arith.addf %361, %374 : vector<32x32xf32>
    %c1_176 = arith.constant 1 : index
    %c0_177 = arith.constant 0 : index
    %c1536_178 = arith.constant 1536 : index
    %376 = vector.load %arg6[%c1_176, %c0_177, %c1536_178] : memref<2x32x2048xbf16, #tpu.memory_space<vmem>>, vector<1x32x512xbf16>
    %377 = vector.shape_cast %376 : vector<1x32x512xbf16> to vector<32x512xbf16>
    %cst_179 = arith.constant dense<0.000000e+00> : vector<32x512xf32>
    %378 = tpu.matmul %334, %377, %cst_179 {dimension_numbers = #tpu.dot_dimension_numbers<[1], [0], [0], [1], [0, 0, 1, 1], [], []>} : vector<32x32xbf16>, vector<32x512xbf16>, vector<32x512xf32> -> vector<32x512xf32>
    %c1_180 = arith.constant 1 : index
    %c0_181 = arith.constant 0 : index
    %c1536_182 = arith.constant 1536 : index
    %379 = vector.load %arg7[%c1_180, %c0_181, %c1536_182] : memref<2x1x2048xf32, #tpu.memory_space<vmem>>, vector<1x1x512xf32>
    %380 = vector.shape_cast %379 : vector<1x1x512xf32> to vector<1x512xf32>
    %381 = vector.broadcast %380 : vector<1x512xf32> to vector<32x512xf32>
    %382 = arith.addf %378, %381 : vector<32x512xf32>
    %cst_183 = arith.constant 0.000000e+00 : f32
    %383 = vector.broadcast %cst_183 : f32 to vector<32x512xf32>
    %384 = arith.maximumf %382, %383 : vector<32x512xf32>
    %385 = arith.truncf %384 : vector<32x512xf32> to vector<32x512xbf16>
    %c1_184 = arith.constant 1 : index
    %c0_185 = arith.constant 0 : index
    %c1536_186 = arith.constant 1536 : index
    %386 = vector.load %arg8[%c1_184, %c0_185, %c1536_186] : memref<2x32x2048xbf16, #tpu.memory_space<vmem>>, vector<1x32x512xbf16>
    %387 = vector.shape_cast %386 : vector<1x32x512xbf16> to vector<32x512xbf16>
    %cst_187 = arith.constant dense<0.000000e+00> : vector<32x32xf32>
    %388 = tpu.matmul %385, %387, %cst_187 {dimension_numbers = #tpu.dot_dimension_numbers<[1], [1], [0], [0], [0, 0, 1, 0], [], []>} : vector<32x512xbf16>, vector<32x512xbf16>, vector<32x32xf32> -> vector<32x32xf32>
    %389 = arith.addf %375, %388 : vector<32x32xf32>
    %c1_188 = arith.constant 1 : index
    %c0_189 = arith.constant 0 : index
    %c0_190 = arith.constant 0 : index
    %390 = vector.load %arg9[%c1_188, %c0_189, %c0_190] : memref<2x1x32xf32, #tpu.memory_space<vmem>>, vector<1x1x32xf32>
    %391 = vector.shape_cast %390 : vector<1x1x32xf32> to vector<1x32xf32>
    %392 = vector.broadcast %391 : vector<1x32xf32> to vector<32x32xf32>
    %393 = arith.addf %389, %392 : vector<32x32xf32>
    %394 = arith.addf %333, %393 : vector<32x32xf32>
    %cst_191 = arith.constant dense<0.000000e+00> : vector<32xf32>
    %395 = vector.multi_reduction <add>, %394, %cst_191 [1] : vector<32x32xf32> to vector<32xf32>
    %396 = vector.shape_cast %395 : vector<32xf32> to vector<32x1xf32>
    %cst_192 = arith.constant 3.200000e+01 : f32
    %397 = vector.broadcast %cst_192 : f32 to vector<32x1xf32>
    %398 = arith.divf %396, %397 : vector<32x1xf32>
    %399 = vector.broadcast %398 : vector<32x1xf32> to vector<32x32xf32>
    %400 = arith.subf %394, %399 : vector<32x32xf32>
    %401 = arith.mulf %400, %400 : vector<32x32xf32>
    %cst_193 = arith.constant dense<0.000000e+00> : vector<32xf32>
    %402 = vector.multi_reduction <add>, %401, %cst_193 [1] : vector<32x32xf32> to vector<32xf32>
    %403 = vector.shape_cast %402 : vector<32xf32> to vector<32x1xf32>
    %cst_194 = arith.constant 3.200000e+01 : f32
    %404 = vector.broadcast %cst_194 : f32 to vector<32x1xf32>
    %405 = arith.divf %403, %404 : vector<32x1xf32>
    %406 = vector.broadcast %398 : vector<32x1xf32> to vector<32x32xf32>
    %407 = arith.subf %394, %406 : vector<32x32xf32>
    %cst_195 = arith.constant 9.99999974E-6 : f32
    %408 = vector.broadcast %cst_195 : f32 to vector<32x1xf32>
    %409 = arith.addf %405, %408 : vector<32x1xf32>
    %410 = math.rsqrt %409 : vector<32x1xf32>
    %411 = vector.broadcast %410 : vector<32x1xf32> to vector<32x32xf32>
    %412 = arith.mulf %407, %411 : vector<32x32xf32>
    %c1_196 = arith.constant 1 : index
    %c0_197 = arith.constant 0 : index
    %c0_198 = arith.constant 0 : index
    %413 = vector.load %arg12[%c1_196, %c0_197, %c0_198] : memref<2x1x32xf32, #tpu.memory_space<vmem>>, vector<1x1x32xf32>
    %414 = vector.shape_cast %413 : vector<1x1x32xf32> to vector<1x32xf32>
    %415 = vector.broadcast %414 : vector<1x32xf32> to vector<32x32xf32>
    %416 = arith.mulf %412, %415 : vector<32x32xf32>
    %c1_199 = arith.constant 1 : index
    %c0_200 = arith.constant 0 : index
    %c0_201 = arith.constant 0 : index
    %417 = vector.load %arg13[%c1_199, %c0_200, %c0_201] : memref<2x1x32xf32, #tpu.memory_space<vmem>>, vector<1x1x32xf32>
    %418 = vector.shape_cast %417 : vector<1x1x32xf32> to vector<1x32xf32>
    %419 = vector.broadcast %418 : vector<1x32xf32> to vector<32x32xf32>
    %420 = arith.addf %416, %419 : vector<32x32xf32>
    %421 = vector.extract_strided_slice %420 {offsets = [16, 0], sizes = [16, 32], strides = [1, 1]} : vector<32x32xf32> to vector<16x32xf32>
    %422 = arith.truncf %421 : vector<16x32xf32> to vector<16x32xbf16>
    %c0_202 = arith.constant 0 : index
    %c0_203 = arith.constant 0 : index
    %423 = vector.load %arg14[%c0_202, %c0_203] : memref<32x128xbf16, #tpu.memory_space<vmem>>, vector<32x128xbf16>
    %cst_204 = arith.constant dense<0.000000e+00> : vector<16x128xf32>
    %424 = tpu.matmul %422, %423, %cst_204 {dimension_numbers = #tpu.dot_dimension_numbers<[1], [0], [0], [1], [0, 0, 1, 1], [], []>} : vector<16x32xbf16>, vector<32x128xbf16>, vector<16x128xf32> -> vector<16x128xf32>
    %c0_205 = arith.constant 0 : index
    %c0_206 = arith.constant 0 : index
    %425 = vector.load %arg15[%c0_205, %c0_206] : memref<1x128xf32, #tpu.memory_space<vmem>>, vector<1x128xf32>
    %426 = vector.broadcast %425 : vector<1x128xf32> to vector<16x128xf32>
    %427 = arith.addf %424, %426 : vector<16x128xf32>
    %c0_207 = arith.constant 0 : index
    %c0_208 = arith.constant 0 : index
    %c0_209 = arith.constant 0 : index
    %428 = vector.load %arg16[%c0_207, %c0_208, %c0_209] : memref<1x16x128xf32, #tpu.memory_space<vmem>>, vector<1x16x128xf32>
    %429 = vector.shape_cast %428 : vector<1x16x128xf32> to vector<16x128xf32>
    %430 = vector.shape_cast %427 : vector<16x128xf32> to vector<1x16x128xf32>
    tpu.vector_store %arg16[%c0_207, %c0_208, %c0_209], %430 {strides = array<i32>} : memref<1x16x128xf32, #tpu.memory_space<vmem>>, vector<1x16x128xf32>,
    return
  }
  func.func @transform_0(%arg0: i32) -> (i32, i32) {
    %c0_i32 = arith.constant 0 : i32
    %c0_i32_0 = arith.constant 0 : i32
    return %arg0, %c0_i32 : i32, i32
  }
  func.func @transform_1(%arg0: i32) -> (i32, i32, i32) {
    %c0_i32 = arith.constant 0 : i32
    %c0_i32_0 = arith.constant 0 : i32
    %c0_i32_1 = arith.constant 0 : i32
    %c0_i32_2 = arith.constant 0 : i32
    return %c0_i32, %c0_i32_0, %c0_i32_1 : i32, i32, i32
  }
  func.func @transform_2(%arg0: i32) -> (i32, i32, i32) {
    %c0_i32 = arith.constant 0 : i32
    %c0_i32_0 = arith.constant 0 : i32
    %c0_i32_1 = arith.constant 0 : i32
    %c0_i32_2 = arith.constant 0 : i32
    return %c0_i32, %c0_i32_0, %c0_i32_1 : i32, i32, i32
  }
  func.func @transform_3(%arg0: i32) -> (i32, i32, i32) {
    %c0_i32 = arith.constant 0 : i32
    %c0_i32_0 = arith.constant 0 : i32
    %c0_i32_1 = arith.constant 0 : i32
    %c0_i32_2 = arith.constant 0 : i32
    return %c0_i32, %c0_i32_0, %c0_i32_1 : i32, i32, i32
  }
  func.func @transform_4(%arg0: i32) -> (i32, i32, i32) {
    %c0_i32 = arith.constant 0 : i32
    %c0_i32_0 = arith.constant 0 : i32
    %c0_i32_1 = arith.constant 0 : i32
    %c0_i32_2 = arith.constant 0 : i32
    return %c0_i32, %c0_i32_0, %c0_i32_1 : i32, i32, i32
  }
  func.func @transform_5(%arg0: i32) -> (i32, i32, i32) {
    %c0_i32 = arith.constant 0 : i32
    %c0_i32_0 = arith.constant 0 : i32
    %c0_i32_1 = arith.constant 0 : i32
    %c0_i32_2 = arith.constant 0 : i32
    return %c0_i32, %c0_i32_0, %c0_i32_1 : i32, i32, i32
  }
  func.func @transform_6(%arg0: i32) -> (i32, i32, i32) {
    %c0_i32 = arith.constant 0 : i32
    %c0_i32_0 = arith.constant 0 : i32
    %c0_i32_1 = arith.constant 0 : i32
    %c0_i32_2 = arith.constant 0 : i32
    return %c0_i32, %c0_i32_0, %c0_i32_1 : i32, i32, i32
  }
  func.func @transform_7(%arg0: i32) -> (i32, i32, i32) {
    %c0_i32 = arith.constant 0 : i32
    %c0_i32_0 = arith.constant 0 : i32
    %c0_i32_1 = arith.constant 0 : i32
    %c0_i32_2 = arith.constant 0 : i32
    return %c0_i32, %c0_i32_0, %c0_i32_1 : i32, i32, i32
  }
  func.func @transform_8(%arg0: i32) -> (i32, i32, i32) {
    %c0_i32 = arith.constant 0 : i32
    %c0_i32_0 = arith.constant 0 : i32
    %c0_i32_1 = arith.constant 0 : i32
    %c0_i32_2 = arith.constant 0 : i32
    return %c0_i32, %c0_i32_0, %c0_i32_1 : i32, i32, i32
  }
  func.func @transform_9(%arg0: i32) -> (i32, i32, i32) {
    %c0_i32 = arith.constant 0 : i32
    %c0_i32_0 = arith.constant 0 : i32
    %c0_i32_1 = arith.constant 0 : i32
    %c0_i32_2 = arith.constant 0 : i32
    return %c0_i32, %c0_i32_0, %c0_i32_1 : i32, i32, i32
  }
  func.func @transform_10(%arg0: i32) -> (i32, i32, i32) {
    %c0_i32 = arith.constant 0 : i32
    %c0_i32_0 = arith.constant 0 : i32
    %c0_i32_1 = arith.constant 0 : i32
    %c0_i32_2 = arith.constant 0 : i32
    return %c0_i32, %c0_i32_0, %c0_i32_1 : i32, i32, i32
  }
  func.func @transform_11(%arg0: i32) -> (i32, i32, i32) {
    %c0_i32 = arith.constant 0 : i32
    %c0_i32_0 = arith.constant 0 : i32
    %c0_i32_1 = arith.constant 0 : i32
    %c0_i32_2 = arith.constant 0 : i32
    return %c0_i32, %c0_i32_0, %c0_i32_1 : i32, i32, i32
  }
  func.func @transform_12(%arg0: i32) -> (i32, i32, i32) {
    %c0_i32 = arith.constant 0 : i32
    %c0_i32_0 = arith.constant 0 : i32
    %c0_i32_1 = arith.constant 0 : i32
    %c0_i32_2 = arith.constant 0 : i32
    return %c0_i32, %c0_i32_0, %c0_i32_1 : i32, i32, i32
  }
  func.func @transform_13(%arg0: i32) -> (i32, i32) {
    %c0_i32 = arith.constant 0 : i32
    %c0_i32_0 = arith.constant 0 : i32
    %c0_i32_1 = arith.constant 0 : i32
    return %c0_i32, %c0_i32_0 : i32, i32
  }
  func.func @transform_14(%arg0: i32) -> (i32, i32) {
    %c0_i32 = arith.constant 0 : i32
    %c0_i32_0 = arith.constant 0 : i32
    %c0_i32_1 = arith.constant 0 : i32
    return %c0_i32, %c0_i32_0 : i32, i32
  }
  func.func @transform_15(%arg0: i32) -> (i32, i32, i32) {
    %c0_i32 = arith.constant 0 : i32
    %c0_i32_0 = arith.constant 0 : i32
    %c0_i32_1 = arith.constant 0 : i32
    return %arg0, %c0_i32, %c0_i32_0 : i32, i32, i32
  }
}

</mosaic_0001>

<bundles_post_ra>
// kernel: tpu_custom_call.1
= control target key start
LH: loop header
LB: loop body
LE: loop exit
PB: predicated region body
PF: predicated region fallthrough
CT: control target
= control target key end

     0   :  { %s7973_s0 = inlined_call_operand.vmem [shape: f32[64,32], index: 0, kind: input, shape index: {}]   ;;  %s7974_s1 = inlined_call_operand.vmem [shape: bf16[2,32,96], index: 1, kind: input, shape index: {}]   ;;  %s7975_s2 = inlined_call_operand.vmem [shape: f32[2,1,96], index: 2, kind: input, shape index: {}]   ;;  %s7976_s3 = inlined_call_operand.vmem [shape: bf16[2,32,32], index: 3, kind: input, shape index: {}]   ;;  %s7977_s4 = inlined_call_operand.hbm [shape: f32[2,1,32], index: 4, kind: input, shape index: {}]   ;;  %s7978_s5 = inlined_call_operand.hbm [shape: bf16[2,32,2048], index: 5, kind: input, shape index: {}]   ;;  %s7979_s6 = inlined_call_operand.vmem [shape: f32[2,1,2048], index: 6, kind: input, shape index: {}]   ;;  %s7980_s7 = inlined_call_operand.hbm [shape: bf16[2,32,2048], index: 7, kind: input, shape index: {}]   ;;  %s7981_s8 = inlined_call_operand.vmem [shape: f32[2,1,32], index: 8, kind: input, shape index: {}]   ;;  %s7982_s9 = inlined_call_operand.vmem [shape: f32[2,1,32], index: 9, kind: input, shape index: {}]   ;;  %s7983_s10 = inlined_call_operand.vmem [shape: f32[2,1,32], index: 10, kind: input, shape index: {}]   ;;  %s7984_s11 = inlined_call_operand.vmem [shape: f32[2,1,32], index: 11, kind: input, shape index: {}]   ;;  %s7985_s12 = inlined_call_operand.vmem [shape: f32[2,1,32], index: 12, kind: input, shape index: {}]   ;;  %s7986_s13 = inlined_call_operand.vmem [shape: bf16[32,128], index: 13, kind: input, shape index: {}]   ;;  %s7987_s14 = inlined_call_operand.vmem [shape: f32[1,128], index: 14, kind: input, shape index: {}]   ;;  %s7988_s15 = inlined_call_operand.hbm [shape: f32[2,16,128], index: 15, kind: output, shape index: {}]  }
   0x1   :  { %8006 = sst [smem:[#allocation20_spill]] %s7978_s5 }
   0x2   :  { %8007 = sst [smem:[#allocation21_spill]] %s7987_s14 }
   0x3   :  { %8008 = sst [smem:[#allocation22_spill]] %s7988_s15 }
   0x4   :  { %20 = vsyncpa [#allocation3], 0 }
   0x5   :  { %21 = vsyncpa [#allocation6], 0 }
   0x6   :  { %22 = vsyncpa [#allocation4], 0 }
   0x7   :  { %24 = vsyncpa [#allocation4 + $0x1], 0  ;;  %s6776_s18 = smov 0   ;;  %s6778_s19 = smov 0  }
   0x8   :  { %s6780_s20 = smov 0   ;;  %s6782_s21 = smov 0  }
   0x9 LB: > { %8009 = sst [smem:[#allocation12_spill]] %s6656_s18  ;;  %s6797_s22 = sadd.s32 4294967295, %s6668_s21   ;;  %s6668_s21 = sphi %s6782_s21, %s8040_s21   ;;  %s6664_s20 = sphi %s6780_s20, %s8043_s20   ;;  %s6660_s19 = sphi %s6778_s19, %s8042_s19   ;;  %s6656_s18 = sphi %s6776_s18, %s8041_s18  }
   0xa   : > { %8010 = sst [smem:[#allocation13_spill]] %s6660_s19  ;;  %s5666_s23 = sadd.s32 4294967294, %s6668_s21  }
   0xb   : > { %8011 = sst [smem:[#allocation14_spill]] %s6664_s20  ;;  %s6801_s24 = sadd.s32 1, %s6668_s21  }
   0xc   : > { %8012 = sst [smem:[#allocation15_spill]] %s6668_s21  ;;  %s357_s25 = sadd.s32 1, %s6664_s20 }
   0xd   : > { %8013 = sst [smem:[#allocation16_spill]] %s6801_s24  ;;  %s354_s26 = ssub.s32 %s6668_s21, %s6801_s24 }
   0xe   : > { %p367_p0 = scmp.ne.s32.totalorder %s6664_s20, %s6660_s19  ;;  %p355_p1 = scmp.eq.s32.totalorder %s354_s26, 0 }
   0xf   : > { %p368_p2 = scmp.eq.s32.totalorder %s6797_s22, 1  ;;  %p373_p3 = scmp.ne.s32.totalorder %s6660_s19, %s6656_s18 }
  0x10   : > { %p374_p4 = scmp.eq.s32.totalorder %s5666_s23, 1  ;;  %p5667_p7 = scmp.ge.s32.totalorder %s6668_s21, 1 }
  0x11   : > { %s6812_s27 = scalar_select %p355_p1, %s6664_s20, %s357_s25  }
  0x12   : > { %p6814_p5 = por %p368_p2, %p367_p0  ;;  %p6818_p6 = por %p374_p4, %p373_p3 }
  0x13   : > { %8014 = sst [smem:[#allocation17_spill]] %s6812_s27  ;;  %p381_p8 = scmp.lt.s32.totalorder %s6668_s21, 3 }
  0x14   : > { %s8015_s28 = scalar_select %p6814_p5, 1, 0 }
  0x15   : > { %s8017_s29 = scalar_select %p6818_p6, 1, 0 }
  0x16   : > { %8016 = sst [smem:[#allocation18_spill]] %s8015_s28  ;;  %p7995_p9 = scmp.eq.s32.totalorder %s6797_s22, 0 }
  0x17   : > { %8018 = sst [smem:[#allocation19_spill]] %s8017_s29  ;;  %p6825_p10 = pnand %p5667_p7, %p381_p8 }
  0x18   : > { %s6670_s16 = smov [#allocation5]   ;;  %s6671_s25 = smov [#allocation2]  }
  0x19   : > { %s8019_s30 = scalar_select %p6825_p10, 1, 0 }
  0x1a   : > { %s415_s17 = sshll.u32 %s6670_s16, 4  ;;  %p6210_p11 = pneg %p6825_p10  ;;  %s416_s17 = int_to_ptr.vmem [resolvable:$true] %s415_s17 }
  0x1b   : > { %s402_s26 = sshll.u32 %s6671_s25, 4  ;;  %s8021_s5 = sld [smem:[#allocation20_spill]]  ;;  %s6837_s26 = int_to_ptr.vmem [resolvable:$true] %s402_s26 }
  0x1c   : > { %p6833_p12 = pnand %p7995_p9, %p6210_p11 }
  0x1e   : > { %p6847_p0 = pneg %p6833_p12 }
  0x21   : > { %s6514_s24 = scalar_lea.hbm %s8021_s5, 8192 }
  0x22   : > { %p6515_p13 = scmp.ne.s32.totalorder %s8021_s5, %s6514_s24  ;;  %p6521_p3 = scmp.lt.u32.totalorder %s6514_s24, %s8021_s5 }
  0x24   : > { %p6517_p1 = pnand %p6847_p0, %p6515_p13 }
  0x26   : > { %p6518_p2 = pneg %p6517_p1 }
  0x28   : > { %p6523_p4 = pnand %p6521_p3, %p6518_p2 }
  0x2a   : > { %6526 = shalt.err (!%p6523_p4)
}
  0x2b   : > { %s6527_s20 = scalar_lea.vmem %s416_s17, 8192  ;;  %p6535_p9 = scmp.lt.s32.totalorder %s416_s17, %s416_s17 }
  0x2c   : > { %p6528_p7 = scmp.ne.s32.totalorder %s416_s17, %s6527_s20  ;;  %p6536_p6 = scmp.lt.s32.totalorder %s6527_s20, %s6527_s20 }
  0x2e   : > { %p6530_p8 = pnand %p6528_p7, %p6847_p0  ;;  %p6537_p5 = por %p6536_p6, %p6535_p9 }
  0x30   : > { %p6531_p11 = pneg %p6530_p8 }
  0x32   : > { %p6538_p10 = pnand %p6537_p5, %p6531_p11 }
  0x34   : > { %6541 = shalt.err (!%p6538_p10)
}
  0x35   : > { %s8002_s18 = smov 1024   ;;  %s8003_s27 = smov 64  }
  0x36   : > { %6216 = dma.hbm_to_vmem [thread:$0]  (!%p6833_p12), %s8021_s5, 8192, %s416_s17, [#allocation6], %s8002_s18, %s8002_s18, %s8003_s27  }
  0x37   : > { %s6542_s15 = scalar_lea.hbm %s7977_s4, 32 }
  0x38   : > { %p6543_p5 = scmp.ne.s32.totalorder %s7977_s4, %s6542_s15  ;;  %p6549_p10 = scmp.lt.u32.totalorder %s6542_s15, %s7977_s4 }
  0x3a   : > { %p6545_p6 = pnand %p6543_p5, %p6847_p0 }
  0x3c   : > { %p6546_p9 = pneg %p6545_p6 }
  0x3e   : > { %p6551_p13 = pnand %p6549_p10, %p6546_p9 }
  0x40   : > { %6554 = shalt.err (!%p6551_p13)
}
  0x41   : > { %s6555_s17 = scalar_lea.vmem %s6837_s26, 32  ;;  %p6563_p4 = scmp.lt.s32.totalorder %s6837_s26, %s6837_s26 }
  0x42   : > { %p6556_p1 = scmp.ne.s32.totalorder %s6837_s26, %s6555_s17  ;;  %p6564_p7 = scmp.lt.s32.totalorder %s6555_s17, %s6555_s17 }
  0x44   : > { %p6558_p2 = pnand %p6556_p1, %p6847_p0  ;;  %p6565_p8 = por %p6564_p7, %p6563_p4 }
  0x46   : > { %p6559_p3 = pneg %p6558_p2 }
  0x48   : > { %p6566_p11 = pnand %p6565_p8, %p6559_p3 }
  0x4a   : > { %6569 = shalt.err (!%p6566_p11)
}
  0x4b   : > { %s6674_s28 = smov 16   ;;  %s6675_s14 = smov 1  }
  0x4c   : > { %6213 = dma.hbm_to_vmem [thread:$0]  (!%p6833_p12), %s7977_s4, 32, %s6837_s26, [#allocation3], %s6674_s28, %s6674_s28, %s6675_s14  }
  0x4d   : > { %s6676_s21 = smov [#allocation7]   ;;  %s6570_s20 = scalar_lea.hbm %s7980_s7, 8192 }
  0x4e   : > { %s431_s24 = sshll.u32 %s6676_s21, 4  ;;  %p6571_p5 = scmp.ne.s32.totalorder %s7980_s7, %s6570_s20  ;;  %s432_s24 = int_to_ptr.vmem [resolvable:$true] %s431_s24 }
  0x4f   : > { %p6577_p10 = scmp.lt.u32.totalorder %s6570_s20, %s7980_s7 }
  0x50   : > { %p6573_p6 = pnand %p6571_p5, %p6847_p0 }
  0x52   : > { %p6574_p9 = pneg %p6573_p6 }
  0x54   : > { %p6579_p13 = pnand %p6577_p10, %p6574_p9 }
  0x56   : > { %6582 = shalt.err (!%p6579_p13)
}
  0x57   : > { %s6583_s26 = scalar_lea.vmem %s432_s24, 8192  ;;  %p6591_p4 = scmp.lt.s32.totalorder %s432_s24, %s432_s24 }
  0x58   : > { %p6584_p1 = scmp.ne.s32.totalorder %s432_s24, %s6583_s26  ;;  %p6592_p7 = scmp.lt.s32.totalorder %s6583_s26, %s6583_s26 }
  0x5a   : > { %p6586_p2 = pnand %p6584_p1, %p6847_p0  ;;  %p6593_p8 = por %p6592_p7, %p6591_p4 }
  0x5c   : > { %p6587_p3 = pneg %p6586_p2 }
  0x5e   : > { %p6594_p11 = pnand %p6593_p8, %p6587_p3 }
  0x60   : > { %6597 = shalt.err (!%p6594_p11)
}
  0x61   : > { %s8023_s18 = smov 64   ;;  %s8024_s28 = smov 1024  }
  0x62   : > { %6219 = dma.hbm_to_vmem [thread:$0]  (!%p6833_p12), %s7980_s7, 8192, %s432_s24, [#allocation6], %s8024_s28, %s8024_s28, %s8023_s18  }
  0x63   : > { %p8025_p5 = scmp.ne.s32.totalorder %s8019_s30, 0 }
  0x64   : > { %p8026_p0 = scmp.eq.s32.totalorder (!%p8025_p5), %s6797_s22, 0 }
  0x65   : > { %477 = sbr.rel (%p8025_p5) target bundleno = 8153 (0x1fd9), region = 80 }
  0x6c   : > { %6643 = dma.done.wait (%p8026_p0), [#allocation3], 32   ;;  %p8027_p6 = pmov %p8026_p0 }
  0x6d   : > { %p8028_p9 = pmov %p8026_p0 }
  0x6e   : > { %6645 = vsyncadd (%p8027_p6), [#allocation3], 4294967264 }
  0x6f   : > { %6647 = dma.done.wait (%p8028_p9), [#allocation6], 16384   ;;  %p8029_p10 = pmov %p8026_p0 }
  0x70   : > { %s5677_s23 = sshll.u32 %s6797_s22, 2  ;;  %v6348_v0 = vld [vmem:[%s7974_s1] sm:$0xff]   ;;  %v6349_v1 = vld [vmem:[%s7974_s1 + $0x8] sm:$0xff]   ;;  %vm569_vm0 = vcmask 261120   ;;  %vm633_vm1 = vcmask 64512   ;;  %s6677_s17 = smov 64  }
  0x71   : > { %6649 = vsyncadd (%p8029_p10), [#allocation6], 4294950912  ;;  %p534_p13 = scmp.lt.s32.totalorder %s5677_s23, 7  ;;  %6012 = vmatprep.subr.bf16.mxu0 %v6348_v0  ;;  %v5679_v9 = vld [vmem:[%s7975_s2] ss:$0 sm:$0xff]  ;;  %s6678_s26 = smov 96  }
  0x72   : > { %6013 = vmatpush3.bf16.msra.mxu0 %v6348_v0  ;;  %s6679_s18 = smov 120   ;;  %s6680_s28 = smov 88   ;;  %vm1382_vm2 = vcmask 130048   ;;  %vm1387_vm3 = vcmask 195584   ;;  %vm6693_vm4 = vmmov 0  }
  0x73   : > { %s8045_s23 = smov (!%p534_p13, %s5677_s23), 7  ;;  %6014 = vmatprep.subr.bf16.mxu0 %v6349_v1  ;;  %s6681_s5 = smov 56  }
  0x74   : > { %s5678_s16 = sshll.u32 %s8045_s23, 3  ;;  %s6682_s27 = smov 80  }
  0x75   : > { %s537_s15 = scalar_lea.vmem %s7973_s0, %s5678_s16  ;;  %s6683_s23 = smov 112  }
  0x76   : > { %v6930_v2 = vld [vmem:[%s537_s15] sm:$0xff]  ;;  %v6932_v3 = vld [vmem:[%s537_s15 + $0x8] sm:$0xff]  ;;  %v6934_v4 = vld [vmem:[%s537_s15 + $0x10] sm:$0xff]  ;;  %6015 = vmatpush3.bf16.msra.mxu0 %v6349_v1  ;;  %s6684_s16 = smov 48   ;;  %s6685_s14 = smov 72  }
  0x77   : > { %v544_v5 = vpack.c.bf16 %v6932_v3, %v6930_v2  ;;  %v6938_v6 = vld [vmem:[%s537_s15 + $0x18] sm:$0xff]  ;;  %s6686_s30 = smov 104   ;;  %s6687_s15 = smov 40  }
  0x78   : > { %v545_v7 = vpack.c.bf16 %v6938_v6, %v6934_v4  ;;  %s6688_s19 = smov 8   ;;  %s6689_s21 = smov 16  }
  0x79   : > { %6016 = vmatprep.mubr.msk.bf16.mxu0 %vm569_vm0, %v544_v5  ;;  %s8004_s24 = smov 24  }
  0x7a   : > { %6017 = vmatmul.mubr.msk.bf16.vlgmr.msra.gmra.mrb[0].mxu0 %vm569_vm0, %v545_v7 }
 0x14d   : > { %v6018_v8 = vpop.f32.mrb[0].mxu0 }
 0x14e   : > { %v610_v10 = vpop.f32.mrb[1].mxu0  ;;  %v619_v12 = vadd.f32 %v6018_v8, %v5679_v9 }
 0x14f   : > { %v6019_v11 = vpop.f32.mrb[2].mxu0  ;;  %v611_v15 = vadd.f32 %v5679_v9, %v610_v10 }
 0x150   : > { %v622_v13 = vadd.f32 %v6019_v11, %v5679_v9  ;;  %v613_v14 = vpop.f32.mrb[3].mxu0 }
 0x151   : > { %v614_v16 = vadd.f32 %v5679_v9, %v613_v14 }
 0x152   : > { %v6947_v17 = vpack.c.bf16 %v622_v13, %v619_v12 }
 0x153   : > { %v6949_v18 = vpack.c.bf16 %v614_v16, %v611_v15 }
 0x155   : > { %737 = vrot.lane.b32.xlu1 %v6949_v18, %s6677_s17  ;;  %629 = vrot.lane.b32.xlu0 %v6949_v18, %s6678_s26 }
 0x156   : > { %6024 = vmatprep.mubr.msk.bf16.mxu1 %vm633_vm1, %v6949_v18 }
 0x159   : > { %739 = vrot.lane.b32.xlu1 %v6947_v17, %s6677_s17  ;;  %631 = vrot.lane.b32.xlu0 %v6947_v17, %s6678_s26 }
 0x1c7   : > { %v738_v19 = vpop.permute.xlu1 %737  ;;  %v630_v20 = vpop.permute.xlu0 %629 }
 0x1c8   : > { %6180 = vmatprep.subr.msk.bf16.mxu1 %vm633_vm1, %v630_v20  ;;  %6028 = vmatprep.subr.bf16.mxu0 %v738_v19  ;;  %v641_v21 = vsel %vm633_vm1, %v630_v20, 0 }
 0x1c9   : > { %6021 = vmatpush3.bf16.xpose.msra.mxu1 %v641_v21  ;;  %6029 = vmatpush3.bf16.msra.mxu0 %v738_v19 }
 0x1cb   : > { %v740_v22 = vpop.permute.xlu1 %739  ;;  %v632_v23 = vpop.permute.xlu0 %631 }
 0x1cc   : > { %6181 = vmatprep.subr.msk.bf16.mxu1 %vm633_vm1, %v632_v23  ;;  %6030 = vmatprep.subr.bf16.mxu0 %v740_v22  ;;  %v644_v24 = vsel %vm633_vm1, %v632_v23, 0 }
 0x1cd   : > { %6031 = vmatpush3.bf16.msra.mxu0 %v740_v22 }
 0x1d1   : > { %6023 = vmatpush3.bf16.xpose.msra.mxu1 %v644_v24 }
 0x1d8   : > { %6025 = vmatmul.mubr.msk.bf16.vlgmr.msra.gmra.mrb[0].mxu1 %vm633_vm1, %v6947_v17 }
 0x2ab   : > { %v6026_v25 = vpop.f32.mrb[0].mxu1 }
 0x2ac   : > { %v680_v26 = vpop.f32.mrb[1].mxu1  ;;  %v701_v27 = vsel %vm569_vm0, %v6026_v25, -inf }
 0x2ad   : > { %702 = vmax.xlane.f32.xlu0 %v701_v27  ;;  %v6027_v28 = vpop.f32.mrb[2].mxu1  ;;  %v695_v29 = vsel %vm569_vm0, %v680_v26, -inf }
 0x2ae   : > { %696 = vmax.xlane.f32.xlu1 %v695_v29  ;;  %v683_v30 = vpop.f32.mrb[3].mxu1  ;;  %v704_v31 = vsel %vm569_vm0, %v6027_v28, -inf }
 0x2af   : > { %v698_v32 = vsel %vm569_vm0, %v683_v30, -inf }
 0x2b2   : > { %705 = vmax.xlane.f32.xlu1 %v704_v31 }
 0x2b6   : > { %699 = vmax.xlane.f32.xlu1 %v698_v32 }
 0x2c3   : > { %802 = vrot.lane.b32.xlu0 %v6949_v18, %s6679_s18 }
 0x2c7   : > { %806 = vrot.lane.b32.xlu1 %v6949_v18, %s6680_s28 }
 0x2cb   : > { %808 = vrot.lane.b32.xlu1 %v6947_v17, %s6680_s28 }
 0x2cf   : > { %804 = vrot.lane.b32.xlu1 %v6947_v17, %s6679_s18 }
 0x2d3   : > { %913 = vrot.lane.b32.xlu1 %v6949_v18, %s6681_s5 }
 0x33a   : > { %v703_v33 = vpop.xlane.xlu0 %702 }
 0x33b   : > { %v709_v34 = vsub.f32 %v6026_v25, %v703_v33  ;;  %v697_v35 = vpop.xlane.xlu1 %696 }
 0x33c   : > { %v707_v37 = vsub.f32 %v680_v26, %v697_v35 }
 0x33d   : > { %v715_v36 = vmul.f32 1.442695, %v709_v34 }
 0x33e   : > { %v711_v41 = vmul.f32 1.442695, %v707_v37  ;;  %v803_v55 = vpop.permute.xlu0 %802 }
 0x33f   : > { %v706_v38 = vpop.xlane.xlu1 %705  ;;  %6358 = vpow2.f32 %v715_v36 }
 0x340   : > { %v710_v39 = vsub.f32 %v6027_v28, %v706_v38 }
 0x342   : > { %v717_v40 = vmul.f32 1.442695, %v710_v39 }
 0x343   : > { %v700_v42 = vpop.xlane.xlu1 %699 }
 0x344   : > { %6360 = vpow2.f32 %v717_v40  ;;  %v708_v43 = vsub.f32 %v683_v30, %v700_v42 }
 0x345   : > { %6362 = vpow2.f32 %v711_v41 }
 0x346   : > { %v713_v44 = vmul.f32 1.442695, %v708_v43 }
 0x347   : > { %v807_v45 = vpop.permute.xlu1 %806 }
 0x348   : > { %6364 = vpow2.f32 %v713_v44  ;;  %6182 = vmatprep.subr.msk.bf16.mxu0 %vm633_vm1, %v807_v45  ;;  %v817_v56 = vsel %vm633_vm1, %v807_v45, 0 }
 0x349   : > { %v6982_v47 = vpop.eup %6358 }
 0x34b   : > { %v809_v46 = vpop.permute.xlu1 %808 }
 0x34c   : > { %v820_v57 = vsel %vm633_vm1, %v809_v46, 0 }
 0x34e   : > { %v6984_v48 = vpop.eup %6360 }
 0x34f   : > { %v805_v49 = vpop.permute.xlu1 %804  ;;  %v736_v50 = vpack.c.bf16 %v6984_v48, %v6982_v47  ;;  %v6988_v51 = vpop.eup %6362 }
 0x352   : > { %v6990_v52 = vpop.eup %6364 }
 0x353   : > { %v914_v53 = vpop.permute.xlu1 %913  ;;  %v735_v54 = vpack.c.bf16 %v6990_v52, %v6988_v51 }
 0x354   : > { %6044 = vmatprep.subr.bf16.mxu1 %v914_v53 }
 0x355   : > { %6032 = vmatprep.mubr.msk.bf16.mxu0 %vm569_vm0, %v735_v54  ;;  %6045 = vmatpush3.bf16.msra.mxu1 %v914_v53 }
 0x356   : > { %6033 = vmatmul.mubr.msk.bf16.vlgmr.msra.gmra.mrb[4].mxu0 %vm569_vm0, %v736_v50 }
 0x357   : > { %6037 = vmatpush3.bf16.xpose.msra.mxu0 %v817_v56  ;;  %6040 = vmatprep.mubr.msk.bf16.mxu0 %vm633_vm1, %v803_v55 }
 0x358   : > { %6183 = vmatprep.subr.msk.bf16.mxu0 %vm633_vm1, %v809_v46 }
 0x35f   : > { %6039 = vmatpush3.bf16.xpose.msra.mxu0 %v820_v57 }
 0x366   : > { %6041 = vmatmul.mubr.msk.bf16.vlgmr.msra.gmra.mrb[8].mxu0 %vm633_vm1, %v805_v49 }
 0x429   : > { %v7001_v58 = vpop.f32.mrb[4].mxu0 }
 0x42a   : > { %v7003_v59 = vpop.f32.mrb[5].mxu0 }
 0x42b   : > { %v7005_v60 = vpop.f32.mrb[6].mxu0 }
 0x42c   : > { %v7007_v61 = vpop.f32.mrb[7].mxu0 }
 0x439   : > { %v6042_v62 = vpop.f32.mrb[8].mxu0 }
 0x43a   : > { %v856_v63 = vpop.f32.mrb[9].mxu0  ;;  %v877_v0 = vsel %vm569_vm0, %v6042_v62, -inf }
 0x43b   : > { %878 = vmax.xlane.f32.xlu1 %v877_v0  ;;  %v6043_v1 = vpop.f32.mrb[10].mxu0  ;;  %v871_v8 = vsel %vm569_vm0, %v856_v63, -inf }
 0x43c   : > { %v859_v5 = vpop.f32.mrb[11].mxu0  ;;  %v880_v9 = vsel %vm569_vm0, %v6043_v1, -inf }
 0x43d   : > { %v874_v7 = vsel %vm569_vm0, %v859_v5, -inf }
 0x43e   : > { %875 = vmax.xlane.f32.xlu0 %v874_v7 }
 0x43f   : > { %872 = vmax.xlane.f32.xlu1 %v871_v8 }
 0x443   : > { %881 = vmax.xlane.f32.xlu1 %v880_v9 }
 0x454   : > { %982 = vrot.lane.b32.xlu1 %v6949_v18, %s6682_s27  ;;  %915 = vrot.lane.b32.xlu0 %v6947_v17, %s6681_s5 }
 0x458   : > { %984 = vrot.lane.b32.xlu1 %v6947_v17, %s6682_s27  ;;  %978 = vrot.lane.b32.xlu0 %v6949_v18, %s6683_s23 }
 0x45c   : > { %980 = vrot.lane.b32.xlu1 %v6947_v17, %s6683_s23 }
 0x460   : > { %1089 = vrot.lane.b32.xlu1 %v6949_v18, %s6684_s16 }
 0x4c8   : > { %v879_v10 = vpop.xlane.xlu1 %878 }
 0x4c9   : > { %v885_v12 = vsub.f32 %v6042_v62, %v879_v10 }
 0x4cb   : > { %v876_v11 = vpop.xlane.xlu0 %875  ;;  %v891_v21 = vmul.f32 1.442695, %v885_v12 }
 0x4cc   : > { %v884_v13 = vsub.f32 %v859_v5, %v876_v11  ;;  %v873_v14 = vpop.xlane.xlu1 %872 }
 0x4cd   : > { %v883_v15 = vsub.f32 %v856_v63, %v873_v14 }
 0x4ce   : > { %v889_v16 = vmul.f32 1.442695, %v884_v13 }
 0x4cf   : > { %v887_v19 = vmul.f32 1.442695, %v883_v15  ;;  %v916_v20 = vpop.permute.xlu0 %915 }
 0x4d0   : > { %6366 = vpow2.f32 %v889_v16  ;;  %6046 = vmatprep.subr.bf16.mxu1 %v916_v20  ;;  %v882_v22 = vpop.xlane.xlu1 %881 }
 0x4d1   : > { %6368 = vpow2.f32 %v887_v19  ;;  %v886_v23 = vsub.f32 %v6043_v1, %v882_v22  ;;  %6047 = vmatpush3.bf16.msra.mxu1 %v916_v20 }
 0x4d2   : > { %6370 = vpow2.f32 %v891_v21 }
 0x4d3   : > { %v893_v24 = vmul.f32 1.442695, %v886_v23  ;;  %v979_v35 = vpop.permute.xlu0 %978 }
 0x4d4   : > { %v983_v25 = vpop.permute.xlu1 %982 }
 0x4d5   : > { %6372 = vpow2.f32 %v893_v24  ;;  %6184 = vmatprep.subr.msk.bf16.mxu1 %vm633_vm1, %v983_v25  ;;  %v993_v36 = vsel %vm633_vm1, %v983_v25, 0 }
 0x4d8   : > { %v985_v26 = vpop.permute.xlu1 %984 }
 0x4d9   : > { %v996_v37 = vsel %vm633_vm1, %v985_v26, 0 }
 0x4da   : > { %v7026_v27 = vpop.eup %6366 }
 0x4db   : > { %v7028_v28 = vpop.eup %6368 }
 0x4dc   : > { %v981_v29 = vpop.permute.xlu1 %980  ;;  %v911_v30 = vpack.c.bf16 %v7026_v27, %v7028_v28  ;;  %v7032_v31 = vpop.eup %6370 }
 0x4de   : > { %6048 = vmatprep.mubr.msk.bf16.mxu1 %vm569_vm0, %v911_v30 }
 0x4df   : > { %v7035_v32 = vpop.eup %6372 }
 0x4e0   : > { %v1090_v33 = vpop.permute.xlu1 %1089  ;;  %v912_v34 = vpack.c.bf16 %v7035_v32, %v7032_v31 }
 0x4e1   : > { %6060 = vmatprep.subr.bf16.mxu0 %v1090_v33 }
 0x4e2   : > { %6049 = vmatmul.mubr.msk.bf16.vlgmr.msra.gmra.mrb[4].mxu1 %vm569_vm0, %v912_v34  ;;  %6061 = vmatpush3.bf16.msra.mxu0 %v1090_v33 }
 0x4e3   : > { %6053 = vmatpush3.bf16.xpose.msra.mxu1 %v993_v36  ;;  %6056 = vmatprep.mubr.msk.bf16.mxu1 %vm633_vm1, %v979_v35 }
 0x4e4   : > { %6185 = vmatprep.subr.msk.bf16.mxu1 %vm633_vm1, %v985_v26 }
 0x4eb   : > { %6055 = vmatpush3.bf16.xpose.msra.mxu1 %v996_v37 }
 0x4f2   : > { %6057 = vmatmul.mubr.msk.bf16.vlgmr.msra.gmra.mrb[8].mxu1 %vm633_vm1, %v981_v29 }
 0x5b5   : > { %v7045_v38 = vpop.f32.mrb[4].mxu1 }
 0x5b6   : > { %v7047_v39 = vpop.f32.mrb[5].mxu1 }
 0x5b7   : > { %v7049_v40 = vpop.f32.mrb[6].mxu1 }
 0x5b8   : > { %v7051_v41 = vpop.f32.mrb[7].mxu1 }
 0x5c5   : > { %v6058_v42 = vpop.f32.mrb[8].mxu1 }
 0x5c6   : > { %v1032_v43 = vpop.f32.mrb[9].mxu1  ;;  %v1053_v44 = vsel %vm569_vm0, %v6058_v42, -inf }
 0x5c7   : > { %1054 = vmax.xlane.f32.xlu0 %v1053_v44  ;;  %v6059_v45 = vpop.f32.mrb[10].mxu1  ;;  %v1047_v50 = vsel %vm569_vm0, %v1032_v43, -inf }
 0x5c8   : > { %v1035_v46 = vpop.f32.mrb[11].mxu1  ;;  %v1056_v53 = vsel %vm569_vm0, %v6059_v45, -inf }
 0x5c9   : > { %v1050_v49 = vsel %vm569_vm0, %v1035_v46, -inf }
 0x5ca   : > { %1051 = vmax.xlane.f32.xlu1 %v1050_v49  ;;  %v898_v49 = vsel %vm569_vm0, %v7026_v27, 0.0 }
 0x5cb   : > { %1048 = vmax.xlane.f32.xlu0 %v1047_v50 }
 0x5cf   : > { %1057 = vmax.xlane.f32.xlu0 %v1056_v53 }
 0x5db   : > { %1158 = vrot.lane.b32.xlu1 %v6949_v18, %s6685_s14 }
 0x5df   : > { %1160 = vrot.lane.b32.xlu1 %v6947_v17, %s6685_s14 }
 0x5e3   : > { %1156 = vrot.lane.b32.xlu1 %v6947_v17, %s6686_s30 }
 0x5e5   : > { %1091 = vrot.lane.b32.xlu0 %v6947_v17, %s6684_s16 }
 0x5e9   : > { %1154 = vrot.lane.b32.xlu0 %v6949_v18, %s6686_s30 }
 0x654   : > { %v1055_v54 = vpop.xlane.xlu0 %1054 }
 0x655   : > { %v1061_v56 = vsub.f32 %v6058_v42, %v1055_v54 }
 0x657   : > { %v1052_v55 = vpop.xlane.xlu1 %1051  ;;  %v1067_v5 = vmul.f32 1.442695, %v1061_v56 }
 0x658   : > { %v1060_v57 = vsub.f32 %v1035_v46, %v1052_v55  ;;  %v1049_v62 = vpop.xlane.xlu0 %1048  ;;  %v901_v46 = vsel %vm569_vm0, %v7032_v31, 0.0 }
 0x659   : > { %v1059_v63 = vsub.f32 %v1032_v43, %v1049_v62 }
 0x65a   : > { %v1065_v0 = vmul.f32 1.442695, %v1060_v57 }
 0x65b   : > { %v1063_v1 = vmul.f32 1.442695, %v1059_v63  ;;  %v1159_v11 = vpop.permute.xlu1 %1158 }
 0x65c   : > { %6374 = vpow2.f32 %v1065_v0  ;;  %v1058_v7 = vpop.xlane.xlu0 %1057  ;;  %v1169_v21 = vsel %vm633_vm1, %v1159_v11, 0 }
 0x65d   : > { %6376 = vpow2.f32 %v1063_v1  ;;  %v1062_v8 = vsub.f32 %v6059_v45, %v1058_v7  ;;  %v895_v45 = vsel %vm569_vm0, %v7028_v28, 0.0 }
 0x65e   : > { %6378 = vpow2.f32 %v1067_v5 }
 0x65f   : > { %v1069_v9 = vmul.f32 1.442695, %v1062_v8  ;;  %v1161_v22 = vpop.permute.xlu1 %1160 }
 0x660   : > { %v1092_v10 = vpop.permute.xlu0 %1091  ;;  %v1172_v23 = vsel %vm633_vm1, %v1161_v22, 0 }
 0x661   : > { %6380 = vpow2.f32 %v1069_v9  ;;  %6062 = vmatprep.subr.bf16.mxu0 %v1092_v10 }
 0x662   : > { %6063 = vmatpush3.bf16.msra.mxu0 %v1092_v10 }
 0x663   : > { %6186 = vmatprep.subr.msk.bf16.mxu0 %vm633_vm1, %v1159_v11  ;;  %v1157_v24 = vpop.permute.xlu1 %1156 }
 0x664   : > { %v1155_v20 = vpop.permute.xlu0 %1154 }
 0x666   : > { %v6375_v12 = vpop.eup %6374 }
 0x667   : > { %v6377_v13 = vpop.eup %6376  ;;  %v1074_v28 = vsel %vm569_vm0, %v6375_v12, 0.0 }
 0x668   : > { %v1087_v14 = vpack.c.bf16 %v6375_v12, %v6377_v13  ;;  %v6379_v15 = vpop.eup %6378  ;;  %v1071_v50 = vsel %vm569_vm0, %v6377_v13, 0.0 }
 0x66a   : > { %6064 = vmatprep.mubr.msk.bf16.mxu0 %vm569_vm0, %v1087_v14 }
 0x66b   : > { %v6381_v16 = vpop.eup %6380 }
 0x66c   : > { %v1088_v19 = vpack.c.bf16 %v6381_v16, %v6379_v15  ;;  %v1080_v31 = vsel %vm569_vm0, %v6381_v16, 0.0 }
 0x66e   : > { %6065 = vmatmul.mubr.msk.bf16.vlgmr.msra.gmra.mrb[12].mxu0 %vm569_vm0, %v1088_v19 }
 0x66f   : > { %6069 = vmatpush3.bf16.xpose.msra.mxu0 %v1169_v21  ;;  %6072 = vmatprep.mubr.msk.bf16.mxu0 %vm633_vm1, %v1155_v20  ;;  %v719_v21 = vsel %vm569_vm0, %v6988_v51, 0.0 }
 0x670   : > { %6187 = vmatprep.subr.msk.bf16.mxu0 %vm633_vm1, %v1161_v22  ;;  %v722_v22 = vsel %vm569_vm0, %v6990_v52, 0.0 }
 0x677   : > { %6071 = vmatpush3.bf16.xpose.msra.mxu0 %v1172_v23  ;;  %v725_v23 = vsel %vm569_vm0, %v6982_v47, 0.0 }
 0x67e   : > { %6073 = vmatmul.mubr.msk.bf16.vlgmr.msra.gmra.mrb[16].mxu0 %vm633_vm1, %v1157_v24  ;;  %v728_v24 = vsel %vm569_vm0, %v6984_v48, 0.0 }
 0x741   : > { %v7075_v25 = vpop.f32.mrb[12].mxu0 }
 0x742   : > { %v7077_v26 = vpop.f32.mrb[13].mxu0 }
 0x743   : > { %v7079_v29 = vpop.f32.mrb[14].mxu0 }
 0x744   : > { %v7081_v30 = vpop.f32.mrb[15].mxu0 }
 0x751   : > { %v6074_v33 = vpop.f32.mrb[16].mxu0 }
 0x752   : > { %v1208_v34 = vpop.f32.mrb[17].mxu0  ;;  %v1229_v35 = vsel %vm569_vm0, %v6074_v33, -inf }
 0x753   : > { %1230 = vmax.xlane.f32.xlu0 %v1229_v35  ;;  %v6075_v36 = vpop.f32.mrb[18].mxu0  ;;  %v1223_v43 = vsel %vm569_vm0, %v1208_v34, -inf }
 0x754   : > { %v1211_v37 = vpop.f32.mrb[19].mxu0  ;;  %v1232_v44 = vsel %vm569_vm0, %v6075_v36, -inf }
 0x755   : > { %v1226_v42 = vsel %vm569_vm0, %v1211_v37, -inf }
 0x756   : > { %1227 = vmax.xlane.f32.xlu1 %v1226_v42 }
 0x757   : > { %1224 = vmax.xlane.f32.xlu0 %v1223_v43 }
 0x75b   : > { %1233 = vmax.xlane.f32.xlu0 %v1232_v44 }
 0x767   : > { %1265 = vrot.lane.b32.xlu1 %v6949_v18, %s6687_s15  ;;  %v904_v18 = vsel %vm569_vm0, %v7035_v32, 0.0 }
 0x771   : > { %1267 = vrot.lane.b32.xlu0 %v6947_v17, %s6687_s15  ;;  %v1077_v17 = vsel %vm569_vm0, %v6379_v15, 0.0 }
 0x78b   : > { %896 = vadd.xlane.f32.xlu1 %v895_v45 }
 0x78f   : > { %902 = vadd.xlane.f32.xlu1 %v901_v46 }
 0x790   : > { %899 = vadd.xlane.f32.xlu0 %v898_v49 }
 0x793   : > { %1072 = vadd.xlane.f32.xlu1 %v1071_v50 }
 0x794   : > { %905 = vadd.xlane.f32.xlu0 %v904_v18 }
 0x797   : > { %1078 = vadd.xlane.f32.xlu1 %v1077_v17 }
 0x798   : > { %1075 = vadd.xlane.f32.xlu0 %v1074_v28 }
 0x79c   : > { %1081 = vadd.xlane.f32.xlu0 %v1080_v31 }
 0x7e0   : > { %v1231_v53 = vpop.xlane.xlu0 %1230 }
 0x7e1   : > { %v1237_v54 = vsub.f32 %v6074_v33, %v1231_v53 }
 0x7e3   : > { %v1228_v27 = vpop.xlane.xlu1 %1227  ;;  %v1243_v63 = vmul.f32 1.442695, %v1237_v54 }
 0x7e4   : > { %v1236_v55 = vsub.f32 %v1211_v37, %v1228_v27  ;;  %v1225_v56 = vpop.xlane.xlu0 %1224 }
 0x7e5   : > { %v1235_v57 = vsub.f32 %v1208_v34, %v1225_v56  ;;  %v6350_v56 = vld [vmem:[%s7976_s3] sm:$0xff]  }
 0x7e6   : > { %v1241_v62 = vmul.f32 1.442695, %v1236_v55 }
 0x7e7   : > { %v1239_v0 = vmul.f32 1.442695, %v1235_v57  ;;  %v1266_v32 = vpop.permute.xlu1 %1265 }
 0x7e8   : > { %6382 = vpow2.f32 %v1241_v62  ;;  %v1234_v1 = vpop.xlane.xlu0 %1233  ;;  %6076 = vmatprep.subr.bf16.mxu1 %v1266_v32 }
 0x7e9   : > { %6384 = vpow2.f32 %v1239_v0  ;;  %v1238_v5 = vsub.f32 %v6075_v36, %v1234_v1  ;;  %6077 = vmatpush3.bf16.msra.mxu1 %v1266_v32 }
 0x7ea   : > { %6386 = vpow2.f32 %v1243_v63 }
 0x7eb   : > { %v1245_v7 = vmul.f32 1.442695, %v1238_v5 }
 0x7ec   : > { %v1268_v8 = vpop.permute.xlu0 %1267 }
 0x7ed   : > { %6388 = vpow2.f32 %v1245_v7  ;;  %6078 = vmatprep.subr.bf16.mxu1 %v1268_v8 }
 0x7ee   : > { %6079 = vmatpush3.bf16.msra.mxu1 %v1268_v8 }
 0x7ef   : > { %6084 = vmatprep.subr.bf16.mxu1 %v6350_v56 }
 0x7f2   : > { %v6383_v9 = vpop.eup %6382 }
 0x7f3   : > { %v6385_v10 = vpop.eup %6384  ;;  %v1250_v11 = vsel %vm569_vm0, %v6383_v9, 0.0 }
 0x7f4   : > { %1251 = vadd.xlane.f32.xlu0 %v1250_v11  ;;  %v1247_v12 = vsel %vm569_vm0, %v6385_v10, 0.0  ;;  %v1263_v13 = vpack.c.bf16 %v6383_v9, %v6385_v10  ;;  %v6387_v14 = vpop.eup %6386 }
 0x7f5   : > { %1248 = vadd.xlane.f32.xlu1 %v1247_v12  ;;  %v1253_v16 = vsel %vm569_vm0, %v6387_v14, 0.0 }
 0x7f6   : > { %6080 = vmatprep.mubr.msk.bf16.mxu1 %vm569_vm0, %v1263_v13 }
 0x7f7   : > { %v6389_v15 = vpop.eup %6388 }
 0x7f8   : > { %v1256_v19 = vsel %vm569_vm0, %v6389_v15, 0.0  ;;  %v1264_v20 = vpack.c.bf16 %v6389_v15, %v6387_v14 }
 0x7f9   : > { %1254 = vadd.xlane.f32.xlu1 %v1253_v16  ;;  %1257 = vadd.xlane.f32.xlu0 %v1256_v19 }
 0x7fa   : > { %6081 = vmatmul.mubr.msk.bf16.vlgmr.msra.gmra.mrb[12].mxu1 %vm569_vm0, %v1264_v20 }
 0x7fb   : > { %6085 = vmatpush3.bf16.msra.mxu1 %v6350_v56 }
 0x7fd   : > { %720 = vadd.xlane.f32.xlu1 %v719_v21  ;;  %723 = vadd.xlane.f32.xlu0 %v722_v22 }
 0x801   : > { %726 = vadd.xlane.f32.xlu1 %v725_v23  ;;  %729 = vadd.xlane.f32.xlu0 %v728_v24 }
 0x818   : > { %v897_v33 = vpop.xlane.xlu1 %896 }
 0x819   : > { %6390 = vrcp.f32 %v897_v33 }
 0x81c   : > { %v903_v34 = vpop.xlane.xlu1 %902 }
 0x81d   : > { %v900_v35 = vpop.xlane.xlu0 %899 }
 0x81e   : > { %6392 = vrcp.f32 %v900_v35 }
 0x81f   : > { %6394 = vrcp.f32 %v903_v34 }
 0x820   : > { %v1073_v51 = vpop.xlane.xlu1 %1072 }
 0x821   : > { %v906_v36 = vpop.xlane.xlu0 %905 }
 0x822   : > { %6396 = vrcp.f32 %v906_v36 }
 0x823   : > { %6398 = vrcp.f32 %v1073_v51  ;;  %v6391_v42 = vpop.eup %6390 }
 0x824   : > { %v1079_v52 = vpop.xlane.xlu1 %1078  ;;  %v974_v48 = vmul.f32 %v6391_v42, %v7047_v39 }
 0x825   : > { %v1076_v37 = vpop.xlane.xlu0 %1075 }
 0x826   : > { %6400 = vrcp.f32 %v1076_v37 }
 0x827   : > { %6402 = vrcp.f32 %v1079_v52 }
 0x828   : > { %v6393_v47 = vpop.eup %6392 }
 0x829   : > { %v1082_v43 = vpop.xlane.xlu0 %1081  ;;  %v975_v44 = vmul.f32 %v6393_v47, %v7051_v41  ;;  %v6395_v45 = vpop.eup %6394 }
 0x82a   : > { %6404 = vrcp.f32 %v1082_v43  ;;  %v976_v50 = vmul.f32 %v6395_v45, %v7045_v38 }
 0x82b   : > { %v6288_v46 = vpack.i.bf16 %v975_v44, %v974_v48 }
 0x82c   : > { %v6397_v49 = vpop.eup %6396 }
 0x82d   : > { %6289 = vrot.lane.b32.xlu1 %v6288_v46, %s6688_s19  ;;  %v977_v18 = vmul.f32 %v6397_v49, %v7049_v40  ;;  %v6399_v17 = vpop.eup %6398 }
 0x82e   : > { %v1150_v39 = vmul.f32 %v6399_v17, %v7077_v26 }
 0x82f   : > { %v6293_v28 = vpack.i.bf16 %v977_v18, %v976_v50 }
 0x830   : > { %v6401_v31 = vpop.eup %6400 }
 0x831   : > { %6294 = vrot.lane.b32.xlu0 %v6293_v28, %s6688_s19  ;;  %v1151_v41 = vmul.f32 %v6401_v31, %v7081_v30  ;;  %v6403_v53 = vpop.eup %6402 }
 0x832   : > { %v1152_v55 = vmul.f32 %v6403_v53, %v7075_v25  ;;  %v6351_v25 = vld [vmem:[%s7976_s3 + $0x8] sm:$0xff]  }
 0x833   : > { %v6298_v54 = vpack.i.bf16 %v1151_v41, %v1150_v39  ;;  %6086 = vmatprep.subr.bf16.mxu1 %v6351_v25 }
 0x834   : > { %v6405_v27 = vpop.eup %6404  ;;  %6087 = vmatpush3.bf16.msra.mxu1 %v6351_v25 }
 0x835   : > { %6299 = vrot.lane.b32.xlu1 %v6298_v54, %s6689_s21  ;;  %v1153_v38 = vmul.f32 %v6405_v27, %v7079_v29 }
 0x837   : > { %v6303_v40 = vpack.i.bf16 %v1153_v38, %v1152_v55 }
 0x839   : > { %6304 = vrot.lane.b32.xlu1 %v6303_v40, %s6689_s21 }
 0x881   : > { %v1252_v26 = vpop.xlane.xlu0 %1251 }
 0x882   : > { %v1249_v30 = vpop.xlane.xlu1 %1248  ;;  %6406 = vrcp.f32 %v1252_v26 }
 0x886   : > { %v1258_v57 = vpop.xlane.xlu0 %1257  ;;  %v1255_v62 = vpop.xlane.xlu1 %1254 }
 0x887   : > { %6408 = vrcp.f32 %v1258_v57 }
 0x888   : > { %6410 = vrcp.f32 %v1255_v62  ;;  %v5700_v62 = vld [vmem:[#allocation2] ss:$0 sm:$0xff] }
 0x889   : > { %6412 = vrcp.f32 %v1249_v30 }
 0x88a   : > { %v721_v15 = vpop.xlane.xlu1 %720  ;;  %v724_v16 = vpop.xlane.xlu0 %723 }
 0x88b   : > { %6414 = vrcp.f32 %v724_v16 }
 0x88c   : > { %v6407_v29 = vpop.eup %6406  ;;  %6416 = vrcp.f32 %v721_v15 }
 0x88e   : > { %v727_v19 = vpop.xlane.xlu1 %726  ;;  %v730_v20 = vpop.xlane.xlu0 %729 }
 0x88f   : > { %6418 = vrcp.f32 %v730_v20 }
 0x890   : > { %6420 = vrcp.f32 %v727_v19 }
 0x891   : > { %v6409_v0 = vpop.eup %6408 }
 0x892   : > { %v6411_v1 = vpop.eup %6410 }
 0x893   : > { %v6413_v7 = vpop.eup %6412 }
 0x895   : > { %v6415_v23 = vpop.eup %6414 }
 0x896   : > { %v6417_v24 = vpop.eup %6416  ;;  %v799_v43 = vmul.f32 %v6415_v23, %v7007_v61 }
 0x897   : > { %v798_v47 = vmul.f32 %v6417_v24, %v7003_v59 }
 0x899   : > { %v6419_v34 = vpop.eup %6418 }
 0x89a   : > { %v6421_v51 = vpop.eup %6420  ;;  %v801_v45 = vmul.f32 %v6419_v34, %v7005_v60 }
 0x89b   : > { %v800_v46 = vmul.f32 %v6421_v51, %v7001_v58 }
 0x89f   : > { %v6290_v21 = vpop.permute.xlu1 %6289 }
 0x8a0   : > { %v6292_v36 = vunpack.i.h.bf16 %v6290_v21  ;;  %v6291_v52 = vunpack.i.l.bf16 %v6290_v21 }
 0x8a2   : > { %v1379_v18 = vsel %vm633_vm1, %v799_v43, %v6292_v36  ;;  %v1378_v17 = vsel %vm633_vm1, %v798_v47, %v6291_v52  ;;  %v1553_v43 = vld [vmem:[#allocation5] sm:$0xff] }
 0x8a3   : > { %v6295_v33 = vpop.permute.xlu0 %6294 }
 0x8a4   : > { %v6297_v37 = vunpack.i.h.bf16 %v6295_v33  ;;  %v6296_v42 = vunpack.i.l.bf16 %v6295_v33 }
 0x8a6   : > { %v1381_v31 = vsel %vm633_vm1, %v801_v45, %v6297_v37  ;;  %v1380_v59 = vsel %vm633_vm1, %v800_v46, %v6296_v42  ;;  %v1556_v46 = vld [vmem:[#allocation5 + $0x48] sm:$0xff] }
 0x8a7   : > { %v6300_v22 = vpop.permute.xlu1 %6299 }
 0x8a8   : > { %v6302_v49 = vunpack.i.h.bf16 %v6300_v22  ;;  %v6301_v50 = vunpack.i.l.bf16 %v6300_v22 }
 0x8aa   : > { %v1383_v27 = vsel %vm1382_vm2, %v1378_v17, %v6301_v50  ;;  %v1384_v55 = vsel %vm1382_vm2, %v1379_v18, %v6302_v49  ;;  %v1557_v17 = vld [vmem:[#allocation5 + $0x80] sm:$0xff] }
 0x8ab   : > { %v6305_v35 = vpop.permute.xlu1 %6304 }
 0x8ac   : > { %v6307_v48 = vunpack.i.h.bf16 %v6305_v35  ;;  %v6306_v44 = vunpack.i.l.bf16 %v6305_v35 }
 0x8ae   : > { %v1386_v60 = vsel %vm1382_vm2, %v1381_v31, %v6307_v48  ;;  %v1385_v58 = vsel %vm1382_vm2, %v1380_v59, %v6306_v44  ;;  %v1555_v48 = vld [vmem:[#allocation5 + $0x40] sm:$0xff]  ;;  %v1554_v44 = vld [vmem:[#allocation5 + $0x8] sm:$0xff] }
 0x8af   : > { %v5708_v45 = vcombine.high %v1553_v43, %v1555_v48  ;;  %v5707_v49 = vcombine.low %v1553_v43, %v1555_v48  ;;  %v5709_v50 = vcombine.low %v1554_v44, %v1556_v46  ;;  %v5710_v18 = vcombine.high %v1554_v44, %v1556_v46  ;;  %v1558_v31 = vld [vmem:[#allocation5 + $0x88] sm:$0xff]  ;;  %v1967_v48 = vld [vmem:[#allocation7 + $0x10] sm:$0xff] }
 0x8b0   : > { %v1969_v44 = vld [vmem:[#allocation7 + $0x50] sm:$0xff] }
 0x8b1   : > { %1629 = vmatprep.subr.bf16.mxu0 %v5708_v45  ;;  %1682 = vmatprep.subr.bf16.mxu1 %v5710_v18  ;;  %v1968_v45 = vld [vmem:[#allocation7 + $0x18] sm:$0xff]  ;;  %v5732_v46 = vcombine.high %v1967_v48, %v1969_v44 }
 0x8b2   : > { %1630 = vmatpush1.bf16.msra.mxu0 %v5707_v49  ;;  %v1970_v49 = vld [vmem:[#allocation7 + $0x58] sm:$0xff] }
 0x8b3   : > { %v5733_v18 = vcombine.low %v1968_v45, %v1970_v49 }
 0x8cd   : > { %v6082_v63 = vpop.f32.mrb[12].mxu1 }
 0x8ce   : > { %v1311_v32 = vpop.f32.mrb[13].mxu1  ;;  %v1328_v8 = vmul.f32 %v6411_v1, %v6082_v63 }
 0x8cf   : > { %v6083_v5 = vpop.f32.mrb[14].mxu1  ;;  %v1326_v11 = vmul.f32 %v6413_v7, %v1311_v32 }
 0x8d0   : > { %v1329_v9 = vmul.f32 %v6409_v0, %v6083_v5  ;;  %v1314_v10 = vpop.f32.mrb[15].mxu1 }
 0x8d1   : > { %v1327_v12 = vmul.f32 %v6407_v29, %v1314_v10 }
 0x8d2   : > { %v6313_v13 = vpack.i.bf16 %v1329_v9, %v1328_v8 }
 0x8d3   : > { %v6308_v14 = vpack.i.bf16 %v1327_v12, %v1326_v11 }
 0x8d4   : > { %6314 = vrot.lane.b32.xlu1 %v6313_v13, %s8004_s24 }
 0x8d5   : > { %6309 = vrot.lane.b32.xlu0 %v6308_v14, %s8004_s24 }
 0x946   : > { %v6315_v28 = vpop.permute.xlu1 %6314 }
 0x947   : > { %v6317_v61 = vunpack.i.h.bf16 %v6315_v28  ;;  %v6316_v39 = vunpack.i.l.bf16 %v6315_v28  ;;  %v6310_v41 = vpop.permute.xlu0 %6309  ;;  %v1559_v28 = vld [vmem:[#allocation5 + $0xc0] sm:$0xff] }
 0x948   : > { %v6312_v53 = vunpack.i.h.bf16 %v6310_v41  ;;  %v6311_v54 = vunpack.i.l.bf16 %v6310_v41  ;;  %v5712_v59 = vcombine.high %v1557_v17, %v1559_v28 }
 0x949   : > { %v1390_v38 = vsel %vm1387_vm3, %v1385_v58, %v6316_v39  ;;  %v1391_v40 = vsel %vm1387_vm3, %v1386_v60, %v6317_v61  ;;  %v1560_v61 = vld [vmem:[#allocation5 + $0xc8] sm:$0xff]  ;;  %v5711_v39 = vcombine.low %v1557_v17, %v1559_v28  ;;  %v6691_v58 = vmov 0   ;;  %v1971_v28 = vld [vmem:[#allocation7 + $0x90] sm:$0xff] }
 0x94a   : > { %v1393_v56 = vpack.c.bf16 %v1391_v40, %v1390_v38  ;;  %v1388_v26 = vsel %vm1387_vm3, %v1383_v27, %v6311_v54  ;;  %v1389_v30 = vsel %vm1387_vm3, %v1384_v55, %v6312_v53  ;;  %v5713_v41 = vcombine.low %v1558_v31, %v1560_v61  ;;  %1631 = vmatprep.subr.bf16.mxu0 %v5712_v59  ;;  %v1767_v53 = vld [vmem:[#allocation5 + $0x10] sm:$0xff]  ;;  %v1768_v27 = vld [vmem:[#allocation5 + $0x18] sm:$0xff] }
 0x94b   : > { %v1392_v57 = vpack.c.bf16 %v1389_v30, %v1388_v26  ;;  %v5714_v60 = vcombine.high %v1558_v31, %v1560_v61  ;;  %1632 = vmatpush1.bf16.msra.mxu0 %v5711_v39  ;;  %1661 = vmatprep.mubr.bf16.mxu0 %v6691_v58  ;;  %v1769_v54 = vld [vmem:[#allocation5 + $0x50] sm:$0xff]  ;;  %v1770_v40 = vld [vmem:[#allocation5 + $0x58] sm:$0xff]  ;;  %v5734_v17 = vcombine.high %v1968_v45, %v1970_v49 }
 0x94c   : > { %v5719_v55 = vcombine.low %v1767_v53, %v1769_v54  ;;  %v5720_v38 = vcombine.high %v1767_v53, %v1769_v54  ;;  %v5722_v26 = vcombine.high %v1768_v27, %v1770_v40  ;;  %v1973_v31 = vld [vmem:[#allocation7 + $0xd0] sm:$0xff]  ;;  %v1972_v59 = vld [vmem:[#allocation7 + $0x98] sm:$0xff]  ;;  %v7233_v54 = vld [vmem:[#allocation7] sm:$0xff] }
 0x94d   : > { %6088 = vmatprep.mubr.msk.bf16.mxu1 %vm569_vm0, %v1392_v57  ;;  %v5736_v61 = vcombine.high %v1971_v28, %v1973_v31  ;;  %v1974_v39 = vld [vmem:[#allocation7 + $0xd8] sm:$0xff] }
 0x94e   : > { %6089 = vmatmul.mubr.msk.bf16.vlgmr.msra.gmra.mrb[16].mxu1 %vm569_vm0, %v1393_v56  ;;  %v5721_v56 = vcombine.low %v1768_v27, %v1770_v40  ;;  %1837 = vmatprep.subr.bf16.mxu0 %v5720_v38  ;;  %v5738_v53 = vcombine.high %v1972_v59, %v1974_v39  ;;  %v7235_v27 = vld [vmem:[#allocation7 + $0x40] sm:$0xff]  ;;  %v7241_v40 = vld [vmem:[#allocation7 + $0x48] sm:$0xff] }
 0x94f   : > { %1683 = vmatpush1.bf16.msra.mxu1 %v5709_v50  ;;  %1714 = vmatprep.mubr.bf16.mxu1 %v6691_v58  ;;  %v5731_v50 = vcombine.low %v1967_v48, %v1969_v44  ;;  %v5740_v38 = vcombine.high %v7233_v54, %v7235_v27 }
 0x950   : > { %1684 = vmatprep.subr.bf16.mxu1 %v5714_v60  ;;  %v5737_v60 = vcombine.low %v1972_v59, %v1974_v39 }
 0x953   : > { %1685 = vmatpush1.bf16.msra.mxu1 %v5713_v41  ;;  %v5735_v41 = vcombine.low %v1971_v28, %v1973_v31  ;;  %v1775_v28 = vld [vmem:[%s7979_s6 + $0x4] sm:$0xf] }
 0x954   : > { %1890 = vmatprep.subr.bf16.mxu1 %v5722_v26 }
 0xa21   : > { %v6090_v25 = vpop.f32.mrb[16].mxu1 }
 0xa22   : > { %v1457_v29 = vpop.f32.mrb[17].mxu1  ;;  %v1466_v63 = vadd.f32 %v6090_v25, %v5700_v62 }
 0xa23   : > { %v1458_v0 = vadd.f32 %v5700_v62, %v1457_v29  ;;  %v6091_v32 = vpop.f32.mrb[18].mxu1 }
 0xa24   : > { %v1460_v1 = vpop.f32.mrb[19].mxu1  ;;  %v1469_v8 = vadd.f32 %v6091_v32, %v5700_v62  ;;  %v1474_v11 = vadd.f32 %v1466_v63, %v6934_v4 }
 0xa25   : > { %v1461_v5 = vadd.f32 %v5700_v62, %v1460_v1  ;;  %v1472_v7 = vadd.f32 %v1458_v0, %v6930_v2 }
 0xa26   : > { %v1482_v13 = vsel %vm569_vm0, %v1474_v11, 0.0  ;;  %v1475_v14 = vadd.f32 %v1469_v8, %v6938_v6 }
 0xa27   : > { %v1476_v9 = vsel %vm569_vm0, %v1472_v7, 0.0  ;;  %v1473_v10 = vadd.f32 %v1461_v5, %v6932_v3 }
 0xa28   : > { %1477 = vadd.xlane.f32.xlu0 %v1476_v9  ;;  %v1485_v15 = vsel %vm569_vm0, %v1475_v14, 0.0 }
 0xa29   : > { %v1479_v12 = vsel %vm569_vm0, %v1473_v10, 0.0 }
 0xa2a   : > { %1480 = vadd.xlane.f32.xlu1 %v1479_v12 }
 0xa2c   : > { %1483 = vadd.xlane.f32.xlu0 %v1482_v13 }
 0xa30   : > { %1486 = vadd.xlane.f32.xlu0 %v1485_v15 }
 0xab5   : > { %v1478_v2 = vpop.xlane.xlu0 %1477 }
 0xab6   : > { %v1489_v16 = vmul.f32 0.03125, %v1478_v2  ;;  %v5706_v2 = vld [vmem:[%s7983_s10] ss:$0 sm:$0xff] }
 0xab7   : > { %v1481_v19 = vpop.xlane.xlu1 %1480 }
 0xab8   : > { %v7163_v20 = vsub.f32 %v1472_v7, %v1489_v16  ;;  %v1490_v3 = vmul.f32 0.03125, %v1481_v19  ;;  %v1771_v19 = vld [vmem:[#allocation5 + $0x90] sm:$0xff] }
 0xab9   : > { %v1484_v21 = vpop.xlane.xlu0 %1483 }
 0xaba   : > { %v7165_v4 = vsub.f32 %v1473_v10, %v1490_v3  ;;  %v1491_v22 = vmul.f32 0.03125, %v1484_v21  ;;  %v1497_v23 = vmul.f32 %v7163_v20, %v7163_v20  ;;  %v5705_v10 = vld [vmem:[%s7982_s9] ss:$0 sm:$0xff] }
 0xabc   : > { %v7169_v24 = vsub.f32 %v1474_v11, %v1491_v22  ;;  %v1501_v6 = vsel %vm569_vm0, %v1497_v23, 0.0  ;;  %v1498_v33 = vmul.f32 %v7165_v4, %v7165_v4  ;;  %v1773_v23 = vld [vmem:[#allocation5 + $0xd0] sm:$0xff] }
 0xabd   : > { %1502 = vadd.xlane.f32.xlu1 %v1501_v6  ;;  %v1487_v34 = vpop.xlane.xlu0 %1486  ;;  %v1772_v6 = vld [vmem:[#allocation5 + $0x98] sm:$0xff] }
 0xabe   : > { %v1492_v35 = vmul.f32 0.03125, %v1487_v34  ;;  %v1504_v51 = vsel %vm569_vm0, %v1498_v33, 0.0  ;;  %v1499_v36 = vmul.f32 %v7169_v24, %v7169_v24 }
 0xabf   : > { %1505 = vadd.xlane.f32.xlu0 %v1504_v51 }
 0xac0   : > { %v7177_v52 = vsub.f32 %v1475_v14, %v1492_v35  ;;  %v1507_v37 = vsel %vm569_vm0, %v1499_v36, 0.0  ;;  %v5724_v35 = vcombine.high %v1771_v19, %v1773_v23 }
 0xac1   : > { %1508 = vadd.xlane.f32.xlu1 %v1507_v37 }
 0xac2   : > { %v1500_v42 = vmul.f32 %v7177_v52, %v7177_v52 }
 0xac4   : > { %v1510_v47 = vsel %vm569_vm0, %v1500_v42, 0.0 }
 0xac5   : > { %1511 = vadd.xlane.f32.xlu0 %v1510_v47 }
 0xb4a   : > { %v1503_v30 = vpop.xlane.xlu1 %1502 }
 0xb4b   : > { %v1513_v57 = vmul.f32 0.03125, %v1503_v30 }
 0xb4c   : > { %v1506_v62 = vpop.xlane.xlu0 %1505 }
 0xb4d   : > { %v1517_v25 = vadd.f32 1e-05, %v1513_v57  ;;  %v1514_v29 = vmul.f32 0.03125, %v1506_v62  ;;  %v1563_v57 = vlaneseq }
 0xb4e   : > { %v1509_v63 = vpop.xlane.xlu1 %1508 }
 0xb4f   : > { %6422 = vrsqrt.f32 %v1517_v25  ;;  %v1518_v0 = vadd.f32 1e-05, %v1514_v29  ;;  %v1515_v32 = vmul.f32 0.03125, %v1509_v63  ;;  %v1564_v62 = vshrl.u32 %v1563_v57, 7  ;;  %v1561_v63 = vld [vmem:[%s7979_s6] sm:$0xf] }
 0xb51   : > { %6424 = vrsqrt.f32 %v1518_v0  ;;  %v1519_v1 = vadd.f32 1e-05, %v1515_v32  ;;  %v7249_v25 = vsub.s32 0, %v1564_v62  ;;  %v7251_v29 = vsub.s32 2, %v1564_v62 }
 0xb52   : > { %v1512_v5 = vpop.xlane.xlu0 %1511  ;;  %v7256_v0 = vsub.s32 1, %v1564_v62  ;;  %v7258_v32 = vsub.s32 3, %v1564_v62 }
 0xb53   : > { %6426 = vrsqrt.f32 %v1519_v1  ;;  %v1516_v7 = vmul.f32 0.03125, %v1512_v5  ;;  %v1566_v1 = vrot.slane %v1561_v63, %v7249_v25  ;;  %v1574_v5 = vrot.slane %v1561_v63, %v7251_v29 }
 0xb55   : > { %v1520_v8 = vadd.f32 1e-05, %v1516_v7  ;;  %v1570_v7 = vrot.slane %v1561_v63, %v7256_v0 }
 0xb57   : > { %6428 = vrsqrt.f32 %v1520_v8  ;;  %v1578_v8 = vrot.slane %v1561_v63, %v7258_v32 }
 0xb59   : > { %v6423_v9 = vpop.eup %6422 }
 0xb5a   : > { %v1525_v11 = vmul.f32 %v6423_v9, %v7163_v20  ;;  %v1774_v20 = vld [vmem:[#allocation5 + $0xd8] sm:$0xff] }
 0xb5b   : > { %v6425_v12 = vpop.eup %6424  ;;  %v5726_v51 = vcombine.high %v1772_v6, %v1774_v20  ;;  %v5725_v42 = vcombine.low %v1772_v6, %v1774_v20 }
 0xb5c   : > { %v1536_v13 = vmul.f32 %v5705_v10, %v1525_v11  ;;  %v1526_v14 = vmul.f32 %v6425_v12, %v7165_v4 }
 0xb5d   : > { %v6427_v15 = vpop.eup %6426 }
 0xb5e   : > { %v1537_v16 = vmul.f32 %v5705_v10, %v1526_v14  ;;  %v7193_v3 = vadd.f32 %v5706_v2, %v1536_v13  ;;  %v1527_v22 = vmul.f32 %v6427_v15, %v7169_v24  ;;  %v5723_v24 = vcombine.low %v1771_v19, %v1773_v23 }
 0xb60   : > { %v7195_v21 = vadd.f32 %v5706_v2, %v1537_v16  ;;  %v1538_v36 = vmul.f32 %v5705_v10, %v1527_v22 }
 0xb61   : > { %v6429_v33 = vpop.eup %6428 }
 0xb62   : > { %v7200_v4 = vpack.c.bf16 %v7195_v21, %v7193_v3  ;;  %v1528_v34 = vmul.f32 %v6429_v33, %v7177_v52  ;;  %v7211_v52 = vadd.f32 %v5706_v2, %v1538_v36 }
 0xb64   : > { %v1539_v37 = vmul.f32 %v5705_v10, %v1528_v34  ;;  %5715 = vmatmul.mubr.msk.bf16.vlgmr.msra.gmra.mrb[20].mxu0 %vm569_vm0, %v7200_v4  ;;  %5717 = vmatmul.mubr.msk.bf16.vlgmr.msra.gmra.mrb[20].mxu1 %vm569_vm0, %v7200_v4 }
 0xb65   : > { %1838 = vmatpush1.bf16.msra.mxu0 %v5719_v55  ;;  %1891 = vmatpush1.bf16.msra.mxu1 %v5721_v56  ;;  %v7237_v55 = vld [vmem:[#allocation7 + $0x8] sm:$0xff]  ;;  %v5739_v56 = vcombine.low %v7233_v54, %v7235_v27 }
 0xb66   : > { %v7207_v47 = vadd.f32 %v5706_v2, %v1539_v37  ;;  %1671 = vmatprep.mubr.bf16.mxu0 %v6691_v58  ;;  %1724 = vmatprep.mubr.bf16.mxu1 %v6691_v58  ;;  %v5741_v26 = vcombine.low %v7237_v55, %v7241_v40  ;;  %v5742_v30 = vcombine.high %v7237_v55, %v7241_v40  ;;  %v2252_v54 = vld [vmem:[#allocation5 + $0x28] sm:$0xff] }
 0xb67   : > { %1839 = vmatprep.subr.bf16.mxu0 %v5724_v35  ;;  %1892 = vmatprep.subr.bf16.mxu1 %v5726_v51  ;;  %v2254_v27 = vld [vmem:[#allocation5 + $0x68] sm:$0xff] }
 0xb68   : > { %v7215_v43 = vpack.c.bf16 %v7207_v47, %v7211_v52 }
 0xb69   : > { %1840 = vmatpush1.bf16.msra.mxu0 %v5723_v24  ;;  %1893 = vmatpush1.bf16.msra.mxu1 %v5725_v42 }
 0xb6a   : > { %2015 = vmatprep.subr.bf16.mxu0 %v5732_v46  ;;  %2064 = vmatprep.subr.bf16.mxu1 %v5734_v17 }
 0xb6c   : > { %5716 = vmatmul.mubr.msk.bf16.gmra.mrb[24].mxu0 %vm569_vm0, %v7215_v43  ;;  %5718 = vmatmul.mubr.msk.bf16.gmra.mrb[24].mxu1 %vm569_vm0, %v7215_v43 }
 0xb6d   : > { %1869 = vmatprep.mubr.bf16.mxu0 %v6691_v58  ;;  %1922 = vmatprep.mubr.bf16.mxu1 %v6691_v58 }
 0xb74   : > { %5727 = vmatmul.mubr.msk.bf16.vlgmr.msra.gmra.mrb[28].mxu0 %vm569_vm0, %v7200_v4  ;;  %5729 = vmatmul.mubr.msk.bf16.vlgmr.msra.gmra.mrb[28].mxu1 %vm569_vm0, %v7200_v4 }
 0xb75   : > { %1879 = vmatprep.mubr.bf16.mxu0 %v6691_v58  ;;  %1932 = vmatprep.mubr.bf16.mxu1 %v6691_v58 }
 0xb76   : > { %2016 = vmatpush1.bf16.xpose.msra.mxu0 %v5731_v50  ;;  %2065 = vmatpush1.bf16.xpose.msra.mxu1 %v5733_v18 }
 0xb77   : > { %2017 = vmatprep.subr.bf16.mxu0 %v5736_v61  ;;  %2066 = vmatprep.subr.bf16.mxu1 %v5738_v53 }
 0xb7c   : > { %5728 = vmatmul.mubr.msk.bf16.gmra.mrb[32].mxu0 %vm569_vm0, %v7215_v43  ;;  %5730 = vmatmul.mubr.msk.bf16.gmra.mrb[32].mxu1 %vm569_vm0, %v7215_v43 }
 0xb7e   : > { %2018 = vmatpush1.bf16.xpose.msra.mxu0 %v5735_v41  ;;  %2067 = vmatpush1.bf16.xpose.msra.mxu1 %v5737_v60 }
 0xb7f   : > { %2153 = vmatprep.subr.bf16.mxu0 %v5740_v38  ;;  %2202 = vmatprep.subr.bf16.mxu1 %v5742_v30 }
 0xc37   : > { %v1663_v9 = vpop.f32.mrb[20].mxu0  ;;  %v1716_v10 = vpop.f32.mrb[20].mxu1 }
 0xc38   : > { %v1664_v11 = vadd.f32 %v1663_v9, %v1566_v1  ;;  %v1717_v12 = vadd.f32 %v1716_v10, %v1574_v5  ;;  %v1665_v13 = vpop.f32.mrb[21].mxu0  ;;  %v1718_v14 = vpop.f32.mrb[21].mxu1  ;;  %v7276_v9 = vrot.slane %v1775_v28, %v7249_v25  ;;  %v7279_v10 = vrot.slane %v1775_v28, %v7251_v29 }
 0xc39   : > { %v1666_v15 = vadd.f32 %v1665_v13, %v1570_v7  ;;  %v1719_v2 = vadd.f32 %v1718_v14, %v1578_v8  ;;  %v1667_v16 = vpop.f32.mrb[22].mxu0  ;;  %v1720_v19 = vpop.f32.mrb[22].mxu1  ;;  %v7282_v13 = vrot.slane %v1775_v28, %v7256_v0  ;;  %v7285_v14 = vrot.slane %v1775_v28, %v7258_v32 }
 0xc3a   : > { %v1668_v22 = vadd.f32 %v1667_v16, %v1566_v1  ;;  %v1721_v23 = vadd.f32 %v1720_v19, %v1574_v5  ;;  %v1669_v6 = vpop.f32.mrb[23].mxu0  ;;  %v1722_v20 = vpop.f32.mrb[23].mxu1  ;;  %v1735_v35 = vmax.f32 %v1664_v11, 0.0  ;;  %v1737_v51 = vmax.f32 %v1717_v12, 0.0 }
 0xc3b   : > { %v1670_v33 = vadd.f32 %v1669_v6, %v1570_v7  ;;  %v1723_v34 = vadd.f32 %v1722_v20, %v1578_v8  ;;  %v1736_v24 = vmax.f32 %v1666_v15, 0.0  ;;  %v1738_v42 = vmax.f32 %v1719_v2, 0.0 }
 0xc3c   : > { %v1739_v36 = vmax.f32 %v1668_v22, 0.0  ;;  %v1741_v37 = vmax.f32 %v1721_v23, 0.0 }
 0xc3d   : > { %v1740_v48 = vmax.f32 %v1670_v33, 0.0  ;;  %v1742_v44 = vmax.f32 %v1723_v34, 0.0 }
 0xc3e   : > { %v7264_v45 = vpack.c.bf16 %v1739_v36, %v1735_v35  ;;  %v7266_v46 = vpack.c.bf16 %v1741_v37, %v1737_v51 }
 0xc3f   : > { %v7268_v49 = vpack.c.bf16 %v1740_v48, %v1736_v24  ;;  %v7270_v50 = vpack.c.bf16 %v1742_v44, %v1738_v42  ;;  %v1673_v18 = vpop.f32.mrb[24].mxu0  ;;  %v1726_v17 = vpop.f32.mrb[24].mxu1 }
 0xc40   : > { %v1674_v31 = vadd.f32 %v1673_v18, %v1566_v1  ;;  %v1727_v59 = vadd.f32 %v1726_v17, %v1574_v5  ;;  %v1675_v61 = vpop.f32.mrb[25].mxu0  ;;  %v1728_v39 = vpop.f32.mrb[25].mxu1 }
 0xc41   : > { %v1676_v41 = vadd.f32 %v1675_v61, %v1570_v7  ;;  %v1729_v60 = vadd.f32 %v1728_v39, %v1578_v8  ;;  %v1677_v53 = vpop.f32.mrb[26].mxu0  ;;  %v1730_v38 = vpop.f32.mrb[26].mxu1 }
 0xc42   : > { %v1678_v30 = vadd.f32 %v1677_v53, %v1566_v1  ;;  %v1731_v57 = vadd.f32 %v1730_v38, %v1574_v5  ;;  %v1679_v62 = vpop.f32.mrb[27].mxu0  ;;  %v1732_v63 = vpop.f32.mrb[27].mxu1  ;;  %v1743_v15 = vmax.f32 %v1674_v31, 0.0  ;;  %v1745_v2 = vmax.f32 %v1727_v59, 0.0  ;;  %v1763_v38 = vld [vmem:[#allocation7 + $0x80] sm:$0xff] }
 0xc43   : > { %v1680_v11 = vadd.f32 %v1679_v62, %v1570_v7  ;;  %v1733_v12 = vadd.f32 %v1732_v63, %v1578_v8  ;;  %v1744_v16 = vmax.f32 %v1676_v41, 0.0  ;;  %v1746_v19 = vmax.f32 %v1729_v60, 0.0 }
 0xc44   : > { %v1747_v1 = vmax.f32 %v1678_v30, 0.0  ;;  %v1749_v5 = vmax.f32 %v1731_v57, 0.0  ;;  %v1765_v30 = vld [vmem:[#allocation7 + $0xc0] sm:$0xff] }
 0xc45   : > { %v1748_v22 = vmax.f32 %v1680_v11, 0.0  ;;  %v1750_v23 = vmax.f32 %v1733_v12, 0.0  ;;  %v1764_v12 = vld [vmem:[#allocation7 + $0x88] sm:$0xff]  ;;  %v5743_v55 = vcombine.low %v1763_v38, %v1765_v30 }
 0xc46   : > { %v7287_v6 = vpack.c.bf16 %v1747_v1, %v1743_v15  ;;  %v7289_v20 = vpack.c.bf16 %v1749_v5, %v1745_v2  ;;  %v1766_v15 = vld [vmem:[#allocation7 + $0xc8] sm:$0xff] }
 0xc47   : > { %v7291_v7 = vpack.c.bf16 %v1748_v22, %v1744_v16  ;;  %v7293_v8 = vpack.c.bf16 %v1750_v23, %v1746_v19  ;;  %v1871_v33 = vpop.f32.mrb[28].mxu0  ;;  %v1924_v34 = vpop.f32.mrb[28].mxu1  ;;  %v5745_v40 = vcombine.low %v1764_v12, %v1766_v15 }
 0xc48   : > { %v1872_v35 = vadd.f32 %v1871_v33, %v7276_v9  ;;  %v1925_v51 = vadd.f32 %v1924_v34, %v7279_v10  ;;  %v1873_v36 = vpop.f32.mrb[29].mxu0  ;;  %v1926_v37 = vpop.f32.mrb[29].mxu1 }
 0xc49   : > { %v1874_v24 = vadd.f32 %v1873_v36, %v7282_v13  ;;  %v1927_v42 = vadd.f32 %v1926_v37, %v7285_v14  ;;  %v1875_v48 = vpop.f32.mrb[30].mxu0  ;;  %v1928_v44 = vpop.f32.mrb[30].mxu1  ;;  %v5746_v36 = vcombine.high %v1764_v12, %v1766_v15 }
 0xc4a   : > { %v1876_v18 = vadd.f32 %v1875_v48, %v7276_v9  ;;  %v1929_v17 = vadd.f32 %v1928_v44, %v7279_v10  ;;  %v1877_v28 = vpop.f32.mrb[31].mxu0  ;;  %v1930_v31 = vpop.f32.mrb[31].mxu1  ;;  %v1943_v39 = vmax.f32 %v1872_v35, 0.0  ;;  %v1945_v41 = vmax.f32 %v1925_v51, 0.0 }
 0xc4b   : > { %v1878_v59 = vadd.f32 %v1877_v28, %v7282_v13  ;;  %v1931_v61 = vadd.f32 %v1930_v31, %v7285_v14  ;;  %v1944_v57 = vmax.f32 %v1874_v24, 0.0  ;;  %v1946_v62 = vmax.f32 %v1927_v42, 0.0 }
 0xc4c   : > { %v1947_v60 = vmax.f32 %v1876_v18, 0.0  ;;  %v1949_v53 = vmax.f32 %v1929_v17, 0.0  ;;  %v5744_v51 = vcombine.high %v1763_v38, %v1765_v30  ;;  %v5749_v30 = vcombine.low %v2252_v54, %v2254_v27 }
 0xc4d   : > { %v1948_v63 = vmax.f32 %v1878_v59, 0.0  ;;  %v1950_v11 = vmax.f32 %v1931_v61, 0.0 }
 0xc4e   : > { %v1959_v2 = vpack.c.bf16 %v1947_v60, %v1943_v39  ;;  %v1961_v1 = vpack.c.bf16 %v1949_v53, %v1945_v41 }
 0xc4f   : > { %v1960_v5 = vpack.c.bf16 %v1948_v63, %v1944_v57  ;;  %v1962_v16 = vpack.c.bf16 %v1950_v11, %v1946_v62  ;;  %v1881_v19 = vpop.f32.mrb[32].mxu0  ;;  %v1934_v22 = vpop.f32.mrb[32].mxu1  ;;  %v2251_v57 = vld [vmem:[#allocation5 + $0x20] sm:$0xff] }
 0xc50   : > { %v1882_v23 = vadd.f32 %v1881_v19, %v7276_v9  ;;  %v1935_v33 = vadd.f32 %v1934_v22, %v7279_v10  ;;  %v1883_v34 = vpop.f32.mrb[33].mxu0  ;;  %v1936_v35 = vpop.f32.mrb[33].mxu1  ;;  %v2253_v63 = vld [vmem:[#allocation5 + $0x60] sm:$0xff]  ;;  %v2258_v19 = vld [vmem:[#allocation5 + $0xe8] sm:$0xff] }
 0xc51   : > { %v1884_v37 = vadd.f32 %v1883_v34, %v7282_v13  ;;  %v1937_v24 = vadd.f32 %v1936_v35, %v7285_v14  ;;  %v1885_v42 = vpop.f32.mrb[34].mxu0  ;;  %v1938_v48 = vpop.f32.mrb[34].mxu1  ;;  %2047 = vmatprep.mubr.bf16.mxu0 %v1960_v5  ;;  %2096 = vmatprep.mubr.bf16.mxu1 %v1962_v16  ;;  %v2257_v5 = vld [vmem:[#allocation5 + $0xe0] sm:$0xff]  ;;  %v2256_v16 = vld [vmem:[#allocation5 + $0xa8] sm:$0xff]  ;;  %v5747_v38 = vcombine.low %v2251_v57, %v2253_v63 }
 0xc52   : > { %v1886_v44 = vadd.f32 %v1885_v42, %v7276_v9  ;;  %v1939_v18 = vadd.f32 %v1938_v48, %v7279_v10  ;;  %v1887_v17 = vpop.f32.mrb[35].mxu0  ;;  %v1940_v28 = vpop.f32.mrb[35].mxu1  ;;  %2048 = vmatmul.mubr.bf16.vlgmr.msra.gmra.mrb[36].mxu0 %v1959_v2  ;;  %2097 = vmatmul.mubr.bf16.vlgmr.msra.gmra.mrb[36].mxu1 %v1961_v1  ;;  %v1951_v61 = vmax.f32 %v1882_v23, 0.0  ;;  %v1953_v9 = vmax.f32 %v1935_v33, 0.0  ;;  %v2255_v1 = vld [vmem:[#allocation5 + $0xa0] sm:$0xff]  ;;  %v2456_v35 = vld [vmem:[#allocation7 + $0xa8] sm:$0xff] }
 0xc53   : > { %v1888_v31 = vadd.f32 %v1887_v17, %v7282_v13  ;;  %v1941_v59 = vadd.f32 %v1940_v28, %v7285_v14  ;;  %2154 = vmatpush1.bf16.xpose.msra.mxu0 %v5739_v56  ;;  %2203 = vmatpush1.bf16.xpose.msra.mxu1 %v5741_v26  ;;  %v1952_v41 = vmax.f32 %v1884_v37, 0.0  ;;  %v1954_v60 = vmax.f32 %v1937_v24, 0.0  ;;  %v2455_v33 = vld [vmem:[#allocation7 + $0xa0] sm:$0xff]  ;;  %v7337_v48 = vld [vmem:[#allocation5 + $0x30] sm:$0xff] }
 0xc54   : > { %v1955_v39 = vmax.f32 %v1886_v44, 0.0  ;;  %v1957_v10 = vmax.f32 %v1939_v18, 0.0  ;;  %2155 = vmatprep.subr.bf16.mxu0 %v5744_v51  ;;  %2204 = vmatprep.subr.bf16.mxu1 %v5746_v36  ;;  %v5748_v26 = vcombine.high %v2251_v57, %v2253_v63  ;;  %v5750_v2 = vcombine.high %v2252_v54, %v2254_v27  ;;  %v2457_v34 = vld [vmem:[#allocation7 + $0xe0] sm:$0xff]  ;;  %v2458_v36 = vld [vmem:[#allocation7 + $0xe8] sm:$0xff]  ;;  %v7339_v44 = vld [vmem:[#allocation5 + $0x70] sm:$0xff] }
 0xc55   : > { %v1956_v53 = vmax.f32 %v1888_v31, 0.0  ;;  %v1958_v13 = vmax.f32 %v1941_v59, 0.0  ;;  %v5752_v12 = vcombine.high %v2255_v1, %v2257_v5  ;;  %v5754_v15 = vcombine.high %v2256_v16, %v2258_v19  ;;  %v7341_v18 = vld [vmem:[#allocation5 + $0x38] sm:$0xff] }
 0xc56   : > { %v1963_v14 = vpack.c.bf16 %v1955_v39, %v1951_v61  ;;  %v1965_v62 = vpack.c.bf16 %v1957_v10, %v1953_v9  ;;  %v5764_v51 = vcombine.high %v2455_v33, %v2457_v34  ;;  %v5763_v37 = vcombine.low %v2455_v33, %v2457_v34  ;;  %v7347_v31 = vld [vmem:[#allocation5 + $0x78] sm:$0xff]  ;;  %v2259_v34 = vld [vmem:[%s7979_s6 + $0x8] sm:$0xf] }
 0xc57   : > { %v1964_v56 = vpack.c.bf16 %v1956_v53, %v1952_v41  ;;  %v1966_v11 = vpack.c.bf16 %v1958_v13, %v1954_v60  ;;  %v5765_v24 = vcombine.low %v2456_v35, %v2458_v36  ;;  %v5766_v42 = vcombine.high %v2456_v35, %v2458_v36 }
 0xc58   : > { %v5767_v17 = vcombine.low %v7337_v48, %v7339_v44  ;;  %v5768_v28 = vcombine.high %v7337_v48, %v7339_v44  ;;  %v5769_v59 = vcombine.low %v7341_v18, %v7347_v31  ;;  %v5770_v61 = vcombine.high %v7341_v18, %v7347_v31  ;;  %v2801_v18 = vld [vmem:[#allocation7 + $0x30] sm:$0xff] }
 0xc59   : > { %2055 = vmatprep.mubr.bf16.mxu0 %v1964_v56  ;;  %2104 = vmatprep.mubr.bf16.mxu1 %v1966_v11  ;;  %v2803_v31 = vld [vmem:[#allocation7 + $0x70] sm:$0xff] }
 0xc5a   : > { %2056 = vmatmul.mubr.bf16.gmra.mrb[40].mxu0 %v1963_v14  ;;  %2105 = vmatmul.mubr.bf16.gmra.mrb[40].mxu1 %v1965_v62 }
 0xc5b   : > { %2156 = vmatpush1.bf16.xpose.msra.mxu0 %v5743_v55  ;;  %2185 = vmatprep.mubr.bf16.mxu0 %v7268_v49  ;;  %v5751_v49 = vcombine.low %v2255_v1, %v2257_v5 }
 0xc5c   : > { %2205 = vmatpush1.bf16.xpose.msra.mxu1 %v5745_v40  ;;  %2234 = vmatprep.mubr.bf16.mxu1 %v7270_v50  ;;  %v5753_v50 = vcombine.low %v2256_v16, %v2258_v19 }
 0xc5d   : > { %2321 = vmatprep.subr.bf16.mxu0 %v5748_v26  ;;  %2374 = vmatprep.subr.bf16.mxu1 %v5750_v2 }
 0xc62   : > { %2186 = vmatmul.mubr.bf16.vlgmr.msra.gmra.mrb[44].mxu0 %v7264_v45  ;;  %v2451_v45 = vld [vmem:[#allocation7 + $0x20] sm:$0xff] }
 0xc63   : > { %2235 = vmatmul.mubr.bf16.vlgmr.msra.gmra.mrb[44].mxu1 %v7266_v46  ;;  %2193 = vmatprep.mubr.bf16.mxu0 %v7291_v7  ;;  %v2453_v46 = vld [vmem:[#allocation7 + $0x60] sm:$0xff]  ;;  %v2454_v7 = vld [vmem:[#allocation7 + $0x68] sm:$0xff] }
 0xc64   : > { %2242 = vmatprep.mubr.bf16.mxu1 %v7293_v8  ;;  %2322 = vmatpush1.bf16.msra.mxu0 %v5747_v38  ;;  %v5759_v8 = vcombine.low %v2451_v45, %v2453_v46 }
 0xc65   : > { %2375 = vmatpush1.bf16.msra.mxu1 %v5749_v30  ;;  %2323 = vmatprep.subr.bf16.mxu0 %v5752_v12 }
 0xc66   : > { %2376 = vmatprep.subr.bf16.mxu1 %v5754_v15 }
 0xc68   : > { %2324 = vmatpush1.bf16.msra.mxu0 %v5751_v49 }
 0xc69   : > { %2377 = vmatpush1.bf16.msra.mxu1 %v5753_v50 }
 0xc6a   : > { %2194 = vmatmul.mubr.bf16.gmra.mrb[48].mxu0 %v7287_v6  ;;  %v2452_v6 = vld [vmem:[#allocation7 + $0x28] sm:$0xff] }
 0xc6b   : > { %2243 = vmatmul.mubr.bf16.gmra.mrb[48].mxu1 %v7289_v20  ;;  %2353 = vmatprep.mubr.bf16.mxu0 %v6691_v58  ;;  %v5760_v20 = vcombine.high %v2451_v45, %v2453_v46  ;;  %v5761_v22 = vcombine.low %v2452_v6, %v2454_v7  ;;  %v5762_v23 = vcombine.high %v2452_v6, %v2454_v7 }
 0xc6c   : > { %2406 = vmatprep.mubr.bf16.mxu1 %v6691_v58 }
 0xc6d   : > { %2499 = vmatprep.subr.bf16.mxu0 %v5760_v20  ;;  %2548 = vmatprep.subr.bf16.mxu1 %v5762_v23 }
 0xc72   : > { %5755 = vmatmul.mubr.msk.bf16.vlgmr.msra.gmra.mrb[52].mxu0 %vm569_vm0, %v7200_v4 }
 0xc73   : > { %5757 = vmatmul.mubr.msk.bf16.vlgmr.msra.gmra.mrb[52].mxu1 %vm569_vm0, %v7200_v4  ;;  %2363 = vmatprep.mubr.bf16.mxu0 %v6691_v58 }
 0xc74   : > { %2416 = vmatprep.mubr.bf16.mxu1 %v6691_v58  ;;  %2500 = vmatpush1.bf16.xpose.msra.mxu0 %v5759_v8 }
 0xc75   : > { %2549 = vmatpush1.bf16.xpose.msra.mxu1 %v5761_v22  ;;  %2501 = vmatprep.subr.bf16.mxu0 %v5764_v51 }
 0xc76   : > { %2550 = vmatprep.subr.bf16.mxu1 %v5766_v42 }
 0xc7a   : > { %5756 = vmatmul.mubr.msk.bf16.gmra.mrb[56].mxu0 %vm569_vm0, %v7215_v43 }
 0xc7b   : > { %5758 = vmatmul.mubr.msk.bf16.gmra.mrb[56].mxu1 %vm569_vm0, %v7215_v43 }
 0xc7c   : > { %2502 = vmatpush1.bf16.xpose.msra.mxu0 %v5763_v37 }
 0xc7d   : > { %2551 = vmatpush1.bf16.xpose.msra.mxu1 %v5765_v24  ;;  %2671 = vmatprep.subr.bf16.mxu0 %v5768_v28  ;;  %v2264_v28 = vrot.slane %v2259_v34, %v7249_v25 }
 0xc7e   : > { %2724 = vmatprep.subr.bf16.mxu1 %v5770_v61  ;;  %v2272_v61 = vrot.slane %v2259_v34, %v7251_v29 }
 0xd25   : > { %v2049_v9 = vpop.f32.mrb[36].mxu0  ;;  %v2098_v39 = vpop.f32.mrb[36].mxu1 }
 0xd26   : > { %v2099_v10 = vadd.f32 %v2098_v39, %v2049_v9  ;;  %v2051_v41 = vpop.f32.mrb[37].mxu0  ;;  %v2100_v60 = vpop.f32.mrb[37].mxu1  ;;  %v2268_v9 = vrot.slane %v2259_v34, %v7256_v0  ;;  %v2276_v39 = vrot.slane %v2259_v34, %v7258_v32 }
 0xd27   : > { %v2052_v53 = vpop.f32.mrb[38].mxu0  ;;  %v2101_v13 = vpop.f32.mrb[38].mxu1 }
 0xd28   : > { %v2102_v57 = vadd.f32 %v2101_v13, %v2052_v53  ;;  %v2054_v14 = vpop.f32.mrb[39].mxu0  ;;  %v2103_v62 = vpop.f32.mrb[39].mxu1 }
 0xd2d   : > { %v2057_v63 = vpop.f32.mrb[40].mxu0  ;;  %v2106_v54 = vpop.f32.mrb[40].mxu1 }
 0xd2e   : > { %v2107_v27 = vadd.f32 %v2106_v54, %v2057_v63  ;;  %v2059_v56 = vpop.f32.mrb[41].mxu0  ;;  %v2108_v11 = vpop.f32.mrb[41].mxu1 }
 0xd2f   : > { %v2060_v55 = vpop.f32.mrb[42].mxu0  ;;  %v2109_v40 = vpop.f32.mrb[42].mxu1 }
 0xd30   : > { %v2110_v26 = vadd.f32 %v2109_v40, %v2060_v55  ;;  %v2062_v2 = vpop.f32.mrb[43].mxu0  ;;  %v2111_v1 = vpop.f32.mrb[43].mxu1 }
 0xd35   : > { %v2187_v5 = vpop.f32.mrb[44].mxu0 }
 0xd36   : > { %v2188_v16 = vadd.f32 %v2187_v5, %v2099_v10  ;;  %v2236_v19 = vpop.f32.mrb[44].mxu1  ;;  %v2189_v38 = vpop.f32.mrb[45].mxu0 }
 0xd37   : > { %v2238_v30 = vpop.f32.mrb[45].mxu1  ;;  %v2190_v12 = vpop.f32.mrb[46].mxu0 }
 0xd38   : > { %v7353_v15 = vadd.f32 %v2236_v19, %v2188_v16  ;;  %v2191_v49 = vadd.f32 %v2190_v12, %v2102_v57  ;;  %v2239_v50 = vpop.f32.mrb[46].mxu1  ;;  %v2192_v45 = vpop.f32.mrb[47].mxu0  ;;  %v2605_v30 = vld [vmem:[#allocation5 + $0xb0] sm:$0xff] }
 0xd39   : > { %v2241_v46 = vpop.f32.mrb[47].mxu1  ;;  %v2607_v12 = vld [vmem:[#allocation5 + $0xf0] sm:$0xff] }
 0xd3a   : > { %v7355_v6 = vadd.f32 %v2239_v50, %v2191_v49  ;;  %v2606_v46 = vld [vmem:[#allocation5 + $0xb8] sm:$0xff] }
 0xd3d   : > { %v2195_v20 = vpop.f32.mrb[48].mxu0 }
 0xd3e   : > { %v2196_v7 = vadd.f32 %v2195_v20, %v2107_v27  ;;  %v2244_v8 = vpop.f32.mrb[48].mxu1  ;;  %v2197_v22 = vpop.f32.mrb[49].mxu0  ;;  %v2608_v20 = vld [vmem:[#allocation5 + $0xf8] sm:$0xff] }
 0xd3f   : > { %v2246_v23 = vpop.f32.mrb[49].mxu1  ;;  %v2198_v33 = vpop.f32.mrb[50].mxu0 }
 0xd40   : > { %v7360_v35 = vadd.f32 %v2244_v8, %v2196_v7  ;;  %v2199_v51 = vadd.f32 %v2198_v33, %v2110_v26  ;;  %v2247_v36 = vpop.f32.mrb[50].mxu1  ;;  %v2200_v37 = vpop.f32.mrb[51].mxu0 }
 0xd41   : > { %v2249_v24 = vpop.f32.mrb[51].mxu1 }
 0xd42   : > { %v7362_v42 = vadd.f32 %v2247_v36, %v2199_v51  ;;  %v5772_v36 = vcombine.high %v2605_v30, %v2607_v12 }
 0xd45   : > { %v2355_v10 = vpop.f32.mrb[52].mxu0 }
 0xd46   : > { %v2356_v41 = vadd.f32 %v2355_v10, %v2264_v28  ;;  %v2408_v60 = vpop.f32.mrb[52].mxu1  ;;  %v2357_v53 = vpop.f32.mrb[53].mxu0 }
 0xd47   : > { %v2409_v13 = vadd.f32 %v2408_v60, %v2272_v61  ;;  %v2358_v57 = vadd.f32 %v2357_v53, %v2268_v9  ;;  %v2410_v14 = vpop.f32.mrb[53].mxu1  ;;  %v2359_v62 = vpop.f32.mrb[54].mxu0  ;;  %v5774_v60 = vcombine.high %v2606_v46, %v2608_v20 }
 0xd48   : > { %v2411_v63 = vadd.f32 %v2410_v14, %v2276_v39  ;;  %v2360_v54 = vadd.f32 %v2359_v62, %v2264_v28  ;;  %v2412_v27 = vpop.f32.mrb[54].mxu1  ;;  %v2361_v56 = vpop.f32.mrb[55].mxu0  ;;  %v2427_v26 = vmax.f32 %v2356_v41, 0.0 }
 0xd49   : > { %v2413_v11 = vadd.f32 %v2412_v27, %v2272_v61  ;;  %v2362_v55 = vadd.f32 %v2361_v56, %v2268_v9  ;;  %v2414_v40 = vpop.f32.mrb[55].mxu1  ;;  %v2429_v5 = vmax.f32 %v2409_v13, 0.0  ;;  %v2428_v16 = vmax.f32 %v2358_v57, 0.0 }
 0xd4a   : > { %v2431_v2 = vmax.f32 %v2360_v54, 0.0  ;;  %v2415_v1 = vadd.f32 %v2414_v40, %v2276_v39  ;;  %v2430_v49 = vmax.f32 %v2411_v63, 0.0  ;;  %v5771_v27 = vcombine.low %v2605_v30, %v2607_v12  ;;  %v2807_v12 = vld [vmem:[#allocation7 + $0xf0] sm:$0xff] }
 0xd4b   : > { %v2433_v19 = vmax.f32 %v2413_v11, 0.0  ;;  %v2432_v38 = vmax.f32 %v2362_v55, 0.0 }
 0xd4c   : > { %v2443_v50 = vpack.c.bf16 %v2431_v2, %v2427_v26  ;;  %v2434_v45 = vmax.f32 %v2415_v1, 0.0 }
 0xd4d   : > { %v2445_v7 = vpack.c.bf16 %v2433_v19, %v2429_v5  ;;  %v2444_v8 = vpack.c.bf16 %v2432_v38, %v2428_v16  ;;  %v2365_v22 = vpop.f32.mrb[56].mxu0  ;;  %v2804_v16 = vld [vmem:[#allocation7 + $0x78] sm:$0xff]  ;;  %v5779_v19 = vcombine.low %v2801_v18, %v2803_v31 }
 0xd4e   : > { %v2446_v23 = vpack.c.bf16 %v2434_v45, %v2430_v49  ;;  %v2366_v33 = vadd.f32 %v2365_v22, %v2264_v28  ;;  %v2418_v34 = vpop.f32.mrb[56].mxu1  ;;  %v2367_v51 = vpop.f32.mrb[57].mxu0  ;;  %v2806_v49 = vld [vmem:[#allocation7 + $0xb8] sm:$0xff] }
 0xd4f   : > { %v2419_v37 = vadd.f32 %v2418_v34, %v2272_v61  ;;  %v2368_v24 = vadd.f32 %v2367_v51, %v2268_v9  ;;  %v2420_v10 = vpop.f32.mrb[57].mxu1  ;;  %v2369_v41 = vpop.f32.mrb[58].mxu0  ;;  %2531 = vmatprep.mubr.bf16.mxu0 %v2444_v8  ;;  %v2808_v45 = vld [vmem:[#allocation7 + $0xf8] sm:$0xff] }
 0xd50   : > { %v2421_v53 = vadd.f32 %v2420_v10, %v2276_v39  ;;  %v2370_v13 = vadd.f32 %v2369_v41, %v2264_v28  ;;  %v2422_v57 = vpop.f32.mrb[58].mxu1  ;;  %2580 = vmatprep.mubr.bf16.mxu1 %v2446_v23  ;;  %v2371_v14 = vpop.f32.mrb[59].mxu0  ;;  %2532 = vmatmul.mubr.bf16.vlgmr.msra.gmra.mrb[60].mxu0 %v2443_v50  ;;  %v2435_v56 = vmax.f32 %v2366_v33, 0.0  ;;  %v5773_v28 = vcombine.low %v2606_v46, %v2608_v20 }
 0xd51   : > { %v2423_v62 = vadd.f32 %v2422_v57, %v2272_v61  ;;  %v2372_v63 = vadd.f32 %v2371_v14, %v2268_v9  ;;  %v2424_v54 = vpop.f32.mrb[59].mxu1  ;;  %2581 = vmatmul.mubr.bf16.vlgmr.msra.gmra.mrb[60].mxu1 %v2445_v7  ;;  %2672 = vmatpush1.bf16.msra.mxu0 %v5767_v17  ;;  %v2437_v40 = vmax.f32 %v2419_v37, 0.0  ;;  %v2436_v26 = vmax.f32 %v2368_v24, 0.0 }
 0xd52   : > { %v2439_v11 = vmax.f32 %v2370_v13, 0.0  ;;  %v2425_v55 = vadd.f32 %v2424_v54, %v2276_v39  ;;  %2725 = vmatpush1.bf16.msra.mxu1 %v5769_v59  ;;  %2673 = vmatprep.subr.bf16.mxu0 %v5772_v36  ;;  %v2438_v2 = vmax.f32 %v2421_v53, 0.0  ;;  %v2802_v59 = vld [vmem:[#allocation7 + $0x38] sm:$0xff]  ;;  %v5780_v39 = vcombine.high %v2801_v18, %v2803_v31 }
 0xd53   : > { %v2441_v61 = vmax.f32 %v2423_v62, 0.0  ;;  %v2440_v9 = vmax.f32 %v2372_v63, 0.0  ;;  %2726 = vmatprep.subr.bf16.mxu1 %v5774_v60  ;;  %v5781_v38 = vcombine.low %v2802_v59, %v2804_v16  ;;  %v5782_v30 = vcombine.high %v2802_v59, %v2804_v16  ;;  %v2609_v63 = vld [vmem:[%s7979_s6 + $0xc] sm:$0xf] }
 0xd54   : > { %v2447_v1 = vpack.c.bf16 %v2439_v11, %v2435_v56  ;;  %v2442_v5 = vmax.f32 %v2425_v55, 0.0  ;;  %v5785_v20 = vcombine.low %v2806_v49, %v2808_v45 }
 0xd55   : > { %v2449_v48 = vpack.c.bf16 %v2441_v61, %v2437_v40  ;;  %v2448_v44 = vpack.c.bf16 %v2440_v9, %v2436_v26  ;;  %2674 = vmatpush1.bf16.msra.mxu0 %v5771_v27  ;;  %v2618_v40 = vrot.slane %v2609_v63, %v7256_v0  ;;  %v2626_v26 = vrot.slane %v2609_v63, %v7258_v32 }
 0xd56   : > { %v2450_v17 = vpack.c.bf16 %v2442_v5, %v2438_v2  ;;  %2727 = vmatpush1.bf16.msra.mxu1 %v5773_v28  ;;  %2849 = vmatprep.subr.bf16.mxu0 %v5780_v39  ;;  %v2622_v28 = vrot.slane %v2609_v63, %v7251_v29 }
 0xd57   : > { %2539 = vmatprep.mubr.bf16.mxu0 %v2448_v44  ;;  %2898 = vmatprep.subr.bf16.mxu1 %v5782_v30 }
 0xd58   : > { %2588 = vmatprep.mubr.bf16.mxu1 %v2450_v17  ;;  %2540 = vmatmul.mubr.bf16.gmra.mrb[64].mxu0 %v2447_v1 }
 0xd59   : > { %2589 = vmatmul.mubr.bf16.gmra.mrb[64].mxu1 %v2449_v48  ;;  %2703 = vmatprep.mubr.bf16.mxu0 %v6691_v58 }
 0xd5a   : > { %2756 = vmatprep.mubr.bf16.mxu1 %v6691_v58 }
 0xd60   : > { %5775 = vmatmul.mubr.msk.bf16.vlgmr.msra.gmra.mrb[68].mxu0 %vm569_vm0, %v7200_v4 }
 0xd61   : > { %5777 = vmatmul.mubr.msk.bf16.vlgmr.msra.gmra.mrb[68].mxu1 %vm569_vm0, %v7200_v4  ;;  %2713 = vmatprep.mubr.bf16.mxu0 %v6691_v58  ;;  %v2805_v4 = vld [vmem:[#allocation7 + $0xb0] sm:$0xff] }
 0xd62   : > { %2766 = vmatprep.mubr.bf16.mxu1 %v6691_v58  ;;  %2850 = vmatpush1.bf16.xpose.msra.mxu0 %v5779_v19  ;;  %v5784_v50 = vcombine.high %v2805_v4, %v2807_v12  ;;  %v5783_v46 = vcombine.low %v2805_v4, %v2807_v12 }
 0xd63   : > { %2899 = vmatpush1.bf16.xpose.msra.mxu1 %v5781_v38 }
 0xd64   : > { %2851 = vmatprep.subr.bf16.mxu0 %v5784_v50 }
 0xd68   : > { %5776 = vmatmul.mubr.msk.bf16.gmra.mrb[72].mxu0 %vm569_vm0, %v7215_v43 }
 0xd69   : > { %5778 = vmatmul.mubr.msk.bf16.gmra.mrb[72].mxu1 %vm569_vm0, %v7215_v43  ;;  %v5786_v43 = vcombine.high %v2806_v49, %v2808_v45 }
 0xd6a   : > { %2852 = vmatpush1.bf16.xpose.msra.mxu0 %v5783_v46 }
 0xd6b   : > { %2900 = vmatprep.subr.bf16.mxu1 %v5786_v43 }
 0xd6c   : > { %2901 = vmatpush1.bf16.xpose.msra.mxu1 %v5785_v20 }
 0xe23   : > { %v2533_v7 = vpop.f32.mrb[60].mxu0 }
 0xe24   : > { %v2582_v8 = vpop.f32.mrb[60].mxu1  ;;  %v2535_v22 = vpop.f32.mrb[61].mxu0 }
 0xe25   : > { %v2583_v23 = vadd.f32 %v2582_v8, %v2533_v7  ;;  %v2584_v33 = vpop.f32.mrb[61].mxu1  ;;  %v2536_v34 = vpop.f32.mrb[62].mxu0 }
 0xe26   : > { %v2585_v51 = vpop.f32.mrb[62].mxu1  ;;  %v2538_v36 = vpop.f32.mrb[63].mxu0 }
 0xe27   : > { %v7387_v37 = vadd.f32 %v2583_v23, %v7353_v15  ;;  %v2586_v24 = vadd.f32 %v2585_v51, %v2536_v34  ;;  %v2587_v10 = vpop.f32.mrb[63].mxu1 }
 0xe29   : > { %v7390_v41 = vadd.f32 %v2586_v24, %v7355_v6  ;;  %v2614_v6 = vrot.slane %v2609_v63, %v7249_v25 }
 0xe2b   : > { %v2541_v60 = vpop.f32.mrb[64].mxu0 }
 0xe2c   : > { %v2590_v53 = vpop.f32.mrb[64].mxu1  ;;  %v2543_v13 = vpop.f32.mrb[65].mxu0 }
 0xe2d   : > { %v2591_v57 = vadd.f32 %v2590_v53, %v2541_v60  ;;  %v2592_v14 = vpop.f32.mrb[65].mxu1  ;;  %v2544_v62 = vpop.f32.mrb[66].mxu0 }
 0xe2e   : > { %v2593_v54 = vpop.f32.mrb[66].mxu1  ;;  %v2546_v27 = vpop.f32.mrb[67].mxu0 }
 0xe2f   : > { %v7396_v15 = vadd.f32 %v2591_v57, %v7360_v35  ;;  %v2594_v56 = vadd.f32 %v2593_v54, %v2544_v62  ;;  %v2595_v11 = vpop.f32.mrb[67].mxu1 }
 0xe31   : > { %v7400_v55 = vadd.f32 %v2594_v56, %v7362_v42 }
 0xe33   : > { %v2705_v61 = vpop.f32.mrb[68].mxu0 }
 0xe34   : > { %v2706_v9 = vadd.f32 %v2705_v61, %v2614_v6  ;;  %v2758_v2 = vpop.f32.mrb[68].mxu1  ;;  %v2707_v1 = vpop.f32.mrb[69].mxu0 }
 0xe35   : > { %v2759_v5 = vadd.f32 %v2758_v2, %v2622_v28  ;;  %v2708_v35 = vadd.f32 %v2707_v1, %v2618_v40  ;;  %v2760_v48 = vpop.f32.mrb[69].mxu1  ;;  %v2709_v44 = vpop.f32.mrb[70].mxu0 }
 0xe36   : > { %v2761_v17 = vadd.f32 %v2760_v48, %v2626_v26  ;;  %v2710_v18 = vadd.f32 %v2709_v44, %v2614_v6  ;;  %v2762_v31 = vpop.f32.mrb[70].mxu1  ;;  %v2711_v59 = vpop.f32.mrb[71].mxu0  ;;  %v2777_v19 = vmax.f32 %v2706_v9, 0.0 }
 0xe37   : > { %v2763_v42 = vadd.f32 %v2762_v31, %v2622_v28  ;;  %v2712_v39 = vadd.f32 %v2711_v59, %v2618_v40  ;;  %v2764_v16 = vpop.f32.mrb[71].mxu1  ;;  %v2779_v4 = vmax.f32 %v2759_v5, 0.0  ;;  %v2778_v12 = vmax.f32 %v2708_v35, 0.0 }
 0xe38   : > { %v2781_v38 = vmax.f32 %v2710_v18, 0.0  ;;  %v2765_v30 = vadd.f32 %v2764_v16, %v2626_v26  ;;  %v2780_v45 = vmax.f32 %v2761_v17, 0.0 }
 0xe39   : > { %v2783_v49 = vmax.f32 %v2763_v42, 0.0  ;;  %v2782_v50 = vmax.f32 %v2712_v39, 0.0  ;;  %v5787_v39 = vld [vmem:[%s7981_s8] ss:$0 sm:$0xff] }
 0xe3a   : > { %v2793_v46 = vpack.c.bf16 %v2781_v38, %v2777_v19  ;;  %v2784_v20 = vmax.f32 %v2765_v30, 0.0 }
 0xe3b   : > { %v2795_v43 = vpack.c.bf16 %v2783_v49, %v2779_v4  ;;  %v2794_v7 = vpack.c.bf16 %v2782_v50, %v2778_v12  ;;  %v2715_v8 = vpop.f32.mrb[72].mxu0 }
 0xe3c   : > { %v2796_v22 = vpack.c.bf16 %v2784_v20, %v2780_v45  ;;  %v2716_v23 = vadd.f32 %v2715_v8, %v2614_v6  ;;  %v2768_v33 = vpop.f32.mrb[72].mxu1  ;;  %v2717_v34 = vpop.f32.mrb[73].mxu0 }
 0xe3d   : > { %v2769_v51 = vadd.f32 %v2768_v33, %v2622_v28  ;;  %v2718_v36 = vadd.f32 %v2717_v34, %v2618_v40  ;;  %v2770_v24 = vpop.f32.mrb[73].mxu1  ;;  %v2719_v10 = vpop.f32.mrb[74].mxu0  ;;  %2881 = vmatprep.mubr.bf16.mxu0 %v2794_v7 }
 0xe3e   : > { %v2771_v60 = vadd.f32 %v2770_v24, %v2626_v26  ;;  %v2720_v53 = vadd.f32 %v2719_v10, %v2614_v6  ;;  %v2772_v13 = vpop.f32.mrb[74].mxu1  ;;  %2930 = vmatprep.mubr.bf16.mxu1 %v2796_v22  ;;  %v2721_v57 = vpop.f32.mrb[75].mxu0  ;;  %2882 = vmatmul.mubr.bf16.vlgmr.msra.gmra.mrb[76].mxu0 %v2793_v46  ;;  %v2785_v54 = vmax.f32 %v2716_v23, 0.0 }
 0xe3f   : > { %v2773_v14 = vadd.f32 %v2772_v13, %v2622_v28  ;;  %v2722_v62 = vadd.f32 %v2721_v57, %v2618_v40  ;;  %v2774_v63 = vpop.f32.mrb[75].mxu1  ;;  %2931 = vmatmul.mubr.bf16.vlgmr.msra.gmra.mrb[76].mxu1 %v2795_v43  ;;  %v2787_v11 = vmax.f32 %v2769_v51, 0.0  ;;  %v2786_v61 = vmax.f32 %v2718_v36, 0.0 }
 0xe40   : > { %v2789_v27 = vmax.f32 %v2720_v53, 0.0  ;;  %v2775_v56 = vadd.f32 %v2774_v63, %v2626_v26  ;;  %v2788_v1 = vmax.f32 %v2771_v60, 0.0 }
 0xe41   : > { %v2791_v9 = vmax.f32 %v2773_v14, 0.0  ;;  %v2790_v2 = vmax.f32 %v2722_v62, 0.0 }
 0xe42   : > { %v2797_v5 = vpack.c.bf16 %v2789_v27, %v2785_v54  ;;  %v2792_v35 = vmax.f32 %v2775_v56, 0.0 }
 0xe43   : > { %v2799_v48 = vpack.c.bf16 %v2791_v9, %v2787_v11  ;;  %v2798_v6 = vpack.c.bf16 %v2790_v2, %v2786_v61 }
 0xe44   : > { %v2800_v44 = vpack.c.bf16 %v2792_v35, %v2788_v1 }
 0xe45   : > { %2889 = vmatprep.mubr.bf16.mxu0 %v2798_v6  ;;  %v6352_v6 = vld [vmem:[%s7974_s1 + $0x10] sm:$0xff]  }
 0xe46   : > { %2938 = vmatprep.mubr.bf16.mxu1 %v2800_v44  ;;  %2890 = vmatmul.mubr.bf16.gmra.mrb[80].mxu0 %v2797_v5  ;;  %v6353_v44 = vld [vmem:[%s7974_s1 + $0x18] sm:$0xff]  }
 0xe47   : > { %2939 = vmatmul.mubr.bf16.gmra.mrb[80].mxu1 %v2799_v48  ;;  %6092 = vmatprep.subr.bf16.mxu0 %v6352_v6 }
 0xe48   : > { %6093 = vmatpush3.bf16.msra.mxu0 %v6352_v6 }
 0xe49   : > { %6094 = vmatprep.subr.bf16.mxu0 %v6353_v44 }
 0xe4c   : > { %6095 = vmatpush3.bf16.msra.mxu0 %v6353_v44 }
 0xf11   : > { %v2883_v28 = vpop.f32.mrb[76].mxu0 }
 0xf12   : > { %v2932_v40 = vpop.f32.mrb[76].mxu1  ;;  %v2885_v17 = vpop.f32.mrb[77].mxu0 }
 0xf13   : > { %v2933_v18 = vadd.f32 %v2932_v40, %v2883_v28  ;;  %v2934_v31 = vpop.f32.mrb[77].mxu1  ;;  %v2886_v26 = vpop.f32.mrb[78].mxu0 }
 0xf14   : > { %v2935_v59 = vpop.f32.mrb[78].mxu1  ;;  %v2888_v42 = vpop.f32.mrb[79].mxu0 }
 0xf15   : > { %v2947_v16 = vadd.f32 %v2933_v18, %v7387_v37  ;;  %v2936_v19 = vadd.f32 %v2935_v59, %v2886_v26  ;;  %v2937_v38 = vpop.f32.mrb[79].mxu1 }
 0xf17   : > { %v2948_v30 = vadd.f32 %v2936_v19, %v7390_v41  ;;  %v2958_v4 = vadd.f32 %v5787_v39, %v2947_v16 }
 0xf19   : > { %v2891_v12 = vpop.f32.mrb[80].mxu0  ;;  %v2962_v49 = vadd.f32 %v2958_v4, %v7193_v3  ;;  %v2959_v50 = vadd.f32 %v5787_v39, %v2948_v30  ;;  %v5788_v4 = vld [vmem:[%s7984_s11] ss:$0 sm:$0xff] }
 0xf1a   : > { %v2940_v45 = vpop.f32.mrb[80].mxu1  ;;  %v2893_v46 = vpop.f32.mrb[81].mxu0 }
 0xf1b   : > { %v2941_v20 = vadd.f32 %v2940_v45, %v2891_v12  ;;  %v2942_v43 = vpop.f32.mrb[81].mxu1  ;;  %v2966_v7 = vsel %vm569_vm0, %v2962_v49, 0.0  ;;  %v2894_v8 = vpop.f32.mrb[82].mxu0  ;;  %v2963_v22 = vadd.f32 %v2959_v50, %v7195_v21  ;;  %v5789_v46 = vld [vmem:[%s7985_s12] ss:$0 sm:$0xff] }
 0xf1c   : > { %v2943_v23 = vpop.f32.mrb[82].mxu1  ;;  %2967 = vadd.xlane.f32.xlu1 %v2966_v7  ;;  %v2896_v37 = vpop.f32.mrb[83].mxu0 }
 0xf1d   : > { %v2949_v33 = vadd.f32 %v2941_v20, %v7396_v15  ;;  %v2944_v41 = vadd.f32 %v2943_v23, %v2894_v8  ;;  %v2945_v34 = vpop.f32.mrb[83].mxu1  ;;  %v2969_v51 = vsel %vm569_vm0, %v2963_v22, 0.0 }
 0xf1e   : > { %2970 = vadd.xlane.f32.xlu0 %v2969_v51 }
 0xf1f   : > { %v2950_v3 = vadd.f32 %v2944_v41, %v7400_v55  ;;  %v2960_v36 = vadd.f32 %v5787_v39, %v2949_v33 }
 0xf21   : > { %v2964_v24 = vadd.f32 %v2960_v36, %v7211_v52  ;;  %v2961_v10 = vadd.f32 %v5787_v39, %v2950_v3 }
 0xf23   : > { %v2972_v60 = vsel %vm569_vm0, %v2964_v24, 0.0  ;;  %v2965_v21 = vadd.f32 %v2961_v10, %v7207_v47  ;;  %v5795_v10 = vld [vmem:[%s7975_s2 + $0x1] ss:$0 sm:$0xff] }
 0xf24   : > { %2973 = vadd.xlane.f32.xlu1 %v2972_v60 }
 0xf25   : > { %v2975_v53 = vsel %vm569_vm0, %v2965_v21, 0.0 }
 0xf26   : > { %2976 = vadd.xlane.f32.xlu0 %v2975_v53 }
 0xfa9   : > { %v2968_v15 = vpop.xlane.xlu1 %2967 }
 0xfaa   : > { %v2978_v13 = vmul.f32 0.03125, %v2968_v15 }
 0xfab   : > { %v2971_v57 = vpop.xlane.xlu0 %2970 }
 0xfac   : > { %v2982_v14 = vsub.f32 %v2962_v49, %v2978_v13  ;;  %v2979_v62 = vmul.f32 0.03125, %v2971_v57 }
 0xfae   : > { %v2983_v63 = vsub.f32 %v2963_v22, %v2979_v62  ;;  %v2986_v54 = vmul.f32 %v2982_v14, %v2982_v14 }
 0xfb0   : > { %v2990_v55 = vsel %vm569_vm0, %v2986_v54, 0.0  ;;  %v2987_v27 = vmul.f32 %v2983_v63, %v2983_v63 }
 0xfb1   : > { %2991 = vadd.xlane.f32.xlu1 %v2990_v55  ;;  %v2974_v52 = vpop.xlane.xlu1 %2973 }
 0xfb2   : > { %v2980_v56 = vmul.f32 0.03125, %v2974_v52  ;;  %v2993_v11 = vsel %vm569_vm0, %v2987_v27, 0.0 }
 0xfb3   : > { %2994 = vadd.xlane.f32.xlu0 %v2993_v11  ;;  %v2977_v47 = vpop.xlane.xlu0 %2976 }
 0xfb4   : > { %v2984_v61 = vsub.f32 %v2964_v24, %v2980_v56  ;;  %v2981_v9 = vmul.f32 0.03125, %v2977_v47 }
 0xfb6   : > { %v2985_v2 = vsub.f32 %v2965_v21, %v2981_v9  ;;  %v2988_v1 = vmul.f32 %v2984_v61, %v2984_v61 }
 0xfb8   : > { %v2996_v5 = vsel %vm569_vm0, %v2988_v1, 0.0  ;;  %v2989_v35 = vmul.f32 %v2985_v2, %v2985_v2 }
 0xfb9   : > { %2997 = vadd.xlane.f32.xlu1 %v2996_v5 }
 0xfba   : > { %v2999_v48 = vsel %vm569_vm0, %v2989_v35, 0.0 }
 0xfbb   : > { %3000 = vadd.xlane.f32.xlu0 %v2999_v48 }
0x103e   : > { %v2992_v28 = vpop.xlane.xlu1 %2991 }
0x103f   : > { %v3002_v40 = vmul.f32 0.03125, %v2992_v28 }
0x1040   : > { %v2995_v17 = vpop.xlane.xlu0 %2994 }
0x1041   : > { %v3006_v18 = vadd.f32 1e-05, %v3002_v40  ;;  %v3003_v31 = vmul.f32 0.03125, %v2995_v17 }
0x1043   : > { %6430 = vrsqrt.f32 %v3006_v18  ;;  %v3007_v26 = vadd.f32 1e-05, %v3003_v31 }
0x1045   : > { %6432 = vrsqrt.f32 %v3007_v26 }
0x1046   : > { %v2998_v59 = vpop.xlane.xlu1 %2997 }
0x1047   : > { %v3004_v42 = vmul.f32 0.03125, %v2998_v59 }
0x1048   : > { %v3001_v39 = vpop.xlane.xlu0 %3000 }
0x1049   : > { %v3008_v16 = vadd.f32 1e-05, %v3004_v42  ;;  %v3005_v19 = vmul.f32 0.03125, %v3001_v39 }
0x104b   : > { %6434 = vrsqrt.f32 %v3008_v16  ;;  %v3009_v38 = vadd.f32 1e-05, %v3005_v19 }
0x104d   : > { %v6431_v30 = vpop.eup %6430  ;;  %6436 = vrsqrt.f32 %v3009_v38 }
0x104e   : > { %v3014_v12 = vmul.f32 %v6431_v30, %v2982_v14 }
0x104f   : > { %v6433_v49 = vpop.eup %6432 }
0x1050   : > { %v3015_v50 = vmul.f32 %v6433_v49, %v2983_v63  ;;  %v3025_v45 = vmul.f32 %v5788_v4, %v3014_v12 }
0x1052   : > { %v3026_v20 = vmul.f32 %v5788_v4, %v3015_v50  ;;  %v7436_v43 = vadd.f32 %v5789_v46, %v3025_v45 }
0x1054   : > { %v7438_v7 = vadd.f32 %v5789_v46, %v3026_v20 }
0x1055   : > { %v6435_v8 = vpop.eup %6434 }
0x1056   : > { %v3016_v22 = vmul.f32 %v6435_v8, %v2984_v61  ;;  %v3040_v23 = vpack.c.bf16 %v7438_v7, %v7436_v43 }
0x1057   : > { %v6437_v37 = vpop.eup %6436 }
0x1058   : > { %v3027_v33 = vmul.f32 %v5788_v4, %v3016_v22  ;;  %v3017_v41 = vmul.f32 %v6437_v37, %v2985_v2  ;;  %6096 = vmatprep.mubr.msk.bf16.mxu0 %vm569_vm0, %v3040_v23 }
0x105a   : > { %v3028_v34 = vmul.f32 %v5788_v4, %v3017_v41  ;;  %v7443_v51 = vadd.f32 %v5789_v46, %v3027_v33 }
0x105c   : > { %v7445_v3 = vadd.f32 %v5789_v46, %v3028_v34 }
0x105e   : > { %v3041_v36 = vpack.c.bf16 %v7445_v3, %v7443_v51 }
0x1060   : > { %6097 = vmatmul.mubr.msk.bf16.vlgmr.msra.gmra.mrb[84].mxu0 %vm569_vm0, %v3041_v36 }
0x1133   : > { %v6098_v24 = vpop.f32.mrb[84].mxu0 }
0x1134   : > { %v3107_v60 = vpop.f32.mrb[85].mxu0  ;;  %v3116_v53 = vadd.f32 %v6098_v24, %v5795_v10 }
0x1135   : > { %v6099_v21 = vpop.f32.mrb[86].mxu0  ;;  %v3108_v57 = vadd.f32 %v5795_v10, %v3107_v60 }
0x1136   : > { %v3119_v15 = vadd.f32 %v6099_v21, %v5795_v10  ;;  %v3110_v13 = vpop.f32.mrb[87].mxu0 }
0x1137   : > { %v3111_v14 = vadd.f32 %v5795_v10, %v3110_v13 }
0x1138   : > { %v7453_v62 = vpack.c.bf16 %v3119_v15, %v3116_v53 }
0x1139   : > { %v7455_v63 = vpack.c.bf16 %v3111_v14, %v3108_v57 }
0x113a   : > { %3128 = vrot.lane.b32.xlu0 %v7453_v62, %s6678_s26 }
0x113b   : > { %3126 = vrot.lane.b32.xlu1 %v7455_v63, %s6678_s26  ;;  %6104 = vmatprep.mubr.msk.bf16.mxu1 %vm633_vm1, %v7455_v63 }
0x113e   : > { %3298 = vrot.lane.b32.xlu0 %v7455_v63, %s6679_s18 }
0x113f   : > { %3302 = vrot.lane.b32.xlu1 %v7455_v63, %s6680_s28 }
0x1143   : > { %3304 = vrot.lane.b32.xlu1 %v7453_v62, %s6680_s28 }
0x1147   : > { %3300 = vrot.lane.b32.xlu1 %v7453_v62, %s6679_s18  ;;  %s8033_s18 = sld [smem:[#allocation18_spill]] }
0x114b   : > { %3233 = vrot.lane.b32.xlu1 %v7455_v63, %s6677_s17 }
0x114d   : > { %p8035_p1 = scmp.ne.s32.totalorder %s8033_s18, 0 }
0x114f   : > { %3409 = vrot.lane.b32.xlu1 %v7455_v63, %s6681_s5 }
0x11ac   : > { %v3129_v27 = vpop.permute.xlu0 %3128 }
0x11ad   : > { %v3127_v54 = vpop.permute.xlu1 %3126  ;;  %v3140_v11 = vsel %vm633_vm1, %v3129_v27, 0 }
0x11ae   : > { %v3137_v55 = vsel %vm633_vm1, %v3127_v54, 0  ;;  %6188 = vmatprep.subr.msk.bf16.mxu1 %vm633_vm1, %v3127_v54 }
0x11af   : > { %6101 = vmatpush3.bf16.xpose.msra.mxu1 %v3137_v55 }
0x11b0   : > { %6189 = vmatprep.subr.msk.bf16.mxu1 %vm633_vm1, %v3129_v27  ;;  %v3299_v2 = vpop.permute.xlu0 %3298 }
0x11b1   : > { %v3303_v52 = vpop.permute.xlu1 %3302 }
0x11b2   : > { %v3313_v9 = vsel %vm633_vm1, %v3303_v52, 0 }
0x11b5   : > { %v3305_v56 = vpop.permute.xlu1 %3304 }
0x11b6   : > { %v3316_v1 = vsel %vm633_vm1, %v3305_v56, 0 }
0x11b7   : > { %6103 = vmatpush3.bf16.xpose.msra.mxu1 %v3140_v11 }
0x11b8   : > { %6190 = vmatprep.subr.msk.bf16.mxu1 %vm633_vm1, %v3303_v52 }
0x11b9   : > { %v3301_v47 = vpop.permute.xlu1 %3300 }
0x11bd   : > { %v3234_v61 = vpop.permute.xlu1 %3233 }
0x11be   : > { %6105 = vmatmul.mubr.msk.bf16.vlgmr.msra.gmra.mrb[84].mxu1 %vm633_vm1, %v7453_v62  ;;  %6108 = vmatprep.subr.bf16.mxu0 %v3234_v61 }
0x11bf   : > { %6109 = vmatpush3.bf16.msra.mxu0 %v3234_v61  ;;  %6117 = vmatpush3.bf16.xpose.msra.mxu1 %v3313_v9 }
0x11c0   : > { %6120 = vmatprep.mubr.msk.bf16.mxu1 %vm633_vm1, %v3299_v2  ;;  %6191 = vmatprep.subr.msk.bf16.mxu1 %vm633_vm1, %v3305_v56 }
0x11c1   : > { %v3410_v38 = vpop.permute.xlu1 %3409 }
0x11c7   : > { %6119 = vmatpush3.bf16.xpose.msra.mxu1 %v3316_v1 }
0x11ce   : > { %6121 = vmatmul.mubr.msk.bf16.vlgmr.msra.gmra.mrb[88].mxu1 %vm633_vm1, %v3301_v47 }
0x1291   : > { %v6106_v5 = vpop.f32.mrb[84].mxu1 }
0x1292   : > { %v3176_v35 = vpop.f32.mrb[85].mxu1  ;;  %v3197_v48 = vsel %vm569_vm0, %v6106_v5, -inf }
0x1293   : > { %3198 = vmax.xlane.f32.xlu0 %v3197_v48  ;;  %v6107_v6 = vpop.f32.mrb[86].mxu1  ;;  %v3191_v40 = vsel %vm569_vm0, %v3176_v35, -inf }
0x1294   : > { %v3179_v44 = vpop.f32.mrb[87].mxu1  ;;  %v3200_v17 = vsel %vm569_vm0, %v6107_v6, -inf }
0x1295   : > { %v3194_v28 = vsel %vm569_vm0, %v3179_v44, -inf }
0x1296   : > { %3195 = vmax.xlane.f32.xlu1 %v3194_v28 }
0x1297   : > { %3192 = vmax.xlane.f32.xlu0 %v3191_v40 }
0x129b   : > { %3201 = vmax.xlane.f32.xlu0 %v3200_v17 }
0x12a1   : > { %v6122_v18 = vpop.f32.mrb[88].mxu1 }
0x12a2   : > { %v7491_v31 = vpop.f32.mrb[89].mxu1  ;;  %v3373_v26 = vsel %vm569_vm0, %v6122_v18, -inf }
0x12a3   : > { %v6123_v59 = vpop.f32.mrb[90].mxu1  ;;  %3374 = vmax.xlane.f32.xlu1 %v3373_v26  ;;  %v3367_v39 = vsel %vm569_vm0, %v7491_v31, -inf }
0x12a4   : > { %v7494_v42 = vpop.f32.mrb[91].mxu1  ;;  %v3376_v16 = vsel %vm569_vm0, %v6123_v59, -inf }
0x12a5   : > { %v3370_v19 = vsel %vm569_vm0, %v7494_v42, -inf }
0x12a7   : > { %3368 = vmax.xlane.f32.xlu1 %v3367_v39 }
0x12b1   : > { %3235 = vrot.lane.b32.xlu0 %v7453_v62, %s6677_s17  ;;  %s8032_s17 = sld [smem:[#allocation21_spill]] }
0x12b8   : > { %3411 = vrot.lane.b32.xlu1 %v7453_v62, %s6681_s5  ;;  %s8030_s5 = smov 24  }
0x12bc   : > { %3480 = vrot.lane.b32.xlu1 %v7453_v62, %s6682_s27 }
0x12c0   : > { %3476 = vrot.lane.b32.xlu1 %v7453_v62, %s6683_s23 }
0x12c4   : > { %3585 = vrot.lane.b32.xlu1 %v7455_v63, %s6684_s16 }
0x12d0   : > { %3377 = vmax.xlane.f32.xlu0 %v3376_v16 }
0x12d4   : > { %3371 = vmax.xlane.f32.xlu0 %v3370_v19 }
0x12ea   : > { %3478 = vrot.lane.b32.xlu0 %v7455_v63, %s6682_s27 }
0x12ee   : > { %3474 = vrot.lane.b32.xlu0 %v7455_v63, %s6683_s23 }
0x1320   : > { %v3199_v30 = vpop.xlane.xlu0 %3198 }
0x1321   : > { %v3205_v12 = vsub.f32 %v6106_v5, %v3199_v30 }
0x1323   : > { %v3196_v4 = vpop.xlane.xlu1 %3195  ;;  %v3211_v8 = vmul.f32 1.442695, %v3205_v12 }
0x1324   : > { %v3204_v49 = vsub.f32 %v3179_v44, %v3196_v4  ;;  %v3193_v50 = vpop.xlane.xlu0 %3192 }
0x1325   : > { %v3203_v45 = vsub.f32 %v3176_v35, %v3193_v50 }
0x1326   : > { %v3209_v46 = vmul.f32 1.442695, %v3204_v49 }
0x1327   : > { %v3207_v20 = vmul.f32 1.442695, %v3203_v45 }
0x1328   : > { %6438 = vpow2.f32 %v3209_v46  ;;  %v3202_v22 = vpop.xlane.xlu0 %3201 }
0x1329   : > { %6440 = vpow2.f32 %v3207_v20  ;;  %v3206_v23 = vsub.f32 %v6107_v6, %v3202_v22 }
0x132a   : > { %6442 = vpow2.f32 %v3211_v8 }
0x132b   : > { %v3213_v37 = vmul.f32 1.442695, %v3206_v23 }
0x132c   : > { %v3236_v33 = vpop.permute.xlu0 %3235 }
0x132d   : > { %6444 = vpow2.f32 %v3213_v37  ;;  %6110 = vmatprep.subr.bf16.mxu0 %v3236_v33 }
0x132e   : > { %6111 = vmatpush3.bf16.msra.mxu0 %v3236_v33 }
0x132f   : > { %6124 = vmatprep.subr.bf16.mxu0 %v3410_v38 }
0x1330   : > { %v3375_v41 = vpop.xlane.xlu1 %3374 }
0x1331   : > { %v3381_v54 = vsub.f32 %v6122_v18, %v3375_v41 }
0x1332   : > { %v7515_v34 = vpop.eup %6438 }
0x1333   : > { %v7517_v36 = vpop.eup %6440  ;;  %v3387_v55 = vmul.f32 1.442695, %v3381_v54 }
0x1334   : > { %v3369_v24 = vpop.xlane.xlu1 %3368  ;;  %v3231_v10 = vpack.c.bf16 %v7515_v34, %v7517_v36  ;;  %v7521_v60 = vpop.eup %6442 }
0x1335   : > { %v3379_v27 = vsub.f32 %v7491_v31, %v3369_v24  ;;  %6446 = vpow2.f32 %v3387_v55 }
0x1336   : > { %6112 = vmatprep.mubr.msk.bf16.mxu0 %vm569_vm0, %v3231_v10 }
0x1337   : > { %v7524_v21 = vpop.eup %6444  ;;  %v3383_v47 = vmul.f32 1.442695, %v3379_v27 }
0x1338   : > { %v3412_v53 = vpop.permute.xlu1 %3411  ;;  %v3232_v15 = vpack.c.bf16 %v7524_v21, %v7521_v60 }
0x133a   : > { %6113 = vmatmul.mubr.msk.bf16.vlgmr.msra.gmra.mrb[88].mxu0 %vm569_vm0, %v3232_v15 }
0x133b   : > { %6125 = vmatpush3.bf16.msra.mxu0 %v3410_v38 }
0x133c   : > { %6126 = vmatprep.subr.bf16.mxu0 %v3412_v53  ;;  %v3481_v13 = vpop.permute.xlu1 %3480 }
0x133d   : > { %v3492_v18 = vsel %vm633_vm1, %v3481_v13, 0 }
0x133f   : > { %6127 = vmatpush3.bf16.msra.mxu0 %v3412_v53  ;;  %v7532_v5 = vpop.eup %6446 }
0x1340   : > { %v3477_v57 = vpop.permute.xlu1 %3476 }
0x1344   : > { %v3586_v14 = vpop.permute.xlu1 %3585 }
0x1345   : > { %6140 = vmatprep.subr.bf16.mxu1 %v3586_v14 }
0x1346   : > { %6141 = vmatpush3.bf16.msra.mxu1 %v3586_v14 }
0x135d   : > { %v3378_v52 = vpop.xlane.xlu0 %3377 }
0x135e   : > { %v3382_v56 = vsub.f32 %v6123_v59, %v3378_v52 }
0x1360   : > { %v3389_v11 = vmul.f32 1.442695, %v3382_v56 }
0x1361   : > { %v3372_v61 = vpop.xlane.xlu0 %3371 }
0x1362   : > { %6448 = vpow2.f32 %v3389_v11  ;;  %v3380_v9 = vsub.f32 %v7494_v42, %v3372_v61 }
0x1363   : > { %6450 = vpow2.f32 %v3383_v47 }
0x1364   : > { %v3385_v2 = vmul.f32 1.442695, %v3380_v9 }
0x1365   : > { %v3479_v1 = vpop.permute.xlu0 %3478 }
0x1366   : > { %6452 = vpow2.f32 %v3385_v2  ;;  %6192 = vmatprep.subr.msk.bf16.mxu0 %vm633_vm1, %v3479_v1  ;;  %v3489_v40 = vsel %vm633_vm1, %v3479_v1, 0 }
0x1369   : > { %v3475_v17 = vpop.permute.xlu0 %3474 }
0x136c   : > { %v7534_v35 = vpop.eup %6448 }
0x136d   : > { %v3408_v48 = vpack.c.bf16 %v7534_v35, %v7532_v5  ;;  %v7538_v6 = vpop.eup %6450 }
0x1370   : > { %v7540_v44 = vpop.eup %6452 }
0x1371   : > { %v3407_v28 = vpack.c.bf16 %v7540_v44, %v7538_v6 }
0x1373   : > { %6128 = vmatprep.mubr.msk.bf16.mxu0 %vm569_vm0, %v3407_v28 }
0x1374   : > { %6129 = vmatmul.mubr.msk.bf16.vlgmr.msra.gmra.mrb[92].mxu0 %vm569_vm0, %v3408_v48 }
0x1375   : > { %6133 = vmatpush3.bf16.xpose.msra.mxu0 %v3489_v40  ;;  %6136 = vmatprep.mubr.msk.bf16.mxu0 %vm633_vm1, %v3475_v17 }
0x1376   : > { %6193 = vmatprep.subr.msk.bf16.mxu0 %vm633_vm1, %v3481_v13 }
0x137d   : > { %6135 = vmatpush3.bf16.xpose.msra.mxu0 %v3492_v18 }
0x1384   : > { %6137 = vmatmul.mubr.msk.bf16.vlgmr.msra.gmra.mrb[96].mxu0 %vm633_vm1, %v3477_v57 }
0x140d   : > { %v7551_v31 = vpop.f32.mrb[88].mxu0 }
0x140e   : > { %v7553_v26 = vpop.f32.mrb[89].mxu0 }
0x140f   : > { %v7555_v59 = vpop.f32.mrb[90].mxu0 }
0x1410   : > { %v7557_v42 = vpop.f32.mrb[91].mxu0 }
0x1447   : > { %v7559_v39 = vpop.f32.mrb[92].mxu0 }
0x1448   : > { %v7561_v16 = vpop.f32.mrb[93].mxu0 }
0x1449   : > { %v7563_v19 = vpop.f32.mrb[94].mxu0 }
0x144a   : > { %v7565_v38 = vpop.f32.mrb[95].mxu0 }
0x1457   : > { %v6138_v30 = vpop.f32.mrb[96].mxu0 }
0x1458   : > { %v3528_v4 = vpop.f32.mrb[97].mxu0  ;;  %v3549_v12 = vsel %vm569_vm0, %v6138_v30, -inf }
0x1459   : > { %3550 = vmax.xlane.f32.xlu0 %v3549_v12  ;;  %v6139_v49 = vpop.f32.mrb[98].mxu0  ;;  %v3543_v46 = vsel %vm569_vm0, %v3528_v4, -inf }
0x145a   : > { %v3531_v50 = vpop.f32.mrb[99].mxu0  ;;  %v3552_v20 = vsel %vm569_vm0, %v6139_v49, -inf }
0x145b   : > { %v3546_v45 = vsel %vm569_vm0, %v3531_v50, -inf }
0x145c   : > { %3547 = vmax.xlane.f32.xlu1 %v3546_v45 }
0x145d   : > { %3544 = vmax.xlane.f32.xlu0 %v3543_v46 }
0x1461   : > { %3553 = vmax.xlane.f32.xlu0 %v3552_v20 }
0x146d   : > { %3654 = vrot.lane.b32.xlu1 %v7455_v63, %s6685_s14 }
0x1471   : > { %3656 = vrot.lane.b32.xlu1 %v7453_v62, %s6685_s14 }
0x1475   : > { %3652 = vrot.lane.b32.xlu1 %v7453_v62, %s6686_s30 }
0x1477   : > { %3587 = vrot.lane.b32.xlu0 %v7453_v62, %s6684_s16  ;;  %s8031_s16 = sld [smem:[#allocation13_spill]] }
0x147b   : > { %3650 = vrot.lane.b32.xlu0 %v7455_v63, %s6686_s30 }
0x147d   : > { %s530_s24 = sand.u32 1, %s8031_s16   ;;  %s8034_s16 = sld [smem:[#allocation22_spill]] }
0x147e   : > { %s5676_s29 = sshll.u32 %s530_s24, 4  ;;  %s7931_s30 = scalar_lea.sflag [#allocation4], %s530_s24 }
0x147f   : > { %s532_s26 = scalar_lea.vmem [#allocation8], %s5676_s29 }
0x1480   : > { %s5573_s28 = sshll.u32 %s532_s26, 4  ;;  %s7924_s28 = int_to_ptr.vmem [resolvable:$true] %s5573_s28 }
0x14e6   : > { %v3551_v8 = vpop.xlane.xlu0 %3550 }
0x14e7   : > { %v3557_v23 = vsub.f32 %v6138_v30, %v3551_v8  ;;  %v3391_v8 = vsel %vm569_vm0, %v7538_v6, 0.0 }
0x14e9   : > { %v3548_v22 = vpop.xlane.xlu1 %3547  ;;  %v3563_v53 = vmul.f32 1.442695, %v3557_v23  ;;  %v3394_v23 = vsel %vm569_vm0, %v7540_v44, 0.0 }
0x14ea   : > { %v3556_v37 = vsub.f32 %v3531_v50, %v3548_v22  ;;  %v3545_v33 = vpop.xlane.xlu0 %3544  ;;  %v3397_v22 = vsel %vm569_vm0, %v7532_v5, 0.0 }
0x14eb   : > { %v3555_v41 = vsub.f32 %v3528_v4, %v3545_v33 }
0x14ec   : > { %v3561_v24 = vmul.f32 1.442695, %v3556_v37 }
0x14ed   : > { %v3559_v10 = vmul.f32 1.442695, %v3555_v41  ;;  %v3655_v54 = vpop.permute.xlu1 %3654 }
0x14ee   : > { %6454 = vpow2.f32 %v3561_v24  ;;  %v3554_v15 = vpop.xlane.xlu0 %3553  ;;  %v3665_v61 = vsel %vm633_vm1, %v3655_v54, 0 }
0x14ef   : > { %6456 = vpow2.f32 %v3559_v10  ;;  %v3558_v13 = vsub.f32 %v6139_v49, %v3554_v15 }
0x14f0   : > { %6458 = vpow2.f32 %v3563_v53 }
0x14f1   : > { %v3565_v57 = vmul.f32 1.442695, %v3558_v13  ;;  %v3657_v2 = vpop.permute.xlu1 %3656 }
0x14f2   : > { %v3588_v14 = vpop.permute.xlu0 %3587  ;;  %v3668_v1 = vsel %vm633_vm1, %v3657_v2, 0 }
0x14f3   : > { %6460 = vpow2.f32 %v3565_v57  ;;  %6142 = vmatprep.subr.bf16.mxu1 %v3588_v14 }
0x14f4   : > { %6143 = vmatpush3.bf16.msra.mxu1 %v3588_v14 }
0x14f5   : > { %6194 = vmatprep.subr.msk.bf16.mxu1 %vm633_vm1, %v3655_v54  ;;  %v3653_v48 = vpop.permute.xlu1 %3652 }
0x14f6   : > { %v3651_v9 = vpop.permute.xlu0 %3650 }
0x14f8   : > { %v6455_v55 = vpop.eup %6454 }
0x14f9   : > { %v6457_v27 = vpop.eup %6456  ;;  %v3570_v6 = vsel %vm569_vm0, %v6455_v55, 0.0 }
0x14fa   : > { %v3583_v52 = vpack.c.bf16 %v6455_v55, %v6457_v27  ;;  %v6459_v56 = vpop.eup %6458  ;;  %v3567_v37 = vsel %vm569_vm0, %v6457_v27, 0.0 }
0x14fc   : > { %6144 = vmatprep.mubr.msk.bf16.mxu1 %vm569_vm0, %v3583_v52 }
0x14fd   : > { %v6461_v11 = vpop.eup %6460 }
0x14fe   : > { %v3584_v47 = vpack.c.bf16 %v6461_v11, %v6459_v56  ;;  %v3576_v5 = vsel %vm569_vm0, %v6461_v11, 0.0 }
0x1500   : > { %6145 = vmatmul.mubr.msk.bf16.vlgmr.msra.gmra.mrb[92].mxu1 %vm569_vm0, %v3584_v47 }
0x1501   : > { %6149 = vmatpush3.bf16.xpose.msra.mxu1 %v3665_v61  ;;  %6152 = vmatprep.mubr.msk.bf16.mxu1 %vm633_vm1, %v3651_v9 }
0x1502   : > { %6195 = vmatprep.subr.msk.bf16.mxu1 %vm633_vm1, %v3657_v2 }
0x1509   : > { %6151 = vmatpush3.bf16.xpose.msra.mxu1 %v3668_v1 }
0x1510   : > { %6153 = vmatmul.mubr.msk.bf16.vlgmr.msra.gmra.mrb[96].mxu1 %vm633_vm1, %v3653_v48 }
0x1511   : > { %4160 = vmatprep.mubr.bf16.mxu1 %v6691_v58 }
0x15d3   : > { %v7590_v28 = vpop.f32.mrb[92].mxu1 }
0x15d4   : > { %v7592_v40 = vpop.f32.mrb[93].mxu1 }
0x15d5   : > { %v7594_v17 = vpop.f32.mrb[94].mxu1 }
0x15d6   : > { %v7596_v18 = vpop.f32.mrb[95].mxu1 }
0x15e3   : > { %v6154_v30 = vpop.f32.mrb[96].mxu1 }
0x15e4   : > { %v3704_v4 = vpop.f32.mrb[97].mxu1  ;;  %v3725_v12 = vsel %vm569_vm0, %v6154_v30, -inf }
0x15e5   : > { %3726 = vmax.xlane.f32.xlu0 %v3725_v12  ;;  %v6155_v49 = vpop.f32.mrb[98].mxu1  ;;  %v3719_v46 = vsel %vm569_vm0, %v3704_v4, -inf  ;;  %v3218_v12 = vsel %vm569_vm0, %v7515_v34, 0.0 }
0x15e6   : > { %v3707_v50 = vpop.f32.mrb[99].mxu1  ;;  %v3728_v20 = vsel %vm569_vm0, %v6155_v49, -inf }
0x15e7   : > { %v3722_v45 = vsel %vm569_vm0, %v3707_v50, -inf }
0x15e8   : > { %3723 = vmax.xlane.f32.xlu1 %v3722_v45 }
0x15e9   : > { %3720 = vmax.xlane.f32.xlu0 %v3719_v46 }
0x15ed   : > { %3729 = vmax.xlane.f32.xlu0 %v3728_v20 }
0x15f9   : > { %3761 = vrot.lane.b32.xlu1 %v7455_v63, %s6687_s15  ;;  %v3400_v63 = vsel %vm569_vm0, %v7534_v35, 0.0 }
0x1603   : > { %3763 = vrot.lane.b32.xlu0 %v7453_v62, %s6687_s15  ;;  %v3573_v62 = vsel %vm569_vm0, %v6459_v56, 0.0  ;;  %s6694_s15 = smov [#allocation8]  }
0x161d   : > { %3392 = vadd.xlane.f32.xlu1 %v3391_v8 }
0x1621   : > { %3398 = vadd.xlane.f32.xlu1 %v3397_v22 }
0x1622   : > { %3395 = vadd.xlane.f32.xlu0 %v3394_v23 }
0x1625   : > { %3568 = vadd.xlane.f32.xlu1 %v3567_v37 }
0x1626   : > { %3401 = vadd.xlane.f32.xlu0 %v3400_v63 }
0x1629   : > { %3574 = vadd.xlane.f32.xlu1 %v3573_v62 }
0x162a   : > { %3571 = vadd.xlane.f32.xlu0 %v3570_v6 }
0x162e   : > { %3577 = vadd.xlane.f32.xlu0 %v3576_v5 }
0x1672   : > { %v3727_v33 = vpop.xlane.xlu0 %3726 }
0x1673   : > { %v3733_v41 = vsub.f32 %v6154_v30, %v3727_v33 }
0x1675   : > { %v3724_v44 = vpop.xlane.xlu1 %3723  ;;  %v3739_v13 = vmul.f32 1.442695, %v3733_v41 }
0x1676   : > { %v3732_v24 = vsub.f32 %v3707_v50, %v3724_v44  ;;  %v3721_v10 = vpop.xlane.xlu0 %3720  ;;  %v3224_v50 = vsel %vm569_vm0, %v7524_v21, 0.0 }
0x1677   : > { %v3731_v53 = vsub.f32 %v3704_v4, %v3721_v10  ;;  %v3215_v4 = vsel %vm569_vm0, %v7517_v36, 0.0 }
0x1678   : > { %v3737_v15 = vmul.f32 1.442695, %v3732_v24 }
0x1679   : > { %v3735_v57 = vmul.f32 1.442695, %v3731_v53  ;;  %v3762_v35 = vpop.permute.xlu1 %3761 }
0x167a   : > { %6462 = vpow2.f32 %v3737_v15  ;;  %v3730_v14 = vpop.xlane.xlu0 %3729  ;;  %6156 = vmatprep.subr.bf16.mxu0 %v3762_v35 }
0x167b   : > { %6464 = vpow2.f32 %v3735_v57  ;;  %v3734_v54 = vsub.f32 %v6155_v49, %v3730_v14  ;;  %6157 = vmatpush3.bf16.msra.mxu0 %v3762_v35  ;;  %v3221_v49 = vsel %vm569_vm0, %v7521_v60, 0.0 }
0x167c   : > { %6466 = vpow2.f32 %v3739_v13 }
0x167d   : > { %v3741_v55 = vmul.f32 1.442695, %v3734_v54 }
0x167e   : > { %v3764_v27 = vpop.permute.xlu0 %3763 }
0x167f   : > { %6468 = vpow2.f32 %v3741_v55  ;;  %6158 = vmatprep.subr.bf16.mxu0 %v3764_v27 }
0x1680   : > { %6159 = vmatpush3.bf16.msra.mxu0 %v3764_v27 }
0x1684   : > { %v6463_v52 = vpop.eup %6462 }
0x1685   : > { %v6465_v56 = vpop.eup %6464  ;;  %v3746_v11 = vsel %vm569_vm0, %v6463_v52, 0.0 }
0x1686   : > { %3747 = vadd.xlane.f32.xlu0 %v3746_v11  ;;  %v3743_v47 = vsel %vm569_vm0, %v6465_v56, 0.0  ;;  %v3759_v61 = vpack.c.bf16 %v6463_v52, %v6465_v56  ;;  %v6467_v9 = vpop.eup %6466 }
0x1687   : > { %3744 = vadd.xlane.f32.xlu1 %v3743_v47  ;;  %v3749_v1 = vsel %vm569_vm0, %v6467_v9, 0.0 }
0x1688   : > { %6160 = vmatprep.mubr.msk.bf16.mxu0 %vm569_vm0, %v3759_v61 }
0x1689   : > { %v6469_v2 = vpop.eup %6468 }
0x168a   : > { %v3752_v48 = vsel %vm569_vm0, %v6469_v2, 0.0  ;;  %v3760_v30 = vpack.c.bf16 %v6469_v2, %v6467_v9 }
0x168b   : > { %3750 = vadd.xlane.f32.xlu1 %v3749_v1  ;;  %3753 = vadd.xlane.f32.xlu0 %v3752_v48 }
0x168c   : > { %6161 = vmatmul.mubr.msk.bf16.vlgmr.msra.gmra.mrb[100].mxu0 %vm569_vm0, %v3760_v30 }
0x168f   : > { %3216 = vadd.xlane.f32.xlu1 %v3215_v4  ;;  %3219 = vadd.xlane.f32.xlu0 %v3218_v12 }
0x1693   : > { %3222 = vadd.xlane.f32.xlu1 %v3221_v49  ;;  %3225 = vadd.xlane.f32.xlu0 %v3224_v50 }
0x16aa   : > { %v3393_v45 = vpop.xlane.xlu1 %3392 }
0x16ab   : > { %6470 = vrcp.f32 %v3393_v45 }
0x16ae   : > { %v3399_v46 = vpop.xlane.xlu1 %3398 }
0x16af   : > { %v3396_v20 = vpop.xlane.xlu0 %3395 }
0x16b0   : > { %6472 = vrcp.f32 %v3396_v20 }
0x16b1   : > { %6474 = vrcp.f32 %v3399_v46 }
0x16b2   : > { %v3569_v36 = vpop.xlane.xlu1 %3568 }
0x16b3   : > { %v3402_v8 = vpop.xlane.xlu0 %3401 }
0x16b4   : > { %6476 = vrcp.f32 %v3402_v8 }
0x16b5   : > { %6478 = vrcp.f32 %v3569_v36  ;;  %v6471_v23 = vpop.eup %6470 }
0x16b6   : > { %v3575_v34 = vpop.xlane.xlu1 %3574  ;;  %v3470_v21 = vmul.f32 %v6471_v23, %v7561_v16 }
0x16b7   : > { %v3572_v22 = vpop.xlane.xlu0 %3571 }
0x16b8   : > { %6480 = vrcp.f32 %v3572_v22 }
0x16b9   : > { %6482 = vrcp.f32 %v3575_v34 }
0x16ba   : > { %v6473_v60 = vpop.eup %6472 }
0x16bb   : > { %v3578_v37 = vpop.xlane.xlu0 %3577  ;;  %v3471_v63 = vmul.f32 %v6473_v60, %v7565_v38  ;;  %v6475_v62 = vpop.eup %6474 }
0x16bc   : > { %6484 = vrcp.f32 %v3578_v37  ;;  %v3472_v33 = vmul.f32 %v6475_v62, %v7559_v39 }
0x16bd   : > { %v6318_v6 = vpack.i.bf16 %v3471_v63, %v3470_v21 }
0x16be   : > { %v6477_v5 = vpop.eup %6476 }
0x16bf   : > { %6319 = vrot.lane.b32.xlu1 %v6318_v6, %s6688_s19  ;;  %v3473_v41 = vmul.f32 %v6477_v5, %v7563_v19  ;;  %v6479_v44 = vpop.eup %6478  ;;  %v6354_v19 = vld [vmem:[%s7976_s3 + $0x10] sm:$0xff]  }
0x16c0   : > { %v3646_v53 = vmul.f32 %v6479_v44, %v7592_v40  ;;  %6164 = vmatprep.subr.bf16.mxu0 %v6354_v19 }
0x16c1   : > { %v6323_v24 = vpack.i.bf16 %v3473_v41, %v3472_v33  ;;  %6165 = vmatpush3.bf16.msra.mxu0 %v6354_v19 }
0x16c2   : > { %v6481_v10 = vpop.eup %6480 }
0x16c3   : > { %6324 = vrot.lane.b32.xlu0 %v6323_v24, %s6688_s19  ;;  %v3647_v16 = vmul.f32 %v6481_v10, %v7596_v18  ;;  %v6483_v38 = vpop.eup %6482 }
0x16c4   : > { %v3648_v57 = vmul.f32 %v6483_v38, %v7590_v28  ;;  %v6355_v28 = vld [vmem:[%s7976_s3 + $0x18] sm:$0xff]  }
0x16c5   : > { %v6328_v15 = vpack.i.bf16 %v3647_v16, %v3646_v53  ;;  %6166 = vmatprep.subr.bf16.mxu0 %v6355_v28 }
0x16c6   : > { %v6485_v13 = vpop.eup %6484  ;;  %6167 = vmatpush3.bf16.msra.mxu0 %v6355_v28 }
0x16c7   : > { %6329 = vrot.lane.b32.xlu1 %v6328_v15, %s6689_s21  ;;  %v3649_v39 = vmul.f32 %v6485_v13, %v7594_v17 }
0x16c9   : > { %v6333_v35 = vpack.i.bf16 %v3649_v39, %v3648_v57 }
0x16cb   : > { %6334 = vrot.lane.b32.xlu1 %v6333_v35, %s6689_s21  ;;  %s6602_s21 = sshll.u32 %s6694_s15, 4  ;;  %s6603_s21 = int_to_ptr.vmem [resolvable:$false] %s6602_s21 }
0x16cc   : > { %s6604_s29 = scalar_lea.vmem %s6603_s21, 512  ;;  %p6605_p4 = scmp.lt.s32.totalorder %s7924_s28, %s6603_s21 }
0x1713   : > { %v3748_v40 = vpop.xlane.xlu0 %3747 }
0x1714   : > { %v3745_v18 = vpop.xlane.xlu1 %3744  ;;  %6486 = vrcp.f32 %v3748_v40 }
0x1718   : > { %v3754_v14 = vpop.xlane.xlu0 %3753  ;;  %v3751_v54 = vpop.xlane.xlu1 %3750 }
0x1719   : > { %6488 = vrcp.f32 %v3754_v14 }
0x171a   : > { %6490 = vrcp.f32 %v3751_v54 }
0x171b   : > { %6492 = vrcp.f32 %v3745_v18 }
0x171c   : > { %v3217_v12 = vpop.xlane.xlu1 %3216  ;;  %v3220_v49 = vpop.xlane.xlu0 %3219 }
0x171d   : > { %6494 = vrcp.f32 %v3220_v49 }
0x171e   : > { %v6487_v17 = vpop.eup %6486  ;;  %6496 = vrcp.f32 %v3217_v12 }
0x1720   : > { %v3223_v50 = vpop.xlane.xlu1 %3222  ;;  %v3226_v45 = vpop.xlane.xlu0 %3225 }
0x1721   : > { %6498 = vrcp.f32 %v3226_v45 }
0x1722   : > { %6500 = vrcp.f32 %v3223_v50 }
0x1723   : > { %v6489_v27 = vpop.eup %6488 }
0x1724   : > { %v6491_v56 = vpop.eup %6490 }
0x1725   : > { %v6493_v47 = vpop.eup %6492 }
0x1727   : > { %v6495_v36 = vpop.eup %6494 }
0x1728   : > { %v6497_v8 = vpop.eup %6496  ;;  %v3295_v5 = vmul.f32 %v6495_v36, %v7557_v42 }
0x1729   : > { %v3294_v6 = vmul.f32 %v6497_v8, %v7553_v26 }
0x172b   : > { %v6499_v22 = vpop.eup %6498 }
0x172c   : > { %v6501_v60 = vpop.eup %6500  ;;  %v3297_v44 = vmul.f32 %v6499_v22, %v7555_v59 }
0x172d   : > { %v3296_v24 = vmul.f32 %v6501_v60, %v7551_v31 }
0x1731   : > { %v6320_v46 = vpop.permute.xlu1 %6319 }
0x1732   : > { %v6322_v37 = vunpack.i.h.bf16 %v6320_v46  ;;  %v6321_v21 = vunpack.i.l.bf16 %v6320_v46 }
0x1734   : > { %v3875_v16 = vsel %vm633_vm1, %v3295_v5, %v6322_v37  ;;  %v3874_v38 = vsel %vm633_vm1, %v3294_v6, %v6321_v21 }
0x1735   : > { %v6325_v34 = vpop.permute.xlu0 %6324 }
0x1736   : > { %v6327_v63 = vunpack.i.h.bf16 %v6325_v34  ;;  %v6326_v62 = vunpack.i.l.bf16 %v6325_v34 }
0x1738   : > { %v3877_v13 = vsel %vm633_vm1, %v3297_v44, %v6327_v63  ;;  %v3876_v57 = vsel %vm633_vm1, %v3296_v24, %v6326_v62 }
0x1739   : > { %v6330_v20 = vpop.permute.xlu1 %6329 }
0x173a   : > { %v6332_v10 = vunpack.i.h.bf16 %v6330_v20  ;;  %v6331_v53 = vunpack.i.l.bf16 %v6330_v20 }
0x173c   : > { %v3878_v40 = vsel %vm1382_vm2, %v3874_v38, %v6331_v53  ;;  %v3879_v18 = vsel %vm1382_vm2, %v3875_v16, %v6332_v10  ;;  %v4051_v10 = vld [vmem:[#allocation5 + $0x100] sm:$0xff]  ;;  %v4052_v16 = vld [vmem:[#allocation5 + $0x108] sm:$0xff] }
0x173d   : > { %v6335_v23 = vpop.permute.xlu1 %6334  ;;  %v4053_v53 = vld [vmem:[#allocation5 + $0x140] sm:$0xff] }
0x173e   : > { %v6337_v33 = vunpack.i.h.bf16 %v6335_v23  ;;  %v6336_v41 = vunpack.i.l.bf16 %v6335_v23  ;;  %v5831_v38 = vcombine.high %v4051_v10, %v4053_v53 }
0x1740   : > { %v3881_v35 = vsel %vm1382_vm2, %v3877_v13, %v6337_v33  ;;  %v3880_v59 = vsel %vm1382_vm2, %v3876_v57, %v6336_v41  ;;  %v5830_v13 = vcombine.low %v4051_v10, %v4053_v53  ;;  %4128 = vmatprep.subr.bf16.mxu1 %v5831_v38 }
0x1742   : > { %4129 = vmatpush1.bf16.msra.mxu1 %v5830_v13  ;;  %v4467_v13 = vld [vmem:[#allocation7 + $0x110] sm:$0xff] }
0x175f   : > { %v6162_v55 = vpop.f32.mrb[100].mxu0 }
0x1760   : > { %v3807_v52 = vpop.f32.mrb[101].mxu0  ;;  %v3824_v61 = vmul.f32 %v6491_v56, %v6162_v55 }
0x1761   : > { %v6163_v11 = vpop.f32.mrb[102].mxu0  ;;  %v3822_v1 = vmul.f32 %v6493_v47, %v3807_v52  ;;  %v5820_v52 = vld [vmem:[#allocation2 + $0x1] ss:$0 sm:$0xff] }
0x1762   : > { %v3825_v9 = vmul.f32 %v6489_v27, %v6163_v11  ;;  %v3810_v2 = vpop.f32.mrb[103].mxu0 }
0x1763   : > { %v3823_v48 = vmul.f32 %v6487_v17, %v3810_v2 }
0x1764   : > { %v6343_v30 = vpack.i.bf16 %v3825_v9, %v3824_v61 }
0x1765   : > { %v6338_v4 = vpack.i.bf16 %v3823_v48, %v3822_v1 }
0x1766   : > { %6344 = vrot.lane.b32.xlu1 %v6343_v30, %s8030_s5 }
0x1767   : > { %6339 = vrot.lane.b32.xlu0 %v6338_v4, %s8030_s5  ;;  %s5928_s5 = sshll.u32 %s6797_s22, 8  ;;  %s6598_s22 = scalar_lea.vmem %s7924_s28, 256 }
0x1768   : > { %s7929_s14 = scalar_lea.hbm %s8034_s16, %s5928_s5  ;;  %p6599_p12 = scmp.ne.s32.totalorder %s7924_s28, %s6598_s22 }
0x1769   : > { %p6606_p7 = scmp.lt.s32.totalorder %s6604_s29, %s6598_s22 }
0x176a   : > { %p6600_p2 = pnand %p6599_p12, %p8035_p1 }
0x176b   : > { %p6607_p8 = por %p6606_p7, %p6605_p4 }
0x176c   : > { %p6601_p3 = pneg %p6600_p2 }
0x176e   : > { %p6608_p11 = pnand %p6607_p8, %p6601_p3 }
0x17d8   : > { %v6345_v15 = vpop.permute.xlu1 %6344 }
0x17d9   : > { %v6347_v26 = vunpack.i.h.bf16 %v6345_v15  ;;  %v6346_v39 = vunpack.i.l.bf16 %v6345_v15  ;;  %v6340_v42 = vpop.permute.xlu0 %6339  ;;  %v4054_v15 = vld [vmem:[#allocation5 + $0x148] sm:$0xff] }
0x17da   : > { %v6342_v19 = vunpack.i.h.bf16 %v6340_v42  ;;  %v6341_v31 = vunpack.i.l.bf16 %v6340_v42  ;;  %v5832_v57 = vcombine.low %v4052_v16, %v4054_v15  ;;  %v4057_v42 = vld [vmem:[#allocation5 + $0x1c0] sm:$0xff] }
0x17db   : > { %v3884_v14 = vsel %vm1387_vm3, %v3880_v59, %v6346_v39  ;;  %v3885_v54 = vsel %vm1387_vm3, %v3881_v35, %v6347_v26  ;;  %v5833_v26 = vcombine.high %v4052_v16, %v4054_v15  ;;  %v4055_v39 = vld [vmem:[#allocation5 + $0x180] sm:$0xff]  ;;  %v4056_v35 = vld [vmem:[#allocation5 + $0x188] sm:$0xff] }
0x17dc   : > { %v3887_v28 = vpack.c.bf16 %v3885_v54, %v3884_v14  ;;  %v3882_v17 = vsel %vm1387_vm3, %v3878_v40, %v6341_v31  ;;  %v3883_v55 = vsel %vm1387_vm3, %v3879_v18, %v6342_v19  ;;  %v5835_v59 = vcombine.high %v4055_v39, %v4057_v42  ;;  %v4058_v19 = vld [vmem:[#allocation5 + $0x1c8] sm:$0xff]  ;;  %v4267_v14 = vld [vmem:[#allocation5 + $0x110] sm:$0xff] }
0x17dd   : > { %v3886_v27 = vpack.c.bf16 %v3883_v55, %v3882_v17  ;;  %4181 = vmatprep.subr.bf16.mxu0 %v5833_v26  ;;  %v5834_v31 = vcombine.low %v4055_v39, %v4057_v42  ;;  %v5836_v40 = vcombine.low %v4056_v35, %v4058_v19  ;;  %v5837_v18 = vcombine.high %v4056_v35, %v4058_v19  ;;  %v4269_v54 = vld [vmem:[#allocation5 + $0x150] sm:$0xff]  ;;  %v4468_v26 = vld [vmem:[#allocation7 + $0x118] sm:$0xff] }
0x17de   : > { %4130 = vmatprep.subr.bf16.mxu1 %v5835_v59  ;;  %v5843_v17 = vcombine.low %v4267_v14, %v4269_v54  ;;  %v5844_v55 = vcombine.high %v4267_v14, %v4269_v54  ;;  %v4470_v42 = vld [vmem:[#allocation7 + $0x158] sm:$0xff] }
0x17df   : > { %6168 = vmatprep.mubr.msk.bf16.mxu0 %vm569_vm0, %v3886_v27  ;;  %4131 = vmatpush1.bf16.msra.mxu1 %v5834_v31  ;;  %v4270_v27 = vld [vmem:[#allocation5 + $0x158] sm:$0xff]  ;;  %v5857_v59 = vcombine.low %v4468_v26, %v4470_v42  ;;  %v5858_v19 = vcombine.high %v4468_v26, %v4470_v42  ;;  %v4471_v31 = vld [vmem:[#allocation7 + $0x190] sm:$0xff] }
0x17e0   : > { %6169 = vmatmul.mubr.msk.bf16.vlgmr.msra.gmra.mrb[104].mxu0 %vm569_vm0, %v3887_v28  ;;  %v4268_v28 = vld [vmem:[#allocation5 + $0x118] sm:$0xff]  ;;  %4337 = vmatprep.subr.bf16.mxu1 %v5844_v55  ;;  %v5842_v42 = vld [vmem:[%s7979_s6 + $0x14] sm:$0xf] }
0x17e1   : > { %4213 = vmatprep.mubr.bf16.mxu0 %v6691_v58  ;;  %4182 = vmatpush1.bf16.msra.mxu0 %v5832_v57  ;;  %v4469_v57 = vld [vmem:[#allocation7 + $0x150] sm:$0xff]  ;;  %v4474_v54 = vld [vmem:[#allocation7 + $0x1d8] sm:$0xff] }
0x17e2   : > { %4183 = vmatprep.subr.bf16.mxu0 %v5837_v18  ;;  %v5856_v39 = vcombine.high %v4467_v13, %v4469_v57  ;;  %v5855_v35 = vcombine.low %v4467_v13, %v4469_v57  ;;  %v4472_v18 = vld [vmem:[#allocation7 + $0x198] sm:$0xff] }
0x17e3   : > { %v5862_v55 = vcombine.high %v4472_v18, %v4474_v54 }
0x17e5   : > { %4184 = vmatpush1.bf16.msra.mxu0 %v5836_v40  ;;  %v4473_v40 = vld [vmem:[#allocation7 + $0x1d0] sm:$0xff] }
0x17e6   : > { %v5860_v14 = vcombine.high %v4471_v31, %v4473_v40 }
0x18b3   : > { %v6170_v56 = vpop.f32.mrb[104].mxu0 }
0x18b4   : > { %v3953_v11 = vpop.f32.mrb[105].mxu0  ;;  %v3962_v47 = vadd.f32 %v6170_v56, %v5820_v52  ;;  %v5846_v56 = vcombine.high %v4268_v28, %v4270_v27 }
0x18b5   : > { %v3954_v61 = vadd.f32 %v5820_v52, %v3953_v11  ;;  %v6171_v9 = vpop.f32.mrb[106].mxu0 }
0x18b6   : > { %v3956_v2 = vpop.f32.mrb[107].mxu0  ;;  %v3970_v30 = vadd.f32 %v3962_v47, %v7443_v51  ;;  %v3965_v4 = vadd.f32 %v6171_v9, %v5820_v52  ;;  %4390 = vmatprep.subr.bf16.mxu0 %v5846_v56  ;;  %v7745_v56 = vld [vmem:[#allocation7 + $0x108] sm:$0xff] }
0x18b7   : > { %v3968_v1 = vadd.f32 %v3954_v61, %v7436_v43  ;;  %v3957_v48 = vadd.f32 %v5820_v52, %v3956_v2  ;;  %v5845_v52 = vcombine.low %v4268_v28, %v4270_v27  ;;  %v5859_v28 = vcombine.low %v4471_v31, %v4473_v40  ;;  %v7741_v27 = vld [vmem:[#allocation7 + $0x100] sm:$0xff] }
0x18b8   : > { %v3971_v45 = vadd.f32 %v3965_v4, %v7445_v3  ;;  %v3978_v46 = vsel %vm569_vm0, %v3970_v30, 0.0 }
0x18b9   : > { %v3969_v12 = vadd.f32 %v3957_v48, %v7438_v7  ;;  %v3972_v49 = vsel %vm569_vm0, %v3968_v1, 0.0 }
0x18ba   : > { %3973 = vadd.xlane.f32.xlu0 %v3972_v49  ;;  %v3981_v20 = vsel %vm569_vm0, %v3971_v45, 0.0 }
0x18bb   : > { %v3975_v50 = vsel %vm569_vm0, %v3969_v12, 0.0 }
0x18bc   : > { %3976 = vadd.xlane.f32.xlu1 %v3975_v50 }
0x18be   : > { %3979 = vadd.xlane.f32.xlu0 %v3978_v46  ;;  %v5826_v46 = vld [vmem:[%s7982_s9 + $0x1] ss:$0 sm:$0xff] }
0x18c2   : > { %3982 = vadd.xlane.f32.xlu0 %v3981_v20 }
0x1947   : > { %v3974_v43 = vpop.xlane.xlu0 %3973 }
0x1948   : > { %v3984_v36 = vmul.f32 0.03125, %v3974_v43 }
0x1949   : > { %v3977_v51 = vpop.xlane.xlu1 %3976 }
0x194a   : > { %v7679_v8 = vsub.f32 %v3968_v1, %v3984_v36  ;;  %v3985_v7 = vmul.f32 0.03125, %v3977_v51 }
0x194b   : > { %v3980_v34 = vpop.xlane.xlu0 %3979 }
0x194c   : > { %v7681_v22 = vsub.f32 %v3969_v12, %v3985_v7  ;;  %v3986_v23 = vmul.f32 0.03125, %v3980_v34  ;;  %v3992_v60 = vmul.f32 %v7679_v8, %v7679_v8  ;;  %v5828_v34 = vld [vmem:[%s7983_s10 + $0x1] ss:$0 sm:$0xff] }
0x194e   : > { %v7685_v3 = vsub.f32 %v3970_v30, %v3986_v23  ;;  %v3996_v37 = vsel %vm569_vm0, %v3992_v60, 0.0  ;;  %v3993_v21 = vmul.f32 %v7681_v22, %v7681_v22  ;;  %v4271_v60 = vld [vmem:[#allocation5 + $0x190] sm:$0xff] }
0x194f   : > { %3997 = vadd.xlane.f32.xlu1 %v3996_v37  ;;  %v3983_v63 = vpop.xlane.xlu0 %3982 }
0x1950   : > { %v3987_v62 = vmul.f32 0.03125, %v3983_v63  ;;  %v3999_v6 = vsel %vm569_vm0, %v3993_v21, 0.0  ;;  %v3994_v5 = vmul.f32 %v7685_v3, %v7685_v3 }
0x1951   : > { %4000 = vadd.xlane.f32.xlu0 %v3999_v6  ;;  %v4272_v6 = vld [vmem:[#allocation5 + $0x198] sm:$0xff] }
0x1952   : > { %v7693_v33 = vsub.f32 %v3971_v45, %v3987_v62  ;;  %v4002_v41 = vsel %vm569_vm0, %v3994_v5, 0.0  ;;  %v4273_v62 = vld [vmem:[#allocation5 + $0x1d0] sm:$0xff]  ;;  %v4274_v5 = vld [vmem:[#allocation5 + $0x1d8] sm:$0xff] }
0x1953   : > { %4003 = vadd.xlane.f32.xlu1 %v4002_v41  ;;  %v5849_v16 = vcombine.low %v4272_v6, %v4274_v5 }
0x1954   : > { %v3995_v44 = vmul.f32 %v7693_v33, %v7693_v33 }
0x1956   : > { %v4005_v24 = vsel %vm569_vm0, %v3995_v44, 0.0 }
0x1957   : > { %4006 = vadd.xlane.f32.xlu0 %v4005_v24  ;;  %v5850_v24 = vcombine.high %v4272_v6, %v4274_v5 }
0x19dc   : > { %v3998_v11 = vpop.xlane.xlu1 %3997 }
0x19dd   : > { %v4008_v47 = vmul.f32 0.03125, %v3998_v11 }
0x19de   : > { %v4001_v61 = vpop.xlane.xlu0 %4000 }
0x19df   : > { %v4012_v9 = vadd.f32 1e-05, %v4008_v47  ;;  %v4009_v2 = vmul.f32 0.03125, %v4001_v61  ;;  %v7749_v47 = vld [vmem:[#allocation7 + $0x148] sm:$0xff] }
0x19e0   : > { %v4004_v1 = vpop.xlane.xlu1 %4003 }
0x19e1   : > { %6502 = vrsqrt.f32 %v4012_v9  ;;  %v4013_v48 = vadd.f32 1e-05, %v4009_v2  ;;  %v4010_v30 = vmul.f32 0.03125, %v4004_v1  ;;  %v5865_v9 = vcombine.low %v7745_v56, %v7749_v47  ;;  %v5829_v1 = vld [vmem:[%s7979_s6 + $0x10] sm:$0xf] }
0x19e2   : > { %v5866_v2 = vcombine.high %v7745_v56, %v7749_v47 }
0x19e3   : > { %6504 = vrsqrt.f32 %v4013_v48  ;;  %v4014_v4 = vadd.f32 1e-05, %v4010_v30  ;;  %v4065_v48 = vrot.slane %v5829_v1, %v7249_v25  ;;  %v4073_v30 = vrot.slane %v5829_v1, %v7251_v29 }
0x19e4   : > { %v4007_v12 = vpop.xlane.xlu0 %4006 }
0x19e5   : > { %6506 = vrsqrt.f32 %v4014_v4  ;;  %v4011_v49 = vmul.f32 0.03125, %v4007_v12  ;;  %v4069_v4 = vrot.slane %v5829_v1, %v7256_v0  ;;  %v4077_v12 = vrot.slane %v5829_v1, %v7258_v32 }
0x19e6   : > { %v7779_v1 = vrot.slane %v5842_v42, %v7251_v29 }
0x19e7   : > { %v4015_v50 = vadd.f32 1e-05, %v4011_v49 }
0x19e9   : > { %6508 = vrsqrt.f32 %v4015_v50 }
0x19eb   : > { %v6503_v45 = vpop.eup %6502 }
0x19ec   : > { %v4020_v20 = vmul.f32 %v6503_v45, %v7679_v8 }
0x19ed   : > { %v6505_v43 = vpop.eup %6504 }
0x19ee   : > { %v4032_v36 = vmul.f32 %v5826_v46, %v4020_v20  ;;  %v4021_v51 = vmul.f32 %v6505_v43, %v7681_v22  ;;  %v5848_v22 = vcombine.high %v4271_v60, %v4273_v62 }
0x19ef   : > { %v6507_v7 = vpop.eup %6506 }
0x19f0   : > { %v4033_v23 = vmul.f32 %v5826_v46, %v4021_v51  ;;  %v4044_v37 = vadd.f32 %v5828_v34, %v4032_v36  ;;  %v4022_v63 = vmul.f32 %v6507_v7, %v7685_v3  ;;  %v5847_v3 = vcombine.low %v4271_v60, %v4273_v62 }
0x19f2   : > { %v4045_v21 = vadd.f32 %v5828_v34, %v4033_v23  ;;  %v4034_v10 = vmul.f32 %v5826_v46, %v4022_v63 }
0x19f3   : > { %v6509_v41 = vpop.eup %6508 }
0x19f4   : > { %v7708_v8 = vpack.c.bf16 %v4045_v21, %v4044_v37  ;;  %v4023_v44 = vmul.f32 %v6509_v41, %v7693_v33  ;;  %v7719_v33 = vadd.f32 %v5828_v34, %v4034_v10 }
0x19f6   : > { %v4035_v53 = vmul.f32 %v5826_v46, %v4023_v44  ;;  %5838 = vmatmul.mubr.msk.bf16.vlgmr.msra.gmra.mrb[100].mxu1 %vm569_vm0, %v7708_v8  ;;  %5840 = vmatmul.mubr.msk.bf16.vlgmr.msra.gmra.mrb[108].mxu0 %vm569_vm0, %v7708_v8 }
0x19f7   : > { %4338 = vmatpush1.bf16.msra.mxu1 %v5843_v17  ;;  %4391 = vmatpush1.bf16.msra.mxu0 %v5845_v52  ;;  %v5861_v17 = vcombine.low %v4472_v18, %v4474_v54  ;;  %v7743_v52 = vld [vmem:[#allocation7 + $0x140] sm:$0xff] }
0x19f8   : > { %v7715_v38 = vadd.f32 %v5828_v34, %v4035_v53  ;;  %4170 = vmatprep.mubr.bf16.mxu1 %v6691_v58  ;;  %4223 = vmatprep.mubr.bf16.mxu0 %v6691_v58  ;;  %v5864_v11 = vcombine.high %v7741_v27, %v7743_v52  ;;  %v5863_v61 = vcombine.low %v7741_v27, %v7743_v52  ;;  %v4744_v27 = vld [vmem:[#allocation5 + $0x128] sm:$0xff] }
0x19f9   : > { %4339 = vmatprep.subr.bf16.mxu1 %v5848_v22  ;;  %4392 = vmatprep.subr.bf16.mxu0 %v5850_v24  ;;  %v4746_v52 = vld [vmem:[#allocation5 + $0x168] sm:$0xff] }
0x19fa   : > { %v7723_v15 = vpack.c.bf16 %v7715_v38, %v7719_v33 }
0x19fb   : > { %4340 = vmatpush1.bf16.msra.mxu1 %v5847_v3  ;;  %4393 = vmatpush1.bf16.msra.mxu0 %v5849_v16 }
0x19fc   : > { %4515 = vmatprep.subr.bf16.mxu1 %v5856_v39  ;;  %4562 = vmatprep.subr.bf16.mxu0 %v5858_v19 }
0x19fe   : > { %5839 = vmatmul.mubr.msk.bf16.gmra.mrb[104].mxu1 %vm569_vm0, %v7723_v15  ;;  %5841 = vmatmul.mubr.msk.bf16.gmra.mrb[112].mxu0 %vm569_vm0, %v7723_v15 }
0x19ff   : > { %4369 = vmatprep.mubr.bf16.mxu1 %v6691_v58  ;;  %4422 = vmatprep.mubr.bf16.mxu0 %v6691_v58 }
0x1a06   : > { %5851 = vmatmul.mubr.msk.bf16.vlgmr.msra.gmra.mrb[108].mxu1 %vm569_vm0, %v7708_v8  ;;  %5853 = vmatmul.mubr.msk.bf16.vlgmr.msra.gmra.mrb[116].mxu0 %vm569_vm0, %v7708_v8 }
0x1a07   : > { %4379 = vmatprep.mubr.bf16.mxu1 %v6691_v58  ;;  %4432 = vmatprep.mubr.bf16.mxu0 %v6691_v58 }
0x1a08   : > { %4516 = vmatpush1.bf16.xpose.msra.mxu1 %v5855_v35  ;;  %4563 = vmatpush1.bf16.xpose.msra.mxu0 %v5857_v59 }
0x1a09   : > { %4517 = vmatprep.subr.bf16.mxu1 %v5860_v14  ;;  %4564 = vmatprep.subr.bf16.mxu0 %v5862_v55 }
0x1a0e   : > { %5852 = vmatmul.mubr.msk.bf16.gmra.mrb[112].mxu1 %vm569_vm0, %v7723_v15  ;;  %5854 = vmatmul.mubr.msk.bf16.gmra.mrb[120].mxu0 %vm569_vm0, %v7723_v15 }
0x1a10   : > { %4518 = vmatpush1.bf16.xpose.msra.mxu1 %v5859_v28  ;;  %4565 = vmatpush1.bf16.xpose.msra.mxu0 %v5861_v17 }
0x1a11   : > { %4649 = vmatprep.subr.bf16.mxu1 %v5864_v11  ;;  %4696 = vmatprep.subr.bf16.mxu0 %v5866_v2  ;;  %v7776_v2 = vrot.slane %v5842_v42, %v7249_v25 }
0x1ac9   : > { %v4162_v49 = vpop.f32.mrb[100].mxu1  ;;  %v4215_v50 = vpop.f32.mrb[108].mxu0 }
0x1aca   : > { %v4163_v45 = vadd.f32 %v4162_v49, %v4065_v48  ;;  %v4216_v46 = vadd.f32 %v4215_v50, %v4073_v30  ;;  %v4164_v20 = vpop.f32.mrb[101].mxu1  ;;  %v4217_v43 = vpop.f32.mrb[109].mxu0 }
0x1acb   : > { %v4165_v36 = vadd.f32 %v4164_v20, %v4069_v4  ;;  %v4218_v51 = vadd.f32 %v4217_v43, %v4077_v12  ;;  %v4166_v7 = vpop.f32.mrb[102].mxu1  ;;  %v4219_v34 = vpop.f32.mrb[110].mxu0 }
0x1acc   : > { %v4167_v23 = vadd.f32 %v4166_v7, %v4065_v48  ;;  %v4220_v60 = vadd.f32 %v4219_v34, %v4073_v30  ;;  %v4168_v37 = vpop.f32.mrb[103].mxu1  ;;  %v4221_v21 = vpop.f32.mrb[111].mxu0  ;;  %v4234_v6 = vmax.f32 %v4163_v45, 0.0  ;;  %v4236_v5 = vmax.f32 %v4216_v46, 0.0 }
0x1acd   : > { %v4169_v63 = vadd.f32 %v4168_v37, %v4069_v4  ;;  %v4222_v62 = vadd.f32 %v4221_v21, %v4077_v12  ;;  %v4235_v22 = vmax.f32 %v4165_v36, 0.0  ;;  %v4237_v24 = vmax.f32 %v4218_v51, 0.0 }
0x1ace   : > { %v4238_v41 = vmax.f32 %v4167_v23, 0.0  ;;  %v4240_v44 = vmax.f32 %v4220_v60, 0.0  ;;  %v7782_v45 = vrot.slane %v5842_v42, %v7256_v0  ;;  %v7785_v46 = vrot.slane %v5842_v42, %v7258_v32 }
0x1acf   : > { %v4239_v10 = vmax.f32 %v4169_v63, 0.0  ;;  %v4241_v53 = vmax.f32 %v4222_v62, 0.0 }
0x1ad0   : > { %v7764_v3 = vpack.c.bf16 %v4238_v41, %v4234_v6  ;;  %v7766_v16 = vpack.c.bf16 %v4240_v44, %v4236_v5 }
0x1ad1   : > { %v7768_v13 = vpack.c.bf16 %v4239_v10, %v4235_v22  ;;  %v7770_v57 = vpack.c.bf16 %v4241_v53, %v4237_v24  ;;  %v4172_v26 = vpop.f32.mrb[104].mxu1  ;;  %v4225_v39 = vpop.f32.mrb[112].mxu0 }
0x1ad2   : > { %v4173_v35 = vadd.f32 %v4172_v26, %v4065_v48  ;;  %v4226_v59 = vadd.f32 %v4225_v39, %v4073_v30  ;;  %v4174_v19 = vpop.f32.mrb[105].mxu1  ;;  %v4227_v31 = vpop.f32.mrb[113].mxu0 }
0x1ad3   : > { %v4175_v40 = vadd.f32 %v4174_v19, %v4069_v4  ;;  %v4228_v18 = vadd.f32 %v4227_v31, %v4077_v12  ;;  %v4176_v14 = vpop.f32.mrb[106].mxu1  ;;  %v4229_v54 = vpop.f32.mrb[114].mxu0 }
0x1ad4   : > { %v4177_v28 = vadd.f32 %v4176_v14, %v4065_v48  ;;  %v4230_v17 = vadd.f32 %v4229_v54, %v4073_v30  ;;  %v4178_v55 = vpop.f32.mrb[107].mxu1  ;;  %v4231_v11 = vpop.f32.mrb[115].mxu0  ;;  %v4242_v20 = vmax.f32 %v4173_v35, 0.0  ;;  %v4244_v43 = vmax.f32 %v4226_v59, 0.0  ;;  %v4265_v14 = vld [vmem:[#allocation7 + $0x1c0] sm:$0xff] }
0x1ad5   : > { %v4179_v49 = vadd.f32 %v4178_v55, %v4069_v4  ;;  %v4232_v50 = vadd.f32 %v4231_v11, %v4077_v12  ;;  %v4243_v36 = vmax.f32 %v4175_v40, 0.0  ;;  %v4245_v51 = vmax.f32 %v4228_v18, 0.0  ;;  %v4263_v18 = vld [vmem:[#allocation7 + $0x180] sm:$0xff]  ;;  %v4264_v11 = vld [vmem:[#allocation7 + $0x188] sm:$0xff] }
0x1ad6   : > { %v4246_v48 = vmax.f32 %v4177_v28, 0.0  ;;  %v4248_v30 = vmax.f32 %v4230_v17, 0.0  ;;  %v5867_v56 = vcombine.low %v4263_v18, %v4265_v14 }
0x1ad7   : > { %v4247_v7 = vmax.f32 %v4179_v49, 0.0  ;;  %v4249_v34 = vmax.f32 %v4232_v50, 0.0  ;;  %v4266_v49 = vld [vmem:[#allocation7 + $0x1c8] sm:$0xff] }
0x1ad8   : > { %v7787_v23 = vpack.c.bf16 %v4246_v48, %v4242_v20  ;;  %v7789_v60 = vpack.c.bf16 %v4248_v30, %v4244_v43  ;;  %v5869_v47 = vcombine.low %v4264_v11, %v4266_v49 }
0x1ad9   : > { %v7791_v4 = vpack.c.bf16 %v4247_v7, %v4243_v36  ;;  %v7793_v12 = vpack.c.bf16 %v4249_v34, %v4245_v51  ;;  %v4371_v37 = vpop.f32.mrb[108].mxu1  ;;  %v4424_v21 = vpop.f32.mrb[116].mxu0 }
0x1ada   : > { %v4372_v63 = vadd.f32 %v4371_v37, %v7776_v2  ;;  %v4425_v62 = vadd.f32 %v4424_v21, %v7779_v1  ;;  %v4373_v6 = vpop.f32.mrb[109].mxu1  ;;  %v4426_v5 = vpop.f32.mrb[117].mxu0  ;;  %v5868_v21 = vcombine.high %v4263_v18, %v4265_v14  ;;  %v5874_v14 = vcombine.low %v4744_v27, %v4746_v52 }
0x1adb   : > { %v4374_v41 = vadd.f32 %v4373_v6, %v7782_v45  ;;  %v4427_v44 = vadd.f32 %v4426_v5, %v7785_v46  ;;  %v4375_v22 = vpop.f32.mrb[110].mxu1  ;;  %v4428_v24 = vpop.f32.mrb[118].mxu0 }
0x1adc   : > { %v4376_v10 = vadd.f32 %v4375_v22, %v7776_v2  ;;  %v4429_v53 = vadd.f32 %v4428_v24, %v7779_v1  ;;  %v4377_v26 = vpop.f32.mrb[111].mxu1  ;;  %v4430_v39 = vpop.f32.mrb[119].mxu0  ;;  %v4443_v59 = vmax.f32 %v4372_v63, 0.0  ;;  %v4445_v19 = vmax.f32 %v4425_v62, 0.0 }
0x1add   : > { %v4378_v42 = vadd.f32 %v4377_v26, %v7782_v45  ;;  %v4431_v35 = vadd.f32 %v4430_v39, %v7785_v46  ;;  %v4444_v54 = vmax.f32 %v4374_v41, 0.0  ;;  %v4446_v28 = vmax.f32 %v4427_v44, 0.0 }
0x1ade   : > { %v4447_v31 = vmax.f32 %v4376_v10, 0.0  ;;  %v4449_v40 = vmax.f32 %v4429_v53, 0.0  ;;  %v5870_v63 = vcombine.high %v4264_v11, %v4266_v49 }
0x1adf   : > { %v4448_v17 = vmax.f32 %v4378_v42, 0.0  ;;  %v4450_v55 = vmax.f32 %v4431_v35, 0.0 }
0x1ae0   : > { %v4459_v50 = vpack.c.bf16 %v4447_v31, %v4443_v59  ;;  %v4461_v20 = vpack.c.bf16 %v4449_v40, %v4445_v19  ;;  %v4743_v31 = vld [vmem:[#allocation5 + $0x120] sm:$0xff] }
0x1ae1   : > { %v4460_v43 = vpack.c.bf16 %v4448_v17, %v4444_v54  ;;  %v4462_v48 = vpack.c.bf16 %v4450_v55, %v4446_v28  ;;  %v4381_v30 = vpop.f32.mrb[112].mxu1  ;;  %v4434_v36 = vpop.f32.mrb[120].mxu0  ;;  %v4745_v54 = vld [vmem:[#allocation5 + $0x160] sm:$0xff]  ;;  %v5875_v17 = vcombine.high %v4744_v27, %v4746_v52 }
0x1ae2   : > { %v4382_v51 = vadd.f32 %v4381_v30, %v7776_v2  ;;  %v4435_v7 = vadd.f32 %v4434_v36, %v7779_v1  ;;  %v4383_v34 = vpop.f32.mrb[113].mxu1  ;;  %v4436_v37 = vpop.f32.mrb[121].mxu0  ;;  %v4747_v55 = vld [vmem:[#allocation5 + $0x1a0] sm:$0xff]  ;;  %v5872_v18 = vcombine.low %v4743_v31, %v4745_v54 }
0x1ae3   : > { %v4384_v62 = vadd.f32 %v4383_v34, %v7782_v45  ;;  %v4437_v6 = vadd.f32 %v4436_v37, %v7785_v46  ;;  %v4385_v5 = vpop.f32.mrb[114].mxu1  ;;  %v4438_v41 = vpop.f32.mrb[122].mxu0  ;;  %4547 = vmatprep.mubr.bf16.mxu1 %v4460_v43  ;;  %4594 = vmatprep.mubr.bf16.mxu0 %v4462_v48  ;;  %v4750_v43 = vld [vmem:[#allocation5 + $0x1e8] sm:$0xff]  ;;  %v4947_v36 = vld [vmem:[#allocation7 + $0x1a0] sm:$0xff] }
0x1ae4   : > { %v4386_v44 = vadd.f32 %v4385_v5, %v7776_v2  ;;  %v4439_v22 = vadd.f32 %v4438_v41, %v7779_v1  ;;  %v4387_v24 = vpop.f32.mrb[115].mxu1  ;;  %v4440_v10 = vpop.f32.mrb[123].mxu0  ;;  %4548 = vmatmul.mubr.bf16.vlgmr.msra.gmra.mrb[116].mxu1 %v4459_v50  ;;  %4595 = vmatmul.mubr.bf16.vlgmr.msra.gmra.mrb[124].mxu0 %v4461_v20  ;;  %v4451_v39 = vmax.f32 %v4382_v51, 0.0  ;;  %v4453_v2 = vmax.f32 %v4435_v7, 0.0  ;;  %v4749_v50 = vld [vmem:[#allocation5 + $0x1e0] sm:$0xff]  ;;  %v4748_v20 = vld [vmem:[#allocation5 + $0x1a8] sm:$0xff] }
0x1ae5   : > { %v4388_v53 = vadd.f32 %v4387_v24, %v7782_v45  ;;  %v4441_v26 = vadd.f32 %v4440_v10, %v7785_v46  ;;  %4650 = vmatpush1.bf16.xpose.msra.mxu1 %v5863_v61  ;;  %4697 = vmatpush1.bf16.xpose.msra.mxu0 %v5865_v9  ;;  %v4452_v35 = vmax.f32 %v4384_v62, 0.0  ;;  %v4454_v59 = vmax.f32 %v4437_v6, 0.0  ;;  %v4949_v51 = vld [vmem:[#allocation7 + $0x1e0] sm:$0xff]  ;;  %v4948_v7 = vld [vmem:[#allocation7 + $0x1a8] sm:$0xff]  ;;  %v7837_v6 = vld [vmem:[#allocation5 + $0x130] sm:$0xff] }
0x1ae6   : > { %v4455_v42 = vmax.f32 %v4386_v44, 0.0  ;;  %v4457_v1 = vmax.f32 %v4439_v22, 0.0  ;;  %4651 = vmatprep.subr.bf16.mxu1 %v5868_v21  ;;  %4698 = vmatprep.subr.bf16.mxu0 %v5870_v63  ;;  %v5873_v9 = vcombine.high %v4743_v31, %v4745_v54  ;;  %v5877_v11 = vcombine.high %v4747_v55, %v4749_v50  ;;  %v4950_v37 = vld [vmem:[#allocation7 + $0x1e8] sm:$0xff]  ;;  %v7839_v5 = vld [vmem:[#allocation5 + $0x170] sm:$0xff]  ;;  %v7841_v41 = vld [vmem:[#allocation5 + $0x138] sm:$0xff] }
0x1ae7   : > { %v4456_v19 = vmax.f32 %v4388_v53, 0.0  ;;  %v4458_v45 = vmax.f32 %v4441_v26, 0.0  ;;  %v5879_v49 = vcombine.high %v4748_v20, %v4750_v43  ;;  %v5889_v34 = vcombine.high %v4947_v36, %v4949_v51  ;;  %v7847_v24 = vld [vmem:[#allocation5 + $0x178] sm:$0xff] }
0x1ae8   : > { %v4463_v46 = vpack.c.bf16 %v4455_v42, %v4451_v39  ;;  %v4465_v40 = vpack.c.bf16 %v4457_v1, %v4453_v2  ;;  %v5888_v21 = vcombine.low %v4947_v36, %v4949_v51  ;;  %v5890_v63 = vcombine.low %v4948_v7, %v4950_v37 }
0x1ae9   : > { %v4464_v61 = vpack.c.bf16 %v4456_v19, %v4452_v35  ;;  %v4466_v28 = vpack.c.bf16 %v4458_v45, %v4454_v59  ;;  %v5891_v62 = vcombine.high %v4948_v7, %v4950_v37  ;;  %v5893_v44 = vcombine.low %v7837_v6, %v7839_v5 }
0x1aea   : > { %v5894_v22 = vcombine.high %v7837_v6, %v7839_v5  ;;  %v5895_v10 = vcombine.low %v7841_v41, %v7847_v24  ;;  %v5896_v53 = vcombine.high %v7841_v41, %v7847_v24  ;;  %v5287_v41 = vld [vmem:[#allocation7 + $0x130] sm:$0xff] }
0x1aeb   : > { %4553 = vmatprep.mubr.bf16.mxu1 %v4464_v61  ;;  %4600 = vmatprep.mubr.bf16.mxu0 %v4466_v28  ;;  %v5289_v24 = vld [vmem:[#allocation7 + $0x170] sm:$0xff] }
0x1aec   : > { %4554 = vmatmul.mubr.bf16.gmra.mrb[120].mxu1 %v4463_v46  ;;  %4601 = vmatmul.mubr.bf16.gmra.mrb[128].mxu0 %v4465_v40 }
0x1aed   : > { %4652 = vmatpush1.bf16.xpose.msra.mxu1 %v5867_v56  ;;  %4681 = vmatprep.mubr.bf16.mxu1 %v7768_v13  ;;  %v5876_v13 = vcombine.low %v4747_v55, %v4749_v50 }
0x1aee   : > { %4699 = vmatpush1.bf16.xpose.msra.mxu0 %v5869_v47  ;;  %4728 = vmatprep.mubr.bf16.mxu0 %v7770_v57  ;;  %v5878_v57 = vcombine.low %v4748_v20, %v4750_v43 }
0x1aef   : > { %4813 = vmatprep.subr.bf16.mxu1 %v5873_v9  ;;  %4866 = vmatprep.subr.bf16.mxu0 %v5875_v17 }
0x1af4   : > { %4682 = vmatmul.mubr.bf16.vlgmr.msra.gmra.mrb[124].mxu1 %v7764_v3  ;;  %v4943_v3 = vld [vmem:[#allocation7 + $0x120] sm:$0xff] }
0x1af5   : > { %4729 = vmatmul.mubr.bf16.vlgmr.msra.gmra.mrb[132].mxu0 %v7766_v16  ;;  %4687 = vmatprep.mubr.bf16.mxu1 %v7791_v4  ;;  %v4945_v16 = vld [vmem:[#allocation7 + $0x160] sm:$0xff]  ;;  %v4946_v4 = vld [vmem:[#allocation7 + $0x168] sm:$0xff] }
0x1af6   : > { %4734 = vmatprep.mubr.bf16.mxu0 %v7793_v12  ;;  %4814 = vmatpush1.bf16.msra.mxu1 %v5872_v18  ;;  %v5884_v12 = vcombine.low %v4943_v3, %v4945_v16 }
0x1af7   : > { %4867 = vmatpush1.bf16.msra.mxu0 %v5874_v14  ;;  %4815 = vmatprep.subr.bf16.mxu1 %v5877_v11 }
0x1af8   : > { %4868 = vmatprep.subr.bf16.mxu0 %v5879_v49 }
0x1afa   : > { %4816 = vmatpush1.bf16.msra.mxu1 %v5876_v13 }
0x1afb   : > { %4869 = vmatpush1.bf16.msra.mxu0 %v5878_v57 }
0x1afc   : > { %4688 = vmatmul.mubr.bf16.gmra.mrb[128].mxu1 %v7787_v23  ;;  %v4944_v23 = vld [vmem:[#allocation7 + $0x128] sm:$0xff] }
0x1afd   : > { %4735 = vmatmul.mubr.bf16.gmra.mrb[136].mxu0 %v7789_v60  ;;  %4845 = vmatprep.mubr.bf16.mxu1 %v6691_v58  ;;  %v5885_v60 = vcombine.high %v4943_v3, %v4945_v16  ;;  %v5886_v48 = vcombine.low %v4944_v23, %v4946_v4  ;;  %v5887_v30 = vcombine.high %v4944_v23, %v4946_v4  ;;  %v5871_v16 = vld [vmem:[%s7979_s6 + $0x18] sm:$0xf] }
0x1afe   : > { %4898 = vmatprep.mubr.bf16.mxu0 %v6691_v58  ;;  %v4756_v36 = vrot.slane %v5871_v16, %v7249_v25  ;;  %v4764_v51 = vrot.slane %v5871_v16, %v7251_v29  ;;  %v4760_v7 = vrot.slane %v5871_v16, %v7256_v0 }
0x1aff   : > { %4991 = vmatprep.subr.bf16.mxu1 %v5885_v60  ;;  %5038 = vmatprep.subr.bf16.mxu0 %v5887_v30 }
0x1b04   : > { %5880 = vmatmul.mubr.msk.bf16.vlgmr.msra.gmra.mrb[132].mxu1 %vm569_vm0, %v7708_v8 }
0x1b05   : > { %5882 = vmatmul.mubr.msk.bf16.vlgmr.msra.gmra.mrb[140].mxu0 %vm569_vm0, %v7708_v8  ;;  %4855 = vmatprep.mubr.bf16.mxu1 %v6691_v58 }
0x1b06   : > { %4908 = vmatprep.mubr.bf16.mxu0 %v6691_v58  ;;  %4992 = vmatpush1.bf16.xpose.msra.mxu1 %v5884_v12 }
0x1b07   : > { %5039 = vmatpush1.bf16.xpose.msra.mxu0 %v5886_v48  ;;  %4993 = vmatprep.subr.bf16.mxu1 %v5889_v34  ;;  %v4768_v34 = vrot.slane %v5871_v16, %v7258_v32 }
0x1b08   : > { %5040 = vmatprep.subr.bf16.mxu0 %v5891_v62 }
0x1b0c   : > { %5881 = vmatmul.mubr.msk.bf16.gmra.mrb[136].mxu1 %vm569_vm0, %v7723_v15 }
0x1b0d   : > { %5883 = vmatmul.mubr.msk.bf16.gmra.mrb[144].mxu0 %vm569_vm0, %v7723_v15 }
0x1b0e   : > { %4994 = vmatpush1.bf16.xpose.msra.mxu1 %v5888_v21 }
0x1b0f   : > { %5041 = vmatpush1.bf16.xpose.msra.mxu0 %v5890_v63  ;;  %5157 = vmatprep.subr.bf16.mxu1 %v5894_v22 }
0x1b10   : > { %5210 = vmatprep.subr.bf16.mxu0 %v5896_v53 }
0x1bb7   : > { %v4549_v26 = vpop.f32.mrb[116].mxu1  ;;  %v4596_v39 = vpop.f32.mrb[124].mxu0 }
0x1bb8   : > { %v4550_v2 = vpop.f32.mrb[117].mxu1  ;;  %v4597_v42 = vpop.f32.mrb[125].mxu0 }
0x1bb9   : > { %v4551_v1 = vpop.f32.mrb[118].mxu1  ;;  %v4598_v35 = vpop.f32.mrb[126].mxu0 }
0x1bba   : > { %v4552_v59 = vpop.f32.mrb[119].mxu1  ;;  %v4599_v19 = vpop.f32.mrb[127].mxu0 }
0x1bbf   : > { %v4555_v45 = vpop.f32.mrb[120].mxu1  ;;  %v4602_v31 = vpop.f32.mrb[128].mxu0 }
0x1bc0   : > { %v4603_v46 = vadd.f32 %v4602_v31, %v4555_v45  ;;  %v4557_v40 = vpop.f32.mrb[121].mxu1  ;;  %v4604_v54 = vpop.f32.mrb[129].mxu0 }
0x1bc1   : > { %v4558_v27 = vpop.f32.mrb[122].mxu1  ;;  %v4605_v52 = vpop.f32.mrb[130].mxu0 }
0x1bc2   : > { %v4606_v61 = vadd.f32 %v4605_v52, %v4558_v27  ;;  %v4560_v28 = vpop.f32.mrb[123].mxu1  ;;  %v4607_v56 = vpop.f32.mrb[131].mxu0 }
0x1bc3   : > { %v5091_v28 = vld [vmem:[#allocation5 + $0x1b0] sm:$0xff] }
0x1bc4   : > { %v5093_v56 = vld [vmem:[#allocation5 + $0x1f0] sm:$0xff] }
0x1bc7   : > { %v4683_v47 = vpop.f32.mrb[124].mxu1 }
0x1bc8   : > { %v4730_v9 = vpop.f32.mrb[132].mxu0  ;;  %v4684_v17 = vpop.f32.mrb[125].mxu1 }
0x1bc9   : > { %v4731_v55 = vpop.f32.mrb[133].mxu0  ;;  %v4685_v50 = vpop.f32.mrb[126].mxu1 }
0x1bca   : > { %v4732_v20 = vpop.f32.mrb[134].mxu0  ;;  %v4686_v43 = vpop.f32.mrb[127].mxu1  ;;  %v5092_v55 = vld [vmem:[#allocation5 + $0x1b8] sm:$0xff] }
0x1bcb   : > { %v4733_v18 = vpop.f32.mrb[135].mxu0  ;;  %v5094_v50 = vld [vmem:[#allocation5 + $0x1f8] sm:$0xff] }
0x1bcf   : > { %v4689_v14 = vpop.f32.mrb[128].mxu1 }
0x1bd0   : > { %v4690_v11 = vadd.f32 %v4689_v14, %v4603_v46  ;;  %v4736_v49 = vpop.f32.mrb[136].mxu0  ;;  %v4691_v13 = vpop.f32.mrb[129].mxu1 }
0x1bd1   : > { %v4738_v57 = vpop.f32.mrb[137].mxu0  ;;  %v4692_v3 = vpop.f32.mrb[130].mxu1 }
0x1bd2   : > { %v7856_v23 = vadd.f32 %v4736_v49, %v4690_v11  ;;  %v4693_v60 = vadd.f32 %v4692_v3, %v4606_v61  ;;  %v4739_v4 = vpop.f32.mrb[138].mxu0  ;;  %v4694_v12 = vpop.f32.mrb[131].mxu1  ;;  %v5898_v57 = vcombine.high %v5091_v28, %v5093_v56 }
0x1bd3   : > { %v4741_v48 = vpop.f32.mrb[139].mxu0  ;;  %v5900_v12 = vcombine.high %v5092_v55, %v5094_v50 }
0x1bd4   : > { %v7858_v30 = vadd.f32 %v4739_v4, %v4693_v60 }
0x1bd7   : > { %v4847_v37 = vpop.f32.mrb[132].mxu1 }
0x1bd8   : > { %v4848_v21 = vadd.f32 %v4847_v37, %v4756_v36  ;;  %v4900_v63 = vpop.f32.mrb[140].mxu0  ;;  %v4849_v62 = vpop.f32.mrb[133].mxu1 }
0x1bd9   : > { %v4901_v22 = vadd.f32 %v4900_v63, %v4764_v51  ;;  %v4850_v53 = vadd.f32 %v4849_v62, %v4760_v7  ;;  %v4902_v26 = vpop.f32.mrb[141].mxu0  ;;  %v4851_v39 = vpop.f32.mrb[134].mxu1 }
0x1bda   : > { %v4903_v2 = vadd.f32 %v4902_v26, %v4768_v34  ;;  %v4852_v42 = vadd.f32 %v4851_v39, %v4756_v36  ;;  %v4904_v1 = vpop.f32.mrb[142].mxu0  ;;  %v4853_v35 = vpop.f32.mrb[135].mxu1  ;;  %v4919_v31 = vmax.f32 %v4848_v21, 0.0  ;;  %v5897_v26 = vcombine.low %v5091_v28, %v5093_v56 }
0x1bdb   : > { %v4905_v59 = vadd.f32 %v4904_v1, %v4764_v51  ;;  %v4854_v19 = vadd.f32 %v4853_v35, %v4760_v7  ;;  %v4906_v45 = vpop.f32.mrb[143].mxu0  ;;  %v4921_v54 = vmax.f32 %v4901_v22, 0.0  ;;  %v4920_v27 = vmax.f32 %v4850_v53, 0.0 }
0x1bdc   : > { %v4923_v46 = vmax.f32 %v4852_v42, 0.0  ;;  %v4907_v40 = vadd.f32 %v4906_v45, %v4768_v34  ;;  %v4922_v47 = vmax.f32 %v4903_v2, 0.0 }
0x1bdd   : > { %v4925_v52 = vmax.f32 %v4905_v59, 0.0  ;;  %v4924_v61 = vmax.f32 %v4854_v19, 0.0 }
0x1bde   : > { %v4935_v9 = vpack.c.bf16 %v4923_v46, %v4919_v31  ;;  %v4926_v17 = vmax.f32 %v4907_v40, 0.0  ;;  %v5290_v31 = vld [vmem:[#allocation7 + $0x178] sm:$0xff]  ;;  %v5905_v46 = vcombine.low %v5287_v41, %v5289_v24 }
0x1bdf   : > { %v4937_v20 = vpack.c.bf16 %v4925_v52, %v4921_v54  ;;  %v4936_v43 = vpack.c.bf16 %v4924_v61, %v4920_v27  ;;  %v4857_v18 = vpop.f32.mrb[136].mxu1  ;;  %v5292_v27 = vld [vmem:[#allocation7 + $0x1b8] sm:$0xff] }
0x1be0   : > { %v4938_v14 = vpack.c.bf16 %v4926_v17, %v4922_v47  ;;  %v4858_v11 = vadd.f32 %v4857_v18, %v4756_v36  ;;  %v4910_v49 = vpop.f32.mrb[144].mxu0  ;;  %v4859_v13 = vpop.f32.mrb[137].mxu1  ;;  %v5294_v61 = vld [vmem:[#allocation7 + $0x1f8] sm:$0xff] }
0x1be1   : > { %v4911_v3 = vadd.f32 %v4910_v49, %v4764_v51  ;;  %v4860_v16 = vadd.f32 %v4859_v13, %v4760_v7  ;;  %v4912_v60 = vpop.f32.mrb[145].mxu0  ;;  %v4861_v4 = vpop.f32.mrb[138].mxu1  ;;  %5023 = vmatprep.mubr.bf16.mxu1 %v4936_v43  ;;  %v5911_v56 = vcombine.low %v5292_v27, %v5294_v61 }
0x1be2   : > { %v4913_v48 = vadd.f32 %v4912_v60, %v4768_v34  ;;  %v4862_v37 = vadd.f32 %v4861_v4, %v4756_v36  ;;  %v4914_v21 = vpop.f32.mrb[146].mxu0  ;;  %5070 = vmatprep.mubr.bf16.mxu0 %v4938_v14  ;;  %v4863_v63 = vpop.f32.mrb[139].mxu1  ;;  %5024 = vmatmul.mubr.bf16.vlgmr.msra.gmra.mrb[140].mxu1 %v4935_v9  ;;  %v4927_v39 = vmax.f32 %v4858_v11, 0.0  ;;  %v5899_v36 = vcombine.low %v5092_v55, %v5094_v50 }
0x1be3   : > { %v4915_v62 = vadd.f32 %v4914_v21, %v4764_v51  ;;  %v4864_v22 = vadd.f32 %v4863_v63, %v4760_v7  ;;  %v4916_v53 = vpop.f32.mrb[147].mxu0  ;;  %5071 = vmatmul.mubr.bf16.vlgmr.msra.gmra.mrb[148].mxu0 %v4937_v20  ;;  %5158 = vmatpush1.bf16.msra.mxu1 %v5893_v44  ;;  %v4929_v1 = vmax.f32 %v4911_v3, 0.0  ;;  %v4928_v35 = vmax.f32 %v4860_v16, 0.0  ;;  %v5892_v16 = vld [vmem:[%s7979_s6 + $0x1c] sm:$0xf] }
0x1be4   : > { %v4931_v2 = vmax.f32 %v4862_v37, 0.0  ;;  %v4917_v42 = vadd.f32 %v4916_v53, %v4768_v34  ;;  %5211 = vmatpush1.bf16.msra.mxu0 %v5895_v10  ;;  %5159 = vmatprep.subr.bf16.mxu1 %v5898_v57  ;;  %v4930_v59 = vmax.f32 %v4913_v48, 0.0  ;;  %v5288_v10 = vld [vmem:[#allocation7 + $0x138] sm:$0xff]  ;;  %v5906_v34 = vcombine.high %v5287_v41, %v5289_v24 }
0x1be5   : > { %v4933_v51 = vmax.f32 %v4915_v62, 0.0  ;;  %v4932_v7 = vmax.f32 %v4864_v22, 0.0  ;;  %5212 = vmatprep.subr.bf16.mxu0 %v5900_v12  ;;  %v5907_v40 = vcombine.low %v5288_v10, %v5290_v31  ;;  %v5908_v54 = vcombine.high %v5288_v10, %v5290_v31 }
0x1be6   : > { %v4939_v19 = vpack.c.bf16 %v4931_v2, %v4927_v39  ;;  %v4934_v45 = vmax.f32 %v4917_v42, 0.0  ;;  %v5100_v21 = vrot.slane %v5892_v16, %v7249_v25  ;;  %v5108_v62 = vrot.slane %v5892_v16, %v7251_v29 }
0x1be7   : > { %v4941_v6 = vpack.c.bf16 %v4933_v51, %v4929_v1  ;;  %v4940_v5 = vpack.c.bf16 %v4932_v7, %v4928_v35  ;;  %5160 = vmatpush1.bf16.msra.mxu1 %v5897_v26  ;;  %v5104_v22 = vrot.slane %v5892_v16, %v7256_v0  ;;  %v5112_v53 = vrot.slane %v5892_v16, %v7258_v32 }
0x1be8   : > { %v4942_v44 = vpack.c.bf16 %v4934_v45, %v4930_v59  ;;  %5213 = vmatpush1.bf16.msra.mxu0 %v5899_v36  ;;  %5335 = vmatprep.subr.bf16.mxu1 %v5906_v34 }
0x1be9   : > { %5029 = vmatprep.mubr.bf16.mxu1 %v4940_v5  ;;  %5382 = vmatprep.subr.bf16.mxu0 %v5908_v54 }
0x1bea   : > { %5076 = vmatprep.mubr.bf16.mxu0 %v4942_v44  ;;  %5030 = vmatmul.mubr.bf16.gmra.mrb[144].mxu1 %v4939_v19 }
0x1beb   : > { %5077 = vmatmul.mubr.bf16.gmra.mrb[152].mxu0 %v4941_v6  ;;  %5189 = vmatprep.mubr.bf16.mxu1 %v6691_v58 }
0x1bec   : > { %5242 = vmatprep.mubr.bf16.mxu0 %v6691_v58 }
0x1bf2   : > { %5901 = vmatmul.mubr.msk.bf16.vlgmr.msra.gmra.mrb[148].mxu1 %vm569_vm0, %v7708_v8 }
0x1bf3   : > { %5903 = vmatmul.mubr.msk.bf16.vlgmr.msra.gmra.mrb[156].mxu0 %vm569_vm0, %v7708_v8  ;;  %5199 = vmatprep.mubr.bf16.mxu1 %v6691_v58  ;;  %v5291_v8 = vld [vmem:[#allocation7 + $0x1b0] sm:$0xff] }
0x1bf4   : > { %5252 = vmatprep.mubr.bf16.mxu0 %v6691_v58  ;;  %5336 = vmatpush1.bf16.xpose.msra.mxu1 %v5905_v46  ;;  %v5293_v58 = vld [vmem:[#allocation7 + $0x1f0] sm:$0xff] }
0x1bf5   : > { %5383 = vmatpush1.bf16.xpose.msra.mxu0 %v5907_v40  ;;  %v5910_v52 = vcombine.high %v5291_v8, %v5293_v58  ;;  %v5909_v28 = vcombine.low %v5291_v8, %v5293_v58 }
0x1bf7   : > { %5337 = vmatprep.subr.bf16.mxu1 %v5910_v52 }
0x1bfa   : > { %5902 = vmatmul.mubr.msk.bf16.gmra.mrb[152].mxu1 %vm569_vm0, %v7723_v15 }
0x1bfb   : > { %5904 = vmatmul.mubr.msk.bf16.gmra.mrb[160].mxu0 %vm569_vm0, %v7723_v15  ;;  %v5912_v15 = vcombine.high %v5292_v27, %v5294_v61 }
0x1bfc   : > { %5338 = vmatpush1.bf16.xpose.msra.mxu1 %v5909_v28 }
0x1bfd   : > { %5384 = vmatprep.subr.bf16.mxu0 %v5912_v15 }
0x1bfe   : > { %5385 = vmatpush1.bf16.xpose.msra.mxu0 %v5911_v56 }
0x1cb5   : > { %v5025_v47 = vpop.f32.mrb[140].mxu1 }
0x1cb6   : > { %v5072_v9 = vpop.f32.mrb[148].mxu0  ;;  %v5026_v17 = vpop.f32.mrb[141].mxu1 }
0x1cb7   : > { %v5073_v55 = vpop.f32.mrb[149].mxu0  ;;  %v5027_v50 = vpop.f32.mrb[142].mxu1 }
0x1cb8   : > { %v5074_v20 = vpop.f32.mrb[150].mxu0  ;;  %v5028_v43 = vpop.f32.mrb[143].mxu1 }
0x1cb9   : > { %v5075_v18 = vpop.f32.mrb[151].mxu0 }
0x1cbd   : > { %v5031_v14 = vpop.f32.mrb[144].mxu1 }
0x1cbe   : > { %v5078_v11 = vpop.f32.mrb[152].mxu0  ;;  %v5033_v49 = vpop.f32.mrb[145].mxu1 }
0x1cbf   : > { %v5079_v13 = vadd.f32 %v5078_v11, %v5031_v14  ;;  %v5080_v57 = vpop.f32.mrb[153].mxu0  ;;  %v5034_v3 = vpop.f32.mrb[146].mxu1 }
0x1cc0   : > { %v5081_v60 = vpop.f32.mrb[154].mxu0  ;;  %v5036_v4 = vpop.f32.mrb[147].mxu1 }
0x1cc1   : > { %v7886_v12 = vadd.f32 %v5079_v13, %v7856_v23  ;;  %v5082_v48 = vadd.f32 %v5081_v60, %v5034_v3  ;;  %v5083_v37 = vpop.f32.mrb[155].mxu0 }
0x1cc3   : > { %v7890_v63 = vadd.f32 %v5082_v48, %v7858_v30 }
0x1cc5   : > { %v5191_v26 = vpop.f32.mrb[148].mxu1 }
0x1cc6   : > { %v5192_v39 = vadd.f32 %v5191_v26, %v5100_v21  ;;  %v5244_v2 = vpop.f32.mrb[156].mxu0  ;;  %v5193_v42 = vpop.f32.mrb[149].mxu1 }
0x1cc7   : > { %v5245_v36 = vadd.f32 %v5244_v2, %v5108_v62  ;;  %v5194_v23 = vadd.f32 %v5193_v42, %v5104_v22  ;;  %v5246_v1 = vpop.f32.mrb[157].mxu0  ;;  %v5195_v35 = vpop.f32.mrb[150].mxu1 }
0x1cc8   : > { %v5247_v51 = vadd.f32 %v5246_v1, %v5112_v53  ;;  %v5196_v7 = vadd.f32 %v5195_v35, %v5100_v21  ;;  %v5248_v25 = vpop.f32.mrb[158].mxu0  ;;  %v5197_v59 = vpop.f32.mrb[151].mxu1  ;;  %v5263_v29 = vmax.f32 %v5192_v39, 0.0 }
0x1cc9   : > { %v5249_v30 = vadd.f32 %v5248_v25, %v5108_v62  ;;  %v5198_v19 = vadd.f32 %v5197_v59, %v5104_v22  ;;  %v5250_v45 = vpop.f32.mrb[159].mxu0  ;;  %v5265_v5 = vmax.f32 %v5245_v36, 0.0  ;;  %v5264_v32 = vmax.f32 %v5194_v23, 0.0  ;;  %v5914_v25 = vld [vmem:[%s7981_s8 + $0x1] ss:$0 sm:$0xff] }
0x1cca   : > { %v5267_v6 = vmax.f32 %v5196_v7, 0.0  ;;  %v5251_v0 = vadd.f32 %v5250_v45, %v5112_v53  ;;  %v5266_v24 = vmax.f32 %v5247_v51, 0.0 }
0x1ccb   : > { %v5269_v44 = vmax.f32 %v5249_v30, 0.0  ;;  %v5268_v41 = vmax.f32 %v5198_v19, 0.0 }
0x1ccc   : > { %v5279_v10 = vpack.c.bf16 %v5267_v6, %v5263_v29  ;;  %v5270_v34 = vmax.f32 %v5251_v0, 0.0 }
0x1ccd   : > { %v5281_v31 = vpack.c.bf16 %v5269_v44, %v5265_v5  ;;  %v5280_v46 = vpack.c.bf16 %v5268_v41, %v5264_v32  ;;  %v5201_v40 = vpop.f32.mrb[152].mxu1 }
0x1cce   : > { %v5282_v54 = vpack.c.bf16 %v5270_v34, %v5266_v24  ;;  %v5202_v8 = vadd.f32 %v5201_v40, %v5100_v21  ;;  %v5254_v58 = vpop.f32.mrb[160].mxu0  ;;  %v5203_v27 = vpop.f32.mrb[153].mxu1 }
0x1ccf   : > { %v5255_v52 = vadd.f32 %v5254_v58, %v5108_v62  ;;  %v5204_v61 = vadd.f32 %v5203_v27, %v5104_v22  ;;  %v5256_v28 = vpop.f32.mrb[161].mxu0  ;;  %v5205_v56 = vpop.f32.mrb[154].mxu1  ;;  %5367 = vmatprep.mubr.bf16.mxu1 %v5280_v46  ;;  %v6692_v58 = vmov 0.0   ;;  %v6357_v27 = vld [vmem:[%s7986_s13 + $0x8] sm:$0xff]  }
0x1cd0   : > { %v5257_v15 = vadd.f32 %v5256_v28, %v5112_v53  ;;  %v5206_v47 = vadd.f32 %v5205_v56, %v5100_v21  ;;  %v5258_v9 = vpop.f32.mrb[162].mxu0  ;;  %5414 = vmatprep.mubr.bf16.mxu0 %v5282_v54  ;;  %v5207_v17 = vpop.f32.mrb[155].mxu1  ;;  %5368 = vmatmul.mubr.bf16.vlgmr.msra.gmra.mrb[156].mxu1 %v5279_v10  ;;  %v5271_v43 = vmax.f32 %v5202_v8, 0.0 }
0x1cd1   : > { %v5259_v55 = vadd.f32 %v5258_v9, %v5108_v62  ;;  %v5208_v50 = vadd.f32 %v5207_v17, %v5104_v22  ;;  %v5260_v20 = vpop.f32.mrb[163].mxu0  ;;  %5415 = vmatmul.mubr.bf16.vlgmr.msra.gmra.mrb[164].mxu0 %v5281_v31  ;;  %v5273_v11 = vmax.f32 %v5255_v52, 0.0  ;;  %v5272_v49 = vmax.f32 %v5204_v61, 0.0  ;;  %6172 = vmatprep.subr.bf16.mxu1 %v6692_v58  ;;  %v5916_v17 = vld [vmem:[%s7984_s11 + $0x1] ss:$0 sm:$0xff] }
0x1cd2   : > { %v5275_v18 = vmax.f32 %v5206_v47, 0.0  ;;  %v5261_v14 = vadd.f32 %v5260_v20, %v5112_v53  ;;  %v5274_v3 = vmax.f32 %v5257_v15, 0.0 }
0x1cd3   : > { %v5277_v13 = vmax.f32 %v5259_v55, 0.0  ;;  %v5276_v57 = vmax.f32 %v5208_v50, 0.0 }
0x1cd4   : > { %v5283_v16 = vpack.c.bf16 %v5275_v18, %v5271_v43  ;;  %v5278_v60 = vmax.f32 %v5261_v14, 0.0  ;;  %v5918_v18 = vld [vmem:[%s7985_s12 + $0x1] ss:$0 sm:$0xff] }
0x1cd5   : > { %v5285_v4 = vpack.c.bf16 %v5277_v13, %v5273_v11  ;;  %v5284_v48 = vpack.c.bf16 %v5276_v57, %v5272_v49  ;;  %v5919_v57 = vld [vmem:[%s8032_s17] ss:$0 sm:$0xff] }
0x1cd6   : > { %v5286_v37 = vpack.c.bf16 %v5278_v60, %v5274_v3 }
0x1cd7   : > { %5373 = vmatprep.mubr.bf16.mxu1 %v5284_v48 }
0x1cd8   : > { %5420 = vmatprep.mubr.bf16.mxu0 %v5286_v37  ;;  %5374 = vmatmul.mubr.bf16.gmra.mrb[160].mxu1 %v5283_v16 }
0x1cd9   : > { %5421 = vmatmul.mubr.bf16.gmra.mrb[168].mxu0 %v5285_v4  ;;  %6176 = vmatprep.mubr.msk.bf16.mxu1 %vm6693_vm4, %v6692_v58 }
0x1da3   : > { %v5369_v21 = vpop.f32.mrb[156].mxu1 }
0x1da4   : > { %v5416_v62 = vpop.f32.mrb[164].mxu0  ;;  %v5370_v22 = vpop.f32.mrb[157].mxu1 }
0x1da5   : > { %v5417_v26 = vpop.f32.mrb[165].mxu0  ;;  %v5371_v39 = vpop.f32.mrb[158].mxu1 }
0x1da6   : > { %v5418_v53 = vpop.f32.mrb[166].mxu0  ;;  %v5372_v2 = vpop.f32.mrb[159].mxu1 }
0x1da7   : > { %v5419_v42 = vpop.f32.mrb[167].mxu0 }
0x1dab   : > { %v5375_v36 = vpop.f32.mrb[160].mxu1 }
0x1dac   : > { %v5422_v23 = vpop.f32.mrb[168].mxu0  ;;  %v5377_v1 = vpop.f32.mrb[161].mxu1 }
0x1dad   : > { %v5423_v35 = vadd.f32 %v5422_v23, %v5375_v36  ;;  %v5424_v51 = vpop.f32.mrb[169].mxu0  ;;  %v5378_v7 = vpop.f32.mrb[162].mxu1 }
0x1dae   : > { %v5425_v59 = vpop.f32.mrb[170].mxu0  ;;  %v5380_v30 = vpop.f32.mrb[163].mxu1 }
0x1daf   : > { %v5429_v19 = vadd.f32 %v5423_v35, %v7886_v12  ;;  %v5426_v45 = vadd.f32 %v5425_v59, %v5378_v7  ;;  %v5427_v29 = vpop.f32.mrb[171].mxu0 }
0x1db1   : > { %v5439_v6 = vadd.f32 %v5914_v25, %v5429_v19  ;;  %v5430_v0 = vadd.f32 %v5426_v45, %v7890_v63 }
0x1db3   : > { %v5440_v5 = vadd.f32 %v5914_v25, %v5430_v0  ;;  %v5441_v32 = vadd.f32 %v5439_v6, %v7719_v33 }
0x1db5   : > { %v5443_v44 = vsel %vm569_vm0, %v5441_v32, 0.0  ;;  %v5442_v41 = vadd.f32 %v5440_v5, %v7715_v38  ;;  %v6356_v38 = vld [vmem:[%s7986_s13] sm:$0xff]  }
0x1db6   : > { %5444 = vadd.xlane.f32.xlu1 %v5443_v44  ;;  %6173 = vmatpush3.bf16.msra.mxu1 %v6356_v38 }
0x1db7   : > { %v5446_v24 = vsel %vm569_vm0, %v5442_v41, 0.0  ;;  %6174 = vmatprep.subr.bf16.mxu1 %v6692_v58 }
0x1db8   : > { %5447 = vadd.xlane.f32.xlu0 %v5446_v24 }
0x1dba   : > { %6175 = vmatpush3.bf16.msra.mxu1 %v6357_v27 }
0x1e43   : > { %v5445_v10 = vpop.xlane.xlu1 %5444 }
0x1e44   : > { %v5449_v34 = vmul.f32 0.03125, %v5445_v10 }
0x1e45   : > { %v5448_v31 = vpop.xlane.xlu0 %5447 }
0x1e46   : > { %v5451_v12 = vsub.f32 %v5441_v32, %v5449_v34  ;;  %v5450_v46 = vmul.f32 0.03125, %v5448_v31 }
0x1e48   : > { %v5452_v40 = vsub.f32 %v5442_v41, %v5450_v46  ;;  %v5453_v54 = vmul.f32 %v5451_v12, %v5451_v12 }
0x1e4a   : > { %v5455_v63 = vsel %vm569_vm0, %v5453_v54, 0.0  ;;  %v5454_v8 = vmul.f32 %v5452_v40, %v5452_v40 }
0x1e4b   : > { %5456 = vadd.xlane.f32.xlu1 %v5455_v63 }
0x1e4c   : > { %v5458_v33 = vsel %vm569_vm0, %v5454_v8, 0.0 }
0x1e4d   : > { %5459 = vadd.xlane.f32.xlu0 %v5458_v33 }
0x1ed8   : > { %v5457_v52 = vpop.xlane.xlu1 %5456 }
0x1ed9   : > { %v5461_v61 = vmul.f32 0.03125, %v5457_v52 }
0x1eda   : > { %v5460_v28 = vpop.xlane.xlu0 %5459 }
0x1edb   : > { %v5463_v56 = vadd.f32 1e-05, %v5461_v61  ;;  %v5462_v15 = vmul.f32 0.03125, %v5460_v28 }
0x1edd   : > { %6510 = vrsqrt.f32 %v5463_v56  ;;  %v5464_v47 = vadd.f32 1e-05, %v5462_v15 }
0x1edf   : > { %6512 = vrsqrt.f32 %v5464_v47 }
0x1ee7   : > { %v6511_v9 = vpop.eup %6510 }
0x1ee8   : > { %v5467_v55 = vmul.f32 %v6511_v9, %v5451_v12 }
0x1ee9   : > { %v6513_v50 = vpop.eup %6512 }
0x1eea   : > { %v5477_v20 = vmul.f32 %v5916_v17, %v5467_v55  ;;  %v5468_v43 = vmul.f32 %v6513_v50, %v5452_v40 }
0x1eec   : > { %v5478_v14 = vmul.f32 %v5916_v17, %v5468_v43  ;;  %v5487_v11 = vadd.f32 %v5918_v18, %v5477_v20 }
0x1eee   : > { %v5488_v49 = vadd.f32 %v5918_v18, %v5478_v14 }
0x1ef0   : > { %v5489_v13 = vpack.c.bf16 %v5488_v49, %v5487_v11 }
0x1ef2   : > { %6177 = vmatmul.mubr.msk.bf16.vlgmr.msra.gmra.mrb[164].mxu1 %vm569_vm0, %v5489_v13 }
0x1fc5   : > { %v5550_v3 = vpop.f32.mrb[164].mxu1 }
0x1fc6   : > { %v5551_v16 = vadd.f32 %v5919_v57, %v5550_v3  ;;  %v6178_v60 = vpop.f32.mrb[165].mxu1 }
0x1fc7   : > { %v5553_v4 = vpop.f32.mrb[166].mxu1 }
0x1fc8   : > { %5557 = vst [vmem:[%s532_s26] sm:$0xff] %v5551_v16  ;;  %v5554_v48 = vadd.f32 %v5919_v57, %v5553_v4  ;;  %v6179_v37 = vpop.f32.mrb[167].mxu1 }
0x1fca   : > { %5558 = vst [vmem:[%s532_s26 + $0x8] sm:$0xff] %v5554_v48 }
0x1fcb   : > { %6611 = shalt.err (!%p6608_p11)
}
0x1fcc   : > { %s6612_s24 = scalar_lea.hbm %s7929_s14, 256  ;;  %s6616_s17 = scalar_lea.hbm %s8034_s16, 512 }
0x1fcd   : > { %p6613_p5 = scmp.ne.s32.totalorder %s7929_s14, %s6612_s24  ;;  %p6617_p9 = scmp.lt.u32.totalorder %s7929_s14, %s8034_s16 }
0x1fce   : > { %p6618_p10 = scmp.lt.u32.totalorder %s6616_s17, %s6612_s24  ;;  %p6620_p12 = scmp.lt.u32.totalorder %s6612_s24, %s7929_s14 }
0x1fcf   : > { %p6614_p0 = pnand %p6613_p5, %p8035_p1 }
0x1fd0   : > { %p6619_p13 = por %p6618_p10, %p6617_p9 }
0x1fd1   : > { %p6615_p6 = pneg %p6614_p0 }
0x1fd2   : > { %p6621_p2 = por %p6620_p12, %p6619_p13 }
0x1fd4   : > { %p6622_p3 = pnand %p6621_p2, %p6615_p6 }
0x1fd6   : > { %6625 = shalt.err (!%p6622_p3)
}
0x1fd7   : > { %s6695_s27 = smov 128  }
0x1fd8   : > { %6208 = dma.vmem_to_hbm [thread:$0]  (%p8035_p1), %s7924_s28, 256, %s7929_s14, %s7931_s30, %s6695_s27, %s6695_s27, %s6688_s19  }
0x1fd9 PF: > { %s8036_s23 = sld [smem:[#allocation15_spill]]  ;;  %s8037_s22 = sld [smem:[#allocation12_spill]] }
0x1fda   : > { %s8038_s15 = sld [smem:[#allocation19_spill]] }
0x1fdf   : > { %p6230_p4 = scmp.ge.s32.totalorder %s8036_s23, 2  ;;  %s5588_s21 = sand.u32 1, %s8037_s22  }
0x1fe0   : > { %p8039_p7 = scmp.ne.s32.totalorder %s8038_s15, 0  ;;  %s5589_s29 = scalar_lea.sflag [#allocation4], %s5588_s21 }
0x1fe2   : > { %p6221_p8 = pnand %p6230_p4, %p8039_p7 }
0x1fe4   : > { %6651 = dma.done.wait (!%p6221_p8), %s5589_s29, 256  }
0x1fe5   : > { %6653 = vsyncadd (!%p6221_p8), %s5589_s29, 4294967040  ;;  %s8040_s21 = sld [smem:[#allocation16_spill]]  ;;  %s8041_s18 = sld [smem:[#allocation13_spill]] }
0x1fe6   : > { %s8042_s19 = sld [smem:[#allocation14_spill]]  ;;  %s8043_s20 = sld [smem:[#allocation17_spill]] }
0x1feb   : > { %p27_p11 = scmp.ge.s32.totalorder %s8040_s21, 4  }
0x1fed   :  { %29 = sbr.rel (!%p27_p11) target bundleno = 9 (0x9), region = 140 }
0x1ff4   :  { %5594 = vsyncpa [#allocation3], 1 }
0x1ff5   :  { %5596 = vsyncpa [#allocation3 + $0x1], 1 }
0x1ff6   :  { %5597 = vsyncpa [#allocation6], 1 }
0x1ff7   :  { %5598 = vsyncpa [#allocation4], 1 }
0x1ff8   :  { %5600 = vsyncpa [#allocation4 + $0x1], 1 }

</bundles_post_ra>
